<compile_context>
chip_gen: v7x
topology: tpu7x:2x2x1
jax: 0.10.0
libtpu: 0.0.40
codegen_flags: <defaults>
</compile_context>

<pallas_src>
import functools

import numpy as np

import jax
import jax.numpy as jnp
from jax import lax
from jax.experimental import pallas as pl
from jax.experimental.pallas import tpu as pltpu


KERNEL_SIZE = 7
STRIDE = 2
PAD = 3
OUT_PAD = 1

# (kind, C_in, C_out, activation) for the six layers of ConvAutoEncoder1D.
LAYER_CFG = (
    ("conv", 1, 16, "relu"),
    ("conv", 16, 32, "relu"),
    ("conv", 32, 64, "relu"),
    ("convT", 64, 32, "relu"),
    ("convT", 32, 16, "relu"),
    ("convT", 16, 1, "tanh"),
)
LAYER_NAMES = ("enc1", "enc2", "enc3", "dec1", "dec2", "dec3")


# ----------------------------------------------------------------------------
# Fused Pallas kernel: all 6 conv layers for one batch sample per grid step.
# ----------------------------------------------------------------------------
def _fused_autoencoder_kernel(*refs, acts):
    """refs = (x_ref, T1, W1, b1, ..., T6, W6, b6, o_ref).

    x_ref : (1, L0, 1)        input sample, channels-last
    T_i   : (7, L_out, L_in)  bf16 0/1 shift / decimate / zero-insert operators
    W_i   : (7, C_in, C_out)  bf16 per-tap weight matrices
    b_i   : (1, C_out)        f32 bias
    o_ref : (1, L_final, 1)   output sample
    """
    x_ref = refs[0]
    o_ref = refs[-1]
    p_refs = refs[1:-1]

    h = x_ref[0].astype(jnp.float32)                       # (L0, 1)
    for i, act in enumerate(acts):
        t_ref = p_refs[3 * i]
        w_ref = p_refs[3 * i + 1]
        b_ref = p_refs[3 * i + 2]
        l_out = t_ref.shape[1]
        c_in, c_out = w_ref.shape[1], w_ref.shape[2]

        hb = h.astype(jnp.bfloat16)                        # bf16 MXU operand
        acc = jnp.zeros((l_out, c_out), jnp.float32)       # f32 accumulator
        for t in range(KERNEL_SIZE):
            if c_in == 1:
                # Avoid a degenerate K=1 contraction: broadcast the single
                # input channel against the tap weights, then shift on MXU.
                xt = hb * w_ref[t]                         # (l_in, c_out) bf16
                acc = acc + jnp.dot(t_ref[t], xt,
                                    preferred_element_type=jnp.float32)
            else:
                # Shift/decimate (encoder) or zero-insert (decoder) along L,
                # then contract the input channels for this tap.
                ht = jnp.dot(t_ref[t], hb,
                             preferred_element_type=jnp.float32)
                acc = acc + jnp.dot(ht.astype(jnp.bfloat16), w_ref[t],
                                    preferred_element_type=jnp.float32)

        acc = acc + b_ref[...]                             # (1, c_out) broadcast
        if act == "relu":
            h = jnp.maximum(acc, 0.0)
        elif act == "tanh":
            h = jnp.tanh(acc)
        else:
            h = acc

    o_ref[0] = h.astype(o_ref.dtype)                       # (L_final, 1)


# ----------------------------------------------------------------------------
# One-time parameter prep (outside jit): constant shift operators + weights.
# ----------------------------------------------------------------------------
def _conv_out_len(l_in):
    return (l_in + 2 * PAD - KERNEL_SIZE) // STRIDE + 1


def _convT_out_len(l_in):
    return (l_in - 1) * STRIDE - 2 * PAD + KERNEL_SIZE + OUT_PAD


def _shift_ops_conv(l_in, l_out):
    # out[l] uses x[STRIDE*l + t - PAD] for tap t (zeros outside range).
    t_mats = np.zeros((KERNEL_SIZE, l_out, l_in), np.float32)
    for t in range(KERNEL_SIZE):
        for l in range(l_out):
            i = STRIDE * l + t - PAD
            if 0 <= i < l_in:
                t_mats[t, l, i] = 1.0
    return t_mats


def _shift_ops_convT(l_in, l_out):
    # out[m] uses x[(m + PAD - t) / STRIDE] for tap t when that index is an
    # integer in range (PyTorch ConvTranspose1d semantics, incl. output_padding).
    t_mats = np.zeros((KERNEL_SIZE, l_out, l_in), np.float32)
    for t in range(KERNEL_SIZE):
        for m in range(l_out):
            num = m + PAD - t
            if num >= 0 and num % STRIDE == 0:
                i = num // STRIDE
                if i < l_in:
                    t_mats[t, m, i] = 1.0
    return t_mats


def prepare_operands(params, input_len):
    """Fold PyTorch-layout conv weights + static shift operators into per-layer
    (T, W, b) triples. Runs once at parameter-prep time (outside jit)."""
    flat, acts = [], []
    l_cur = input_len
    for name, (kind, _c_in, c_out, act) in zip(LAYER_NAMES, LAYER_CFG):
        w, b = params[name]
        if kind == "conv":
            l_out = _conv_out_len(l_cur)
            t_mats = _shift_ops_conv(l_cur, l_out)
            w_taps = jnp.transpose(w, (2, 1, 0))           # (7, C_in, C_out)
        else:
            l_out = _convT_out_len(l_cur)
            t_mats = _shift_ops_convT(l_cur, l_out)
            w_taps = jnp.transpose(w, (2, 0, 1))           # (7, C_in, C_out)
        flat += [jnp.asarray(t_mats, dtype=jnp.bfloat16),
                 w_taps.astype(jnp.bfloat16),
                 b.reshape(1, c_out).astype(jnp.float32)]
        acts.append(act)
        l_cur = l_out
    return tuple(flat), tuple(acts), l_cur


def make_forward(params, input_len):
    flat_ops, acts, l_final = prepare_operands(params, input_len)
    kern = functools.partial(_fused_autoencoder_kernel, acts=acts)

    def forward(x):
        batch, l0 = x.shape
        assert l0 == input_len, (l0, input_len)
        x3 = x.astype(jnp.float32).reshape(batch, l0, 1)   # channels-last

        in_specs = [pl.BlockSpec((1, l0, 1), lambda b: (b, 0, 0))]
        for op in flat_ops:
            in_specs.append(
                pl.BlockSpec(op.shape, lambda b, _nd=op.ndim: (0,) * _nd))

        out = pl.pallas_call(
            kern,
            out_shape=jax.ShapeDtypeStruct((batch, l_final, 1), jnp.float32),
            grid=(batch,),
            in_specs=in_specs,
            out_specs=pl.BlockSpec((1, l_final, 1), lambda b: (b, 0, 0)),
            compiler_params=pltpu.CompilerParams(
                dimension_semantics=("parallel",)),
        )(x3, *flat_ops)

        recon = out[:, :, 0]
        if recon.shape[1] > input_len:
            recon = recon[:, :input_len]
        return recon

    return jax.jit(forward)


# ----------------------------------------------------------------------------
# Parameter init (PyTorch default uniform) and pure-JAX reference.
# ----------------------------------------------------------------------------
def init_params(key):
    def _init(key, shape_w, c_out, fan_in):
        k1, k2 = jax.random.split(key)
        bound = 1.0 / (fan_in ** 0.5)
        w = jax.random.uniform(k1, shape_w, jnp.float32, -bound, bound)
        b = jax.random.uniform(k2, (c_out,), jnp.float32, -bound, bound)
        return w, b

    keys = jax.random.split(key, 6)
    return {
        # encoder Conv1d weights: (C_out, C_in, k)
        "enc1": _init(keys[0], (16, 1, 7), 16, 1 * 7),
        "enc2": _init(keys[1], (32, 16, 7), 32, 16 * 7),
        "enc3": _init(keys[2], (64, 32, 7), 64, 32 * 7),
        # decoder ConvTranspose1d weights: (C_in, C_out, k)
        "dec1": _init(keys[3], (64, 32, 7), 32, 32 * 7),
        "dec2": _init(keys[4], (32, 16, 7), 16, 16 * 7),
        "dec3": _init(keys[5], (16, 1, 7), 1, 1 * 7),
    }


def _apply_act(x, act):
    if act == "relu":
        return jnp.maximum(x, 0.0)
    if act == "tanh":
        return jnp.tanh(x)
    return x


def reference_forward(params, x, input_len):
    """Pure-JAX reference with PyTorch Conv1d / ConvTranspose1d semantics."""
    dn = ("NCH", "OIH", "NCH")
    h = x[:, None, :]                                      # (B, 1, L)
    for name, (kind, _c_in, _c_out, act) in zip(LAYER_NAMES, LAYER_CFG):
        w, b = params[name]
        if kind == "conv":
            out = lax.conv_general_dilated(
                h, w, window_strides=(STRIDE,), padding=[(PAD, PAD)],
                dimension_numbers=dn, precision=lax.Precision.HIGHEST)
        else:
            w_eq = jnp.flip(w, axis=-1).transpose(1, 0, 2)  # (C_out, C_in, k)
            out = lax.conv_general_dilated(
                h, w_eq, window_strides=(1,),
                padding=[(KERNEL_SIZE - 1 - PAD,
                          KERNEL_SIZE - 1 - PAD + OUT_PAD)],
                lhs_dilation=(STRIDE,),
                dimension_numbers=dn, precision=lax.Precision.HIGHEST)
        h = _apply_act(out + b[None, :, None], act)
    recon = h[:, 0, :]
    if recon.shape[1] > input_len:
        recon = recon[:, :input_len]
    return recon


# ----------------------------------------------------------------------------
if __name__ == "__main__":
    key = jax.random.PRNGKey(0)
    k_param, k_data = jax.random.split(key)

    batch = 2
    input_len = 64                      # divisible by 8 -> exact reconstruction

    params = init_params(k_param)
    x = jax.random.normal(k_data, (batch, input_len), jnp.float32)

    fwd = make_forward(params, input_len)
    recon = jax.block_until_ready(fwd(x))

    assert recon.shape == (batch, input_len), recon.shape
    assert recon.dtype == jnp.float32
    assert bool(jnp.all(jnp.isfinite(recon)))
    assert bool(jnp.all(jnp.abs(recon) <= 1.0))             # tanh output range

    # Numerical check against the pure-JAX reference (bf16 MXU operands in the
    # kernel, f32 accumulation -> loose tolerance).
    ref = jax.block_until_ready(reference_forward(params, x, input_len))
    np.testing.assert_allclose(np.asarray(recon), np.asarray(ref),
                               rtol=5e-2, atol=5e-2)

    print("KERNEL_OK")
</pallas_src>

<mosaic_0001>
module attributes {stable_mosaic.version = 11 : i64} {
  func.func @_fused_autoencoder_kernel(%arg0: i32, %arg1: memref<1x64x1xf32, #tpu.memory_space<vmem>>, %arg2: memref<7x32x64xbf16, #tpu.memory_space<vmem>>, %arg3: memref<7x1x16xbf16, #tpu.memory_space<vmem>>, %arg4: memref<1x16xf32, #tpu.memory_space<vmem>>, %arg5: memref<7x16x32xbf16, #tpu.memory_space<vmem>>, %arg6: memref<7x16x32xbf16, #tpu.memory_space<vmem>>, %arg7: memref<1x32xf32, #tpu.memory_space<vmem>>, %arg8: memref<7x8x16xbf16, #tpu.memory_space<vmem>>, %arg9: memref<7x32x64xbf16, #tpu.memory_space<vmem>>, %arg10: memref<1x64xf32, #tpu.memory_space<vmem>>, %arg11: memref<7x16x8xbf16, #tpu.memory_space<vmem>>, %arg12: memref<7x64x32xbf16, #tpu.memory_space<vmem>>, %arg13: memref<1x32xf32, #tpu.memory_space<vmem>>, %arg14: memref<7x32x16xbf16, #tpu.memory_space<vmem>>, %arg15: memref<7x32x16xbf16, #tpu.memory_space<vmem>>, %arg16: memref<1x16xf32, #tpu.memory_space<vmem>>, %arg17: memref<7x64x32xbf16, #tpu.memory_space<vmem>>, %arg18: memref<7x16x1xbf16, #tpu.memory_space<vmem>>, %arg19: memref<1x1xf32, #tpu.memory_space<vmem>>, %arg20: memref<1x64x1xf32, #tpu.memory_space<vmem>>) attributes {dimension_semantics = [#tpu.dimension_semantics<parallel>], iteration_bounds = array<i64: 2>, scalar_prefetch = 0 : i64, scratch_operands = 0 : i64, tpu.core_type = #tpu.core_type<tc>, window_params = [{transform_indices = @transform_0, window_bounds = array<i64: 1, 64, 1>}, {pipeline_mode = #tpu.pipeline_mode<synchronous>, transform_indices = @transform_1, window_bounds = array<i64: 7, 32, 64>}, {pipeline_mode = #tpu.pipeline_mode<synchronous>, transform_indices = @transform_2, window_bounds = array<i64: 7, 1, 16>}, {pipeline_mode = #tpu.pipeline_mode<synchronous>, transform_indices = @transform_3, window_bounds = array<i64: 1, 16>}, {pipeline_mode = #tpu.pipeline_mode<synchronous>, transform_indices = @transform_4, window_bounds = array<i64: 7, 16, 32>}, {pipeline_mode = #tpu.pipeline_mode<synchronous>, transform_indices = @transform_5, window_bounds = array<i64: 7, 16, 32>}, {pipeline_mode = #tpu.pipeline_mode<synchronous>, transform_indices = @transform_6, window_bounds = array<i64: 1, 32>}, {pipeline_mode = #tpu.pipeline_mode<synchronous>, transform_indices = @transform_7, window_bounds = array<i64: 7, 8, 16>}, {pipeline_mode = #tpu.pipeline_mode<synchronous>, transform_indices = @transform_8, window_bounds = array<i64: 7, 32, 64>}, {pipeline_mode = #tpu.pipeline_mode<synchronous>, transform_indices = @transform_9, window_bounds = array<i64: 1, 64>}, {pipeline_mode = #tpu.pipeline_mode<synchronous>, transform_indices = @transform_10, window_bounds = array<i64: 7, 16, 8>}, {pipeline_mode = #tpu.pipeline_mode<synchronous>, transform_indices = @transform_11, window_bounds = array<i64: 7, 64, 32>}, {pipeline_mode = #tpu.pipeline_mode<synchronous>, transform_indices = @transform_12, window_bounds = array<i64: 1, 32>}, {pipeline_mode = #tpu.pipeline_mode<synchronous>, transform_indices = @transform_13, window_bounds = array<i64: 7, 32, 16>}, {pipeline_mode = #tpu.pipeline_mode<synchronous>, transform_indices = @transform_14, window_bounds = array<i64: 7, 32, 16>}, {pipeline_mode = #tpu.pipeline_mode<synchronous>, transform_indices = @transform_15, window_bounds = array<i64: 1, 16>}, {pipeline_mode = #tpu.pipeline_mode<synchronous>, transform_indices = @transform_16, window_bounds = array<i64: 7, 64, 32>}, {pipeline_mode = #tpu.pipeline_mode<synchronous>, transform_indices = @transform_17, window_bounds = array<i64: 7, 16, 1>}, {pipeline_mode = #tpu.pipeline_mode<synchronous>, transform_indices = @transform_18, window_bounds = array<i64: 1, 1>}, {transform_indices = @transform_19, window_bounds = array<i64: 1, 64, 1>}]} {
    %c0 = arith.constant 0 : index
    %c0_0 = arith.constant 0 : index
    %c0_1 = arith.constant 0 : index
    %0 = vector.load %arg1[%c0, %c0_0, %c0_1] : memref<1x64x1xf32, #tpu.memory_space<vmem>>, vector<1x64x1xf32>
    %1 = vector.shape_cast %0 : vector<1x64x1xf32> to vector<64x1xf32>
    %2 = arith.truncf %1 : vector<64x1xf32> to vector<64x1xbf16>
    %cst = arith.constant 0.000000e+00 : f32
    %3 = vector.broadcast %cst : f32 to vector<32x16xf32>
    %c0_2 = arith.constant 0 : index
    %c0_3 = arith.constant 0 : index
    %c0_4 = arith.constant 0 : index
    %4 = vector.load %arg3[%c0_2, %c0_3, %c0_4] : memref<7x1x16xbf16, #tpu.memory_space<vmem>>, vector<1x1x16xbf16>
    %5 = vector.shape_cast %4 : vector<1x1x16xbf16> to vector<1x16xbf16>
    %6 = vector.broadcast %2 : vector<64x1xbf16> to vector<64x16xbf16>
    %7 = vector.broadcast %5 : vector<1x16xbf16> to vector<64x16xbf16>
    %8 = arith.mulf %6, %7 : vector<64x16xbf16>
    %c0_5 = arith.constant 0 : index
    %c0_6 = arith.constant 0 : index
    %c0_7 = arith.constant 0 : index
    %9 = vector.load %arg2[%c0_5, %c0_6, %c0_7] : memref<7x32x64xbf16, #tpu.memory_space<vmem>>, vector<1x32x64xbf16>
    %10 = vector.shape_cast %9 : vector<1x32x64xbf16> to vector<32x64xbf16>
    %cst_8 = arith.constant dense<0.000000e+00> : vector<32x16xf32>
    %11 = tpu.matmul %10, %8, %cst_8 {dimension_numbers = #tpu.dot_dimension_numbers<[1], [0], [0], [1], [0, 0, 1, 1], [], []>} : vector<32x64xbf16>, vector<64x16xbf16>, vector<32x16xf32> -> vector<32x16xf32>
    %12 = arith.addf %3, %11 : vector<32x16xf32>
    %c1 = arith.constant 1 : index
    %c0_9 = arith.constant 0 : index
    %c0_10 = arith.constant 0 : index
    %13 = vector.load %arg3[%c1, %c0_9, %c0_10] : memref<7x1x16xbf16, #tpu.memory_space<vmem>>, vector<1x1x16xbf16>
    %14 = vector.shape_cast %13 : vector<1x1x16xbf16> to vector<1x16xbf16>
    %15 = vector.broadcast %2 : vector<64x1xbf16> to vector<64x16xbf16>
    %16 = vector.broadcast %14 : vector<1x16xbf16> to vector<64x16xbf16>
    %17 = arith.mulf %15, %16 : vector<64x16xbf16>
    %c1_11 = arith.constant 1 : index
    %c0_12 = arith.constant 0 : index
    %c0_13 = arith.constant 0 : index
    %18 = vector.load %arg2[%c1_11, %c0_12, %c0_13] : memref<7x32x64xbf16, #tpu.memory_space<vmem>>, vector<1x32x64xbf16>
    %19 = vector.shape_cast %18 : vector<1x32x64xbf16> to vector<32x64xbf16>
    %cst_14 = arith.constant dense<0.000000e+00> : vector<32x16xf32>
    %20 = tpu.matmul %19, %17, %cst_14 {dimension_numbers = #tpu.dot_dimension_numbers<[1], [0], [0], [1], [0, 0, 1, 1], [], []>} : vector<32x64xbf16>, vector<64x16xbf16>, vector<32x16xf32> -> vector<32x16xf32>
    %21 = arith.addf %12, %20 : vector<32x16xf32>
    %c2 = arith.constant 2 : index
    %c0_15 = arith.constant 0 : index
    %c0_16 = arith.constant 0 : index
    %22 = vector.load %arg3[%c2, %c0_15, %c0_16] : memref<7x1x16xbf16, #tpu.memory_space<vmem>>, vector<1x1x16xbf16>
    %23 = vector.shape_cast %22 : vector<1x1x16xbf16> to vector<1x16xbf16>
    %24 = vector.broadcast %2 : vector<64x1xbf16> to vector<64x16xbf16>
    %25 = vector.broadcast %23 : vector<1x16xbf16> to vector<64x16xbf16>
    %26 = arith.mulf %24, %25 : vector<64x16xbf16>
    %c2_17 = arith.constant 2 : index
    %c0_18 = arith.constant 0 : index
    %c0_19 = arith.constant 0 : index
    %27 = vector.load %arg2[%c2_17, %c0_18, %c0_19] : memref<7x32x64xbf16, #tpu.memory_space<vmem>>, vector<1x32x64xbf16>
    %28 = vector.shape_cast %27 : vector<1x32x64xbf16> to vector<32x64xbf16>
    %cst_20 = arith.constant dense<0.000000e+00> : vector<32x16xf32>
    %29 = tpu.matmul %28, %26, %cst_20 {dimension_numbers = #tpu.dot_dimension_numbers<[1], [0], [0], [1], [0, 0, 1, 1], [], []>} : vector<32x64xbf16>, vector<64x16xbf16>, vector<32x16xf32> -> vector<32x16xf32>
    %30 = arith.addf %21, %29 : vector<32x16xf32>
    %c3 = arith.constant 3 : index
    %c0_21 = arith.constant 0 : index
    %c0_22 = arith.constant 0 : index
    %31 = vector.load %arg3[%c3, %c0_21, %c0_22] : memref<7x1x16xbf16, #tpu.memory_space<vmem>>, vector<1x1x16xbf16>
    %32 = vector.shape_cast %31 : vector<1x1x16xbf16> to vector<1x16xbf16>
    %33 = vector.broadcast %2 : vector<64x1xbf16> to vector<64x16xbf16>
    %34 = vector.broadcast %32 : vector<1x16xbf16> to vector<64x16xbf16>
    %35 = arith.mulf %33, %34 : vector<64x16xbf16>
    %c3_23 = arith.constant 3 : index
    %c0_24 = arith.constant 0 : index
    %c0_25 = arith.constant 0 : index
    %36 = vector.load %arg2[%c3_23, %c0_24, %c0_25] : memref<7x32x64xbf16, #tpu.memory_space<vmem>>, vector<1x32x64xbf16>
    %37 = vector.shape_cast %36 : vector<1x32x64xbf16> to vector<32x64xbf16>
    %cst_26 = arith.constant dense<0.000000e+00> : vector<32x16xf32>
    %38 = tpu.matmul %37, %35, %cst_26 {dimension_numbers = #tpu.dot_dimension_numbers<[1], [0], [0], [1], [0, 0, 1, 1], [], []>} : vector<32x64xbf16>, vector<64x16xbf16>, vector<32x16xf32> -> vector<32x16xf32>
    %39 = arith.addf %30, %38 : vector<32x16xf32>
    %c4 = arith.constant 4 : index
    %c0_27 = arith.constant 0 : index
    %c0_28 = arith.constant 0 : index
    %40 = vector.load %arg3[%c4, %c0_27, %c0_28] : memref<7x1x16xbf16, #tpu.memory_space<vmem>>, vector<1x1x16xbf16>
    %41 = vector.shape_cast %40 : vector<1x1x16xbf16> to vector<1x16xbf16>
    %42 = vector.broadcast %2 : vector<64x1xbf16> to vector<64x16xbf16>
    %43 = vector.broadcast %41 : vector<1x16xbf16> to vector<64x16xbf16>
    %44 = arith.mulf %42, %43 : vector<64x16xbf16>
    %c4_29 = arith.constant 4 : index
    %c0_30 = arith.constant 0 : index
    %c0_31 = arith.constant 0 : index
    %45 = vector.load %arg2[%c4_29, %c0_30, %c0_31] : memref<7x32x64xbf16, #tpu.memory_space<vmem>>, vector<1x32x64xbf16>
    %46 = vector.shape_cast %45 : vector<1x32x64xbf16> to vector<32x64xbf16>
    %cst_32 = arith.constant dense<0.000000e+00> : vector<32x16xf32>
    %47 = tpu.matmul %46, %44, %cst_32 {dimension_numbers = #tpu.dot_dimension_numbers<[1], [0], [0], [1], [0, 0, 1, 1], [], []>} : vector<32x64xbf16>, vector<64x16xbf16>, vector<32x16xf32> -> vector<32x16xf32>
    %48 = arith.addf %39, %47 : vector<32x16xf32>
    %c5 = arith.constant 5 : index
    %c0_33 = arith.constant 0 : index
    %c0_34 = arith.constant 0 : index
    %49 = vector.load %arg3[%c5, %c0_33, %c0_34] : memref<7x1x16xbf16, #tpu.memory_space<vmem>>, vector<1x1x16xbf16>
    %50 = vector.shape_cast %49 : vector<1x1x16xbf16> to vector<1x16xbf16>
    %51 = vector.broadcast %2 : vector<64x1xbf16> to vector<64x16xbf16>
    %52 = vector.broadcast %50 : vector<1x16xbf16> to vector<64x16xbf16>
    %53 = arith.mulf %51, %52 : vector<64x16xbf16>
    %c5_35 = arith.constant 5 : index
    %c0_36 = arith.constant 0 : index
    %c0_37 = arith.constant 0 : index
    %54 = vector.load %arg2[%c5_35, %c0_36, %c0_37] : memref<7x32x64xbf16, #tpu.memory_space<vmem>>, vector<1x32x64xbf16>
    %55 = vector.shape_cast %54 : vector<1x32x64xbf16> to vector<32x64xbf16>
    %cst_38 = arith.constant dense<0.000000e+00> : vector<32x16xf32>
    %56 = tpu.matmul %55, %53, %cst_38 {dimension_numbers = #tpu.dot_dimension_numbers<[1], [0], [0], [1], [0, 0, 1, 1], [], []>} : vector<32x64xbf16>, vector<64x16xbf16>, vector<32x16xf32> -> vector<32x16xf32>
    %57 = arith.addf %48, %56 : vector<32x16xf32>
    %c6 = arith.constant 6 : index
    %c0_39 = arith.constant 0 : index
    %c0_40 = arith.constant 0 : index
    %58 = vector.load %arg3[%c6, %c0_39, %c0_40] : memref<7x1x16xbf16, #tpu.memory_space<vmem>>, vector<1x1x16xbf16>
    %59 = vector.shape_cast %58 : vector<1x1x16xbf16> to vector<1x16xbf16>
    %60 = vector.broadcast %2 : vector<64x1xbf16> to vector<64x16xbf16>
    %61 = vector.broadcast %59 : vector<1x16xbf16> to vector<64x16xbf16>
    %62 = arith.mulf %60, %61 : vector<64x16xbf16>
    %c6_41 = arith.constant 6 : index
    %c0_42 = arith.constant 0 : index
    %c0_43 = arith.constant 0 : index
    %63 = vector.load %arg2[%c6_41, %c0_42, %c0_43] : memref<7x32x64xbf16, #tpu.memory_space<vmem>>, vector<1x32x64xbf16>
    %64 = vector.shape_cast %63 : vector<1x32x64xbf16> to vector<32x64xbf16>
    %cst_44 = arith.constant dense<0.000000e+00> : vector<32x16xf32>
    %65 = tpu.matmul %64, %62, %cst_44 {dimension_numbers = #tpu.dot_dimension_numbers<[1], [0], [0], [1], [0, 0, 1, 1], [], []>} : vector<32x64xbf16>, vector<64x16xbf16>, vector<32x16xf32> -> vector<32x16xf32>
    %66 = arith.addf %57, %65 : vector<32x16xf32>
    %c0_45 = arith.constant 0 : index
    %c0_46 = arith.constant 0 : index
    %67 = vector.load %arg4[%c0_45, %c0_46] : memref<1x16xf32, #tpu.memory_space<vmem>>, vector<1x16xf32>
    %68 = vector.broadcast %67 : vector<1x16xf32> to vector<32x16xf32>
    %69 = arith.addf %66, %68 : vector<32x16xf32>
    %cst_47 = arith.constant 0.000000e+00 : f32
    %70 = vector.broadcast %cst_47 : f32 to vector<32x16xf32>
    %71 = arith.maximumf %69, %70 : vector<32x16xf32>
    %72 = arith.truncf %71 : vector<32x16xf32> to vector<32x16xbf16>
    %cst_48 = arith.constant 0.000000e+00 : f32
    %73 = vector.broadcast %cst_48 : f32 to vector<16x32xf32>
    %c0_49 = arith.constant 0 : index
    %c0_50 = arith.constant 0 : index
    %c0_51 = arith.constant 0 : index
    %74 = vector.load %arg5[%c0_49, %c0_50, %c0_51] : memref<7x16x32xbf16, #tpu.memory_space<vmem>>, vector<1x16x32xbf16>
    %75 = vector.shape_cast %74 : vector<1x16x32xbf16> to vector<16x32xbf16>
    %cst_52 = arith.constant dense<0.000000e+00> : vector<16x16xf32>
    %76 = tpu.matmul %75, %72, %cst_52 {dimension_numbers = #tpu.dot_dimension_numbers<[1], [0], [0], [1], [0, 0, 1, 1], [], []>} : vector<16x32xbf16>, vector<32x16xbf16>, vector<16x16xf32> -> vector<16x16xf32>
    %77 = arith.truncf %76 : vector<16x16xf32> to vector<16x16xbf16>
    %c0_53 = arith.constant 0 : index
    %c0_54 = arith.constant 0 : index
    %c0_55 = arith.constant 0 : index
    %78 = vector.load %arg6[%c0_53, %c0_54, %c0_55] : memref<7x16x32xbf16, #tpu.memory_space<vmem>>, vector<1x16x32xbf16>
    %79 = vector.shape_cast %78 : vector<1x16x32xbf16> to vector<16x32xbf16>
    %cst_56 = arith.constant dense<0.000000e+00> : vector<16x32xf32>
    %80 = tpu.matmul %77, %79, %cst_56 {dimension_numbers = #tpu.dot_dimension_numbers<[1], [0], [0], [1], [0, 0, 1, 1], [], []>} : vector<16x16xbf16>, vector<16x32xbf16>, vector<16x32xf32> -> vector<16x32xf32>
    %81 = arith.addf %73, %80 : vector<16x32xf32>
    %c1_57 = arith.constant 1 : index
    %c0_58 = arith.constant 0 : index
    %c0_59 = arith.constant 0 : index
    %82 = vector.load %arg5[%c1_57, %c0_58, %c0_59] : memref<7x16x32xbf16, #tpu.memory_space<vmem>>, vector<1x16x32xbf16>
    %83 = vector.shape_cast %82 : vector<1x16x32xbf16> to vector<16x32xbf16>
    %cst_60 = arith.constant dense<0.000000e+00> : vector<16x16xf32>
    %84 = tpu.matmul %83, %72, %cst_60 {dimension_numbers = #tpu.dot_dimension_numbers<[1], [0], [0], [1], [0, 0, 1, 1], [], []>} : vector<16x32xbf16>, vector<32x16xbf16>, vector<16x16xf32> -> vector<16x16xf32>
    %85 = arith.truncf %84 : vector<16x16xf32> to vector<16x16xbf16>
    %c1_61 = arith.constant 1 : index
    %c0_62 = arith.constant 0 : index
    %c0_63 = arith.constant 0 : index
    %86 = vector.load %arg6[%c1_61, %c0_62, %c0_63] : memref<7x16x32xbf16, #tpu.memory_space<vmem>>, vector<1x16x32xbf16>
    %87 = vector.shape_cast %86 : vector<1x16x32xbf16> to vector<16x32xbf16>
    %cst_64 = arith.constant dense<0.000000e+00> : vector<16x32xf32>
    %88 = tpu.matmul %85, %87, %cst_64 {dimension_numbers = #tpu.dot_dimension_numbers<[1], [0], [0], [1], [0, 0, 1, 1], [], []>} : vector<16x16xbf16>, vector<16x32xbf16>, vector<16x32xf32> -> vector<16x32xf32>
    %89 = arith.addf %81, %88 : vector<16x32xf32>
    %c2_65 = arith.constant 2 : index
    %c0_66 = arith.constant 0 : index
    %c0_67 = arith.constant 0 : index
    %90 = vector.load %arg5[%c2_65, %c0_66, %c0_67] : memref<7x16x32xbf16, #tpu.memory_space<vmem>>, vector<1x16x32xbf16>
    %91 = vector.shape_cast %90 : vector<1x16x32xbf16> to vector<16x32xbf16>
    %cst_68 = arith.constant dense<0.000000e+00> : vector<16x16xf32>
    %92 = tpu.matmul %91, %72, %cst_68 {dimension_numbers = #tpu.dot_dimension_numbers<[1], [0], [0], [1], [0, 0, 1, 1], [], []>} : vector<16x32xbf16>, vector<32x16xbf16>, vector<16x16xf32> -> vector<16x16xf32>
    %93 = arith.truncf %92 : vector<16x16xf32> to vector<16x16xbf16>
    %c2_69 = arith.constant 2 : index
    %c0_70 = arith.constant 0 : index
    %c0_71 = arith.constant 0 : index
    %94 = vector.load %arg6[%c2_69, %c0_70, %c0_71] : memref<7x16x32xbf16, #tpu.memory_space<vmem>>, vector<1x16x32xbf16>
    %95 = vector.shape_cast %94 : vector<1x16x32xbf16> to vector<16x32xbf16>
    %cst_72 = arith.constant dense<0.000000e+00> : vector<16x32xf32>
    %96 = tpu.matmul %93, %95, %cst_72 {dimension_numbers = #tpu.dot_dimension_numbers<[1], [0], [0], [1], [0, 0, 1, 1], [], []>} : vector<16x16xbf16>, vector<16x32xbf16>, vector<16x32xf32> -> vector<16x32xf32>
    %97 = arith.addf %89, %96 : vector<16x32xf32>
    %c3_73 = arith.constant 3 : index
    %c0_74 = arith.constant 0 : index
    %c0_75 = arith.constant 0 : index
    %98 = vector.load %arg5[%c3_73, %c0_74, %c0_75] : memref<7x16x32xbf16, #tpu.memory_space<vmem>>, vector<1x16x32xbf16>
    %99 = vector.shape_cast %98 : vector<1x16x32xbf16> to vector<16x32xbf16>
    %cst_76 = arith.constant dense<0.000000e+00> : vector<16x16xf32>
    %100 = tpu.matmul %99, %72, %cst_76 {dimension_numbers = #tpu.dot_dimension_numbers<[1], [0], [0], [1], [0, 0, 1, 1], [], []>} : vector<16x32xbf16>, vector<32x16xbf16>, vector<16x16xf32> -> vector<16x16xf32>
    %101 = arith.truncf %100 : vector<16x16xf32> to vector<16x16xbf16>
    %c3_77 = arith.constant 3 : index
    %c0_78 = arith.constant 0 : index
    %c0_79 = arith.constant 0 : index
    %102 = vector.load %arg6[%c3_77, %c0_78, %c0_79] : memref<7x16x32xbf16, #tpu.memory_space<vmem>>, vector<1x16x32xbf16>
    %103 = vector.shape_cast %102 : vector<1x16x32xbf16> to vector<16x32xbf16>
    %cst_80 = arith.constant dense<0.000000e+00> : vector<16x32xf32>
    %104 = tpu.matmul %101, %103, %cst_80 {dimension_numbers = #tpu.dot_dimension_numbers<[1], [0], [0], [1], [0, 0, 1, 1], [], []>} : vector<16x16xbf16>, vector<16x32xbf16>, vector<16x32xf32> -> vector<16x32xf32>
    %105 = arith.addf %97, %104 : vector<16x32xf32>
    %c4_81 = arith.constant 4 : index
    %c0_82 = arith.constant 0 : index
    %c0_83 = arith.constant 0 : index
    %106 = vector.load %arg5[%c4_81, %c0_82, %c0_83] : memref<7x16x32xbf16, #tpu.memory_space<vmem>>, vector<1x16x32xbf16>
    %107 = vector.shape_cast %106 : vector<1x16x32xbf16> to vector<16x32xbf16>
    %cst_84 = arith.constant dense<0.000000e+00> : vector<16x16xf32>
    %108 = tpu.matmul %107, %72, %cst_84 {dimension_numbers = #tpu.dot_dimension_numbers<[1], [0], [0], [1], [0, 0, 1, 1], [], []>} : vector<16x32xbf16>, vector<32x16xbf16>, vector<16x16xf32> -> vector<16x16xf32>
    %109 = arith.truncf %108 : vector<16x16xf32> to vector<16x16xbf16>
    %c4_85 = arith.constant 4 : index
    %c0_86 = arith.constant 0 : index
    %c0_87 = arith.constant 0 : index
    %110 = vector.load %arg6[%c4_85, %c0_86, %c0_87] : memref<7x16x32xbf16, #tpu.memory_space<vmem>>, vector<1x16x32xbf16>
    %111 = vector.shape_cast %110 : vector<1x16x32xbf16> to vector<16x32xbf16>
    %cst_88 = arith.constant dense<0.000000e+00> : vector<16x32xf32>
    %112 = tpu.matmul %109, %111, %cst_88 {dimension_numbers = #tpu.dot_dimension_numbers<[1], [0], [0], [1], [0, 0, 1, 1], [], []>} : vector<16x16xbf16>, vector<16x32xbf16>, vector<16x32xf32> -> vector<16x32xf32>
    %113 = arith.addf %105, %112 : vector<16x32xf32>
    %c5_89 = arith.constant 5 : index
    %c0_90 = arith.constant 0 : index
    %c0_91 = arith.constant 0 : index
    %114 = vector.load %arg5[%c5_89, %c0_90, %c0_91] : memref<7x16x32xbf16, #tpu.memory_space<vmem>>, vector<1x16x32xbf16>
    %115 = vector.shape_cast %114 : vector<1x16x32xbf16> to vector<16x32xbf16>
    %cst_92 = arith.constant dense<0.000000e+00> : vector<16x16xf32>
    %116 = tpu.matmul %115, %72, %cst_92 {dimension_numbers = #tpu.dot_dimension_numbers<[1], [0], [0], [1], [0, 0, 1, 1], [], []>} : vector<16x32xbf16>, vector<32x16xbf16>, vector<16x16xf32> -> vector<16x16xf32>
    %117 = arith.truncf %116 : vector<16x16xf32> to vector<16x16xbf16>
    %c5_93 = arith.constant 5 : index
    %c0_94 = arith.constant 0 : index
    %c0_95 = arith.constant 0 : index
    %118 = vector.load %arg6[%c5_93, %c0_94, %c0_95] : memref<7x16x32xbf16, #tpu.memory_space<vmem>>, vector<1x16x32xbf16>
    %119 = vector.shape_cast %118 : vector<1x16x32xbf16> to vector<16x32xbf16>
    %cst_96 = arith.constant dense<0.000000e+00> : vector<16x32xf32>
    %120 = tpu.matmul %117, %119, %cst_96 {dimension_numbers = #tpu.dot_dimension_numbers<[1], [0], [0], [1], [0, 0, 1, 1], [], []>} : vector<16x16xbf16>, vector<16x32xbf16>, vector<16x32xf32> -> vector<16x32xf32>
    %121 = arith.addf %113, %120 : vector<16x32xf32>
    %c6_97 = arith.constant 6 : index
    %c0_98 = arith.constant 0 : index
    %c0_99 = arith.constant 0 : index
    %122 = vector.load %arg5[%c6_97, %c0_98, %c0_99] : memref<7x16x32xbf16, #tpu.memory_space<vmem>>, vector<1x16x32xbf16>
    %123 = vector.shape_cast %122 : vector<1x16x32xbf16> to vector<16x32xbf16>
    %cst_100 = arith.constant dense<0.000000e+00> : vector<16x16xf32>
    %124 = tpu.matmul %123, %72, %cst_100 {dimension_numbers = #tpu.dot_dimension_numbers<[1], [0], [0], [1], [0, 0, 1, 1], [], []>} : vector<16x32xbf16>, vector<32x16xbf16>, vector<16x16xf32> -> vector<16x16xf32>
    %125 = arith.truncf %124 : vector<16x16xf32> to vector<16x16xbf16>
    %c6_101 = arith.constant 6 : index
    %c0_102 = arith.constant 0 : index
    %c0_103 = arith.constant 0 : index
    %126 = vector.load %arg6[%c6_101, %c0_102, %c0_103] : memref<7x16x32xbf16, #tpu.memory_space<vmem>>, vector<1x16x32xbf16>
    %127 = vector.shape_cast %126 : vector<1x16x32xbf16> to vector<16x32xbf16>
    %cst_104 = arith.constant dense<0.000000e+00> : vector<16x32xf32>
    %128 = tpu.matmul %125, %127, %cst_104 {dimension_numbers = #tpu.dot_dimension_numbers<[1], [0], [0], [1], [0, 0, 1, 1], [], []>} : vector<16x16xbf16>, vector<16x32xbf16>, vector<16x32xf32> -> vector<16x32xf32>
    %129 = arith.addf %121, %128 : vector<16x32xf32>
    %c0_105 = arith.constant 0 : index
    %c0_106 = arith.constant 0 : index
    %130 = vector.load %arg7[%c0_105, %c0_106] : memref<1x32xf32, #tpu.memory_space<vmem>>, vector<1x32xf32>
    %131 = vector.broadcast %130 : vector<1x32xf32> to vector<16x32xf32>
    %132 = arith.addf %129, %131 : vector<16x32xf32>
    %cst_107 = arith.constant 0.000000e+00 : f32
    %133 = vector.broadcast %cst_107 : f32 to vector<16x32xf32>
    %134 = arith.maximumf %132, %133 : vector<16x32xf32>
    %135 = arith.truncf %134 : vector<16x32xf32> to vector<16x32xbf16>
    %cst_108 = arith.constant 0.000000e+00 : f32
    %136 = vector.broadcast %cst_108 : f32 to vector<8x64xf32>
    %c0_109 = arith.constant 0 : index
    %c0_110 = arith.constant 0 : index
    %c0_111 = arith.constant 0 : index
    %137 = vector.load %arg8[%c0_109, %c0_110, %c0_111] : memref<7x8x16xbf16, #tpu.memory_space<vmem>>, vector<1x8x16xbf16>
    %138 = vector.shape_cast %137 : vector<1x8x16xbf16> to vector<8x16xbf16>
    %cst_112 = arith.constant dense<0.000000e+00> : vector<8x32xf32>
    %139 = tpu.matmul %138, %135, %cst_112 {dimension_numbers = #tpu.dot_dimension_numbers<[1], [0], [0], [1], [0, 0, 1, 1], [], []>} : vector<8x16xbf16>, vector<16x32xbf16>, vector<8x32xf32> -> vector<8x32xf32>
    %140 = arith.truncf %139 : vector<8x32xf32> to vector<8x32xbf16>
    %c0_113 = arith.constant 0 : index
    %c0_114 = arith.constant 0 : index
    %c0_115 = arith.constant 0 : index
    %141 = vector.load %arg9[%c0_113, %c0_114, %c0_115] : memref<7x32x64xbf16, #tpu.memory_space<vmem>>, vector<1x32x64xbf16>
    %142 = vector.shape_cast %141 : vector<1x32x64xbf16> to vector<32x64xbf16>
    %cst_116 = arith.constant dense<0.000000e+00> : vector<8x64xf32>
    %143 = tpu.matmul %140, %142, %cst_116 {dimension_numbers = #tpu.dot_dimension_numbers<[1], [0], [0], [1], [0, 0, 1, 1], [], []>} : vector<8x32xbf16>, vector<32x64xbf16>, vector<8x64xf32> -> vector<8x64xf32>
    %144 = arith.addf %136, %143 : vector<8x64xf32>
    %c1_117 = arith.constant 1 : index
    %c0_118 = arith.constant 0 : index
    %c0_119 = arith.constant 0 : index
    %145 = vector.load %arg8[%c1_117, %c0_118, %c0_119] : memref<7x8x16xbf16, #tpu.memory_space<vmem>>, vector<1x8x16xbf16>
    %146 = vector.shape_cast %145 : vector<1x8x16xbf16> to vector<8x16xbf16>
    %cst_120 = arith.constant dense<0.000000e+00> : vector<8x32xf32>
    %147 = tpu.matmul %146, %135, %cst_120 {dimension_numbers = #tpu.dot_dimension_numbers<[1], [0], [0], [1], [0, 0, 1, 1], [], []>} : vector<8x16xbf16>, vector<16x32xbf16>, vector<8x32xf32> -> vector<8x32xf32>
    %148 = arith.truncf %147 : vector<8x32xf32> to vector<8x32xbf16>
    %c1_121 = arith.constant 1 : index
    %c0_122 = arith.constant 0 : index
    %c0_123 = arith.constant 0 : index
    %149 = vector.load %arg9[%c1_121, %c0_122, %c0_123] : memref<7x32x64xbf16, #tpu.memory_space<vmem>>, vector<1x32x64xbf16>
    %150 = vector.shape_cast %149 : vector<1x32x64xbf16> to vector<32x64xbf16>
    %cst_124 = arith.constant dense<0.000000e+00> : vector<8x64xf32>
    %151 = tpu.matmul %148, %150, %cst_124 {dimension_numbers = #tpu.dot_dimension_numbers<[1], [0], [0], [1], [0, 0, 1, 1], [], []>} : vector<8x32xbf16>, vector<32x64xbf16>, vector<8x64xf32> -> vector<8x64xf32>
    %152 = arith.addf %144, %151 : vector<8x64xf32>
    %c2_125 = arith.constant 2 : index
    %c0_126 = arith.constant 0 : index
    %c0_127 = arith.constant 0 : index
    %153 = vector.load %arg8[%c2_125, %c0_126, %c0_127] : memref<7x8x16xbf16, #tpu.memory_space<vmem>>, vector<1x8x16xbf16>
    %154 = vector.shape_cast %153 : vector<1x8x16xbf16> to vector<8x16xbf16>
    %cst_128 = arith.constant dense<0.000000e+00> : vector<8x32xf32>
    %155 = tpu.matmul %154, %135, %cst_128 {dimension_numbers = #tpu.dot_dimension_numbers<[1], [0], [0], [1], [0, 0, 1, 1], [], []>} : vector<8x16xbf16>, vector<16x32xbf16>, vector<8x32xf32> -> vector<8x32xf32>
    %156 = arith.truncf %155 : vector<8x32xf32> to vector<8x32xbf16>
    %c2_129 = arith.constant 2 : index
    %c0_130 = arith.constant 0 : index
    %c0_131 = arith.constant 0 : index
    %157 = vector.load %arg9[%c2_129, %c0_130, %c0_131] : memref<7x32x64xbf16, #tpu.memory_space<vmem>>, vector<1x32x64xbf16>
    %158 = vector.shape_cast %157 : vector<1x32x64xbf16> to vector<32x64xbf16>
    %cst_132 = arith.constant dense<0.000000e+00> : vector<8x64xf32>
    %159 = tpu.matmul %156, %158, %cst_132 {dimension_numbers = #tpu.dot_dimension_numbers<[1], [0], [0], [1], [0, 0, 1, 1], [], []>} : vector<8x32xbf16>, vector<32x64xbf16>, vector<8x64xf32> -> vector<8x64xf32>
    %160 = arith.addf %152, %159 : vector<8x64xf32>
    %c3_133 = arith.constant 3 : index
    %c0_134 = arith.constant 0 : index
    %c0_135 = arith.constant 0 : index
    %161 = vector.load %arg8[%c3_133, %c0_134, %c0_135] : memref<7x8x16xbf16, #tpu.memory_space<vmem>>, vector<1x8x16xbf16>
    %162 = vector.shape_cast %161 : vector<1x8x16xbf16> to vector<8x16xbf16>
    %cst_136 = arith.constant dense<0.000000e+00> : vector<8x32xf32>
    %163 = tpu.matmul %162, %135, %cst_136 {dimension_numbers = #tpu.dot_dimension_numbers<[1], [0], [0], [1], [0, 0, 1, 1], [], []>} : vector<8x16xbf16>, vector<16x32xbf16>, vector<8x32xf32> -> vector<8x32xf32>
    %164 = arith.truncf %163 : vector<8x32xf32> to vector<8x32xbf16>
    %c3_137 = arith.constant 3 : index
    %c0_138 = arith.constant 0 : index
    %c0_139 = arith.constant 0 : index
    %165 = vector.load %arg9[%c3_137, %c0_138, %c0_139] : memref<7x32x64xbf16, #tpu.memory_space<vmem>>, vector<1x32x64xbf16>
    %166 = vector.shape_cast %165 : vector<1x32x64xbf16> to vector<32x64xbf16>
    %cst_140 = arith.constant dense<0.000000e+00> : vector<8x64xf32>
    %167 = tpu.matmul %164, %166, %cst_140 {dimension_numbers = #tpu.dot_dimension_numbers<[1], [0], [0], [1], [0, 0, 1, 1], [], []>} : vector<8x32xbf16>, vector<32x64xbf16>, vector<8x64xf32> -> vector<8x64xf32>
    %168 = arith.addf %160, %167 : vector<8x64xf32>
    %c4_141 = arith.constant 4 : index
    %c0_142 = arith.constant 0 : index
    %c0_143 = arith.constant 0 : index
    %169 = vector.load %arg8[%c4_141, %c0_142, %c0_143] : memref<7x8x16xbf16, #tpu.memory_space<vmem>>, vector<1x8x16xbf16>
    %170 = vector.shape_cast %169 : vector<1x8x16xbf16> to vector<8x16xbf16>
    %cst_144 = arith.constant dense<0.000000e+00> : vector<8x32xf32>
    %171 = tpu.matmul %170, %135, %cst_144 {dimension_numbers = #tpu.dot_dimension_numbers<[1], [0], [0], [1], [0, 0, 1, 1], [], []>} : vector<8x16xbf16>, vector<16x32xbf16>, vector<8x32xf32> -> vector<8x32xf32>
    %172 = arith.truncf %171 : vector<8x32xf32> to vector<8x32xbf16>
    %c4_145 = arith.constant 4 : index
    %c0_146 = arith.constant 0 : index
    %c0_147 = arith.constant 0 : index
    %173 = vector.load %arg9[%c4_145, %c0_146, %c0_147] : memref<7x32x64xbf16, #tpu.memory_space<vmem>>, vector<1x32x64xbf16>
    %174 = vector.shape_cast %173 : vector<1x32x64xbf16> to vector<32x64xbf16>
    %cst_148 = arith.constant dense<0.000000e+00> : vector<8x64xf32>
    %175 = tpu.matmul %172, %174, %cst_148 {dimension_numbers = #tpu.dot_dimension_numbers<[1], [0], [0], [1], [0, 0, 1, 1], [], []>} : vector<8x32xbf16>, vector<32x64xbf16>, vector<8x64xf32> -> vector<8x64xf32>
    %176 = arith.addf %168, %175 : vector<8x64xf32>
    %c5_149 = arith.constant 5 : index
    %c0_150 = arith.constant 0 : index
    %c0_151 = arith.constant 0 : index
    %177 = vector.load %arg8[%c5_149, %c0_150, %c0_151] : memref<7x8x16xbf16, #tpu.memory_space<vmem>>, vector<1x8x16xbf16>
    %178 = vector.shape_cast %177 : vector<1x8x16xbf16> to vector<8x16xbf16>
    %cst_152 = arith.constant dense<0.000000e+00> : vector<8x32xf32>
    %179 = tpu.matmul %178, %135, %cst_152 {dimension_numbers = #tpu.dot_dimension_numbers<[1], [0], [0], [1], [0, 0, 1, 1], [], []>} : vector<8x16xbf16>, vector<16x32xbf16>, vector<8x32xf32> -> vector<8x32xf32>
    %180 = arith.truncf %179 : vector<8x32xf32> to vector<8x32xbf16>
    %c5_153 = arith.constant 5 : index
    %c0_154 = arith.constant 0 : index
    %c0_155 = arith.constant 0 : index
    %181 = vector.load %arg9[%c5_153, %c0_154, %c0_155] : memref<7x32x64xbf16, #tpu.memory_space<vmem>>, vector<1x32x64xbf16>
    %182 = vector.shape_cast %181 : vector<1x32x64xbf16> to vector<32x64xbf16>
    %cst_156 = arith.constant dense<0.000000e+00> : vector<8x64xf32>
    %183 = tpu.matmul %180, %182, %cst_156 {dimension_numbers = #tpu.dot_dimension_numbers<[1], [0], [0], [1], [0, 0, 1, 1], [], []>} : vector<8x32xbf16>, vector<32x64xbf16>, vector<8x64xf32> -> vector<8x64xf32>
    %184 = arith.addf %176, %183 : vector<8x64xf32>
    %c6_157 = arith.constant 6 : index
    %c0_158 = arith.constant 0 : index
    %c0_159 = arith.constant 0 : index
    %185 = vector.load %arg8[%c6_157, %c0_158, %c0_159] : memref<7x8x16xbf16, #tpu.memory_space<vmem>>, vector<1x8x16xbf16>
    %186 = vector.shape_cast %185 : vector<1x8x16xbf16> to vector<8x16xbf16>
    %cst_160 = arith.constant dense<0.000000e+00> : vector<8x32xf32>
    %187 = tpu.matmul %186, %135, %cst_160 {dimension_numbers = #tpu.dot_dimension_numbers<[1], [0], [0], [1], [0, 0, 1, 1], [], []>} : vector<8x16xbf16>, vector<16x32xbf16>, vector<8x32xf32> -> vector<8x32xf32>
    %188 = arith.truncf %187 : vector<8x32xf32> to vector<8x32xbf16>
    %c6_161 = arith.constant 6 : index
    %c0_162 = arith.constant 0 : index
    %c0_163 = arith.constant 0 : index
    %189 = vector.load %arg9[%c6_161, %c0_162, %c0_163] : memref<7x32x64xbf16, #tpu.memory_space<vmem>>, vector<1x32x64xbf16>
    %190 = vector.shape_cast %189 : vector<1x32x64xbf16> to vector<32x64xbf16>
    %cst_164 = arith.constant dense<0.000000e+00> : vector<8x64xf32>
    %191 = tpu.matmul %188, %190, %cst_164 {dimension_numbers = #tpu.dot_dimension_numbers<[1], [0], [0], [1], [0, 0, 1, 1], [], []>} : vector<8x32xbf16>, vector<32x64xbf16>, vector<8x64xf32> -> vector<8x64xf32>
    %192 = arith.addf %184, %191 : vector<8x64xf32>
    %c0_165 = arith.constant 0 : index
    %c0_166 = arith.constant 0 : index
    %193 = vector.load %arg10[%c0_165, %c0_166] : memref<1x64xf32, #tpu.memory_space<vmem>>, vector<1x64xf32>
    %194 = vector.broadcast %193 : vector<1x64xf32> to vector<8x64xf32>
    %195 = arith.addf %192, %194 : vector<8x64xf32>
    %cst_167 = arith.constant 0.000000e+00 : f32
    %196 = vector.broadcast %cst_167 : f32 to vector<8x64xf32>
    %197 = arith.maximumf %195, %196 : vector<8x64xf32>
    %198 = arith.truncf %197 : vector<8x64xf32> to vector<8x64xbf16>
    %cst_168 = arith.constant 0.000000e+00 : f32
    %199 = vector.broadcast %cst_168 : f32 to vector<16x32xf32>
    %c0_169 = arith.constant 0 : index
    %c0_170 = arith.constant 0 : index
    %c0_171 = arith.constant 0 : index
    %200 = vector.load %arg11[%c0_169, %c0_170, %c0_171] : memref<7x16x8xbf16, #tpu.memory_space<vmem>>, vector<1x16x8xbf16>
    %201 = vector.shape_cast %200 : vector<1x16x8xbf16> to vector<16x8xbf16>
    %cst_172 = arith.constant dense<0.000000e+00> : vector<16x64xf32>
    %202 = tpu.matmul %201, %198, %cst_172 {dimension_numbers = #tpu.dot_dimension_numbers<[1], [0], [0], [1], [0, 0, 1, 1], [], []>} : vector<16x8xbf16>, vector<8x64xbf16>, vector<16x64xf32> -> vector<16x64xf32>
    %203 = arith.truncf %202 : vector<16x64xf32> to vector<16x64xbf16>
    %c0_173 = arith.constant 0 : index
    %c0_174 = arith.constant 0 : index
    %c0_175 = arith.constant 0 : index
    %204 = vector.load %arg12[%c0_173, %c0_174, %c0_175] : memref<7x64x32xbf16, #tpu.memory_space<vmem>>, vector<1x64x32xbf16>
    %205 = vector.shape_cast %204 : vector<1x64x32xbf16> to vector<64x32xbf16>
    %cst_176 = arith.constant dense<0.000000e+00> : vector<16x32xf32>
    %206 = tpu.matmul %203, %205, %cst_176 {dimension_numbers = #tpu.dot_dimension_numbers<[1], [0], [0], [1], [0, 0, 1, 1], [], []>} : vector<16x64xbf16>, vector<64x32xbf16>, vector<16x32xf32> -> vector<16x32xf32>
    %207 = arith.addf %199, %206 : vector<16x32xf32>
    %c1_177 = arith.constant 1 : index
    %c0_178 = arith.constant 0 : index
    %c0_179 = arith.constant 0 : index
    %208 = vector.load %arg11[%c1_177, %c0_178, %c0_179] : memref<7x16x8xbf16, #tpu.memory_space<vmem>>, vector<1x16x8xbf16>
    %209 = vector.shape_cast %208 : vector<1x16x8xbf16> to vector<16x8xbf16>
    %cst_180 = arith.constant dense<0.000000e+00> : vector<16x64xf32>
    %210 = tpu.matmul %209, %198, %cst_180 {dimension_numbers = #tpu.dot_dimension_numbers<[1], [0], [0], [1], [0, 0, 1, 1], [], []>} : vector<16x8xbf16>, vector<8x64xbf16>, vector<16x64xf32> -> vector<16x64xf32>
    %211 = arith.truncf %210 : vector<16x64xf32> to vector<16x64xbf16>
    %c1_181 = arith.constant 1 : index
    %c0_182 = arith.constant 0 : index
    %c0_183 = arith.constant 0 : index
    %212 = vector.load %arg12[%c1_181, %c0_182, %c0_183] : memref<7x64x32xbf16, #tpu.memory_space<vmem>>, vector<1x64x32xbf16>
    %213 = vector.shape_cast %212 : vector<1x64x32xbf16> to vector<64x32xbf16>
    %cst_184 = arith.constant dense<0.000000e+00> : vector<16x32xf32>
    %214 = tpu.matmul %211, %213, %cst_184 {dimension_numbers = #tpu.dot_dimension_numbers<[1], [0], [0], [1], [0, 0, 1, 1], [], []>} : vector<16x64xbf16>, vector<64x32xbf16>, vector<16x32xf32> -> vector<16x32xf32>
    %215 = arith.addf %207, %214 : vector<16x32xf32>
    %c2_185 = arith.constant 2 : index
    %c0_186 = arith.constant 0 : index
    %c0_187 = arith.constant 0 : index
    %216 = vector.load %arg11[%c2_185, %c0_186, %c0_187] : memref<7x16x8xbf16, #tpu.memory_space<vmem>>, vector<1x16x8xbf16>
    %217 = vector.shape_cast %216 : vector<1x16x8xbf16> to vector<16x8xbf16>
    %cst_188 = arith.constant dense<0.000000e+00> : vector<16x64xf32>
    %218 = tpu.matmul %217, %198, %cst_188 {dimension_numbers = #tpu.dot_dimension_numbers<[1], [0], [0], [1], [0, 0, 1, 1], [], []>} : vector<16x8xbf16>, vector<8x64xbf16>, vector<16x64xf32> -> vector<16x64xf32>
    %219 = arith.truncf %218 : vector<16x64xf32> to vector<16x64xbf16>
    %c2_189 = arith.constant 2 : index
    %c0_190 = arith.constant 0 : index
    %c0_191 = arith.constant 0 : index
    %220 = vector.load %arg12[%c2_189, %c0_190, %c0_191] : memref<7x64x32xbf16, #tpu.memory_space<vmem>>, vector<1x64x32xbf16>
    %221 = vector.shape_cast %220 : vector<1x64x32xbf16> to vector<64x32xbf16>
    %cst_192 = arith.constant dense<0.000000e+00> : vector<16x32xf32>
    %222 = tpu.matmul %219, %221, %cst_192 {dimension_numbers = #tpu.dot_dimension_numbers<[1], [0], [0], [1], [0, 0, 1, 1], [], []>} : vector<16x64xbf16>, vector<64x32xbf16>, vector<16x32xf32> -> vector<16x32xf32>
    %223 = arith.addf %215, %222 : vector<16x32xf32>
    %c3_193 = arith.constant 3 : index
    %c0_194 = arith.constant 0 : index
    %c0_195 = arith.constant 0 : index
    %224 = vector.load %arg11[%c3_193, %c0_194, %c0_195] : memref<7x16x8xbf16, #tpu.memory_space<vmem>>, vector<1x16x8xbf16>
    %225 = vector.shape_cast %224 : vector<1x16x8xbf16> to vector<16x8xbf16>
    %cst_196 = arith.constant dense<0.000000e+00> : vector<16x64xf32>
    %226 = tpu.matmul %225, %198, %cst_196 {dimension_numbers = #tpu.dot_dimension_numbers<[1], [0], [0], [1], [0, 0, 1, 1], [], []>} : vector<16x8xbf16>, vector<8x64xbf16>, vector<16x64xf32> -> vector<16x64xf32>
    %227 = arith.truncf %226 : vector<16x64xf32> to vector<16x64xbf16>
    %c3_197 = arith.constant 3 : index
    %c0_198 = arith.constant 0 : index
    %c0_199 = arith.constant 0 : index
    %228 = vector.load %arg12[%c3_197, %c0_198, %c0_199] : memref<7x64x32xbf16, #tpu.memory_space<vmem>>, vector<1x64x32xbf16>
    %229 = vector.shape_cast %228 : vector<1x64x32xbf16> to vector<64x32xbf16>
    %cst_200 = arith.constant dense<0.000000e+00> : vector<16x32xf32>
    %230 = tpu.matmul %227, %229, %cst_200 {dimension_numbers = #tpu.dot_dimension_numbers<[1], [0], [0], [1], [0, 0, 1, 1], [], []>} : vector<16x64xbf16>, vector<64x32xbf16>, vector<16x32xf32> -> vector<16x32xf32>
    %231 = arith.addf %223, %230 : vector<16x32xf32>
    %c4_201 = arith.constant 4 : index
    %c0_202 = arith.constant 0 : index
    %c0_203 = arith.constant 0 : index
    %232 = vector.load %arg11[%c4_201, %c0_202, %c0_203] : memref<7x16x8xbf16, #tpu.memory_space<vmem>>, vector<1x16x8xbf16>
    %233 = vector.shape_cast %232 : vector<1x16x8xbf16> to vector<16x8xbf16>
    %cst_204 = arith.constant dense<0.000000e+00> : vector<16x64xf32>
    %234 = tpu.matmul %233, %198, %cst_204 {dimension_numbers = #tpu.dot_dimension_numbers<[1], [0], [0], [1], [0, 0, 1, 1], [], []>} : vector<16x8xbf16>, vector<8x64xbf16>, vector<16x64xf32> -> vector<16x64xf32>
    %235 = arith.truncf %234 : vector<16x64xf32> to vector<16x64xbf16>
    %c4_205 = arith.constant 4 : index
    %c0_206 = arith.constant 0 : index
    %c0_207 = arith.constant 0 : index
    %236 = vector.load %arg12[%c4_205, %c0_206, %c0_207] : memref<7x64x32xbf16, #tpu.memory_space<vmem>>, vector<1x64x32xbf16>
    %237 = vector.shape_cast %236 : vector<1x64x32xbf16> to vector<64x32xbf16>
    %cst_208 = arith.constant dense<0.000000e+00> : vector<16x32xf32>
    %238 = tpu.matmul %235, %237, %cst_208 {dimension_numbers = #tpu.dot_dimension_numbers<[1], [0], [0], [1], [0, 0, 1, 1], [], []>} : vector<16x64xbf16>, vector<64x32xbf16>, vector<16x32xf32> -> vector<16x32xf32>
    %239 = arith.addf %231, %238 : vector<16x32xf32>
    %c5_209 = arith.constant 5 : index
    %c0_210 = arith.constant 0 : index
    %c0_211 = arith.constant 0 : index
    %240 = vector.load %arg11[%c5_209, %c0_210, %c0_211] : memref<7x16x8xbf16, #tpu.memory_space<vmem>>, vector<1x16x8xbf16>
    %241 = vector.shape_cast %240 : vector<1x16x8xbf16> to vector<16x8xbf16>
    %cst_212 = arith.constant dense<0.000000e+00> : vector<16x64xf32>
    %242 = tpu.matmul %241, %198, %cst_212 {dimension_numbers = #tpu.dot_dimension_numbers<[1], [0], [0], [1], [0, 0, 1, 1], [], []>} : vector<16x8xbf16>, vector<8x64xbf16>, vector<16x64xf32> -> vector<16x64xf32>
    %243 = arith.truncf %242 : vector<16x64xf32> to vector<16x64xbf16>
    %c5_213 = arith.constant 5 : index
    %c0_214 = arith.constant 0 : index
    %c0_215 = arith.constant 0 : index
    %244 = vector.load %arg12[%c5_213, %c0_214, %c0_215] : memref<7x64x32xbf16, #tpu.memory_space<vmem>>, vector<1x64x32xbf16>
    %245 = vector.shape_cast %244 : vector<1x64x32xbf16> to vector<64x32xbf16>
    %cst_216 = arith.constant dense<0.000000e+00> : vector<16x32xf32>
    %246 = tpu.matmul %243, %245, %cst_216 {dimension_numbers = #tpu.dot_dimension_numbers<[1], [0], [0], [1], [0, 0, 1, 1], [], []>} : vector<16x64xbf16>, vector<64x32xbf16>, vector<16x32xf32> -> vector<16x32xf32>
    %247 = arith.addf %239, %246 : vector<16x32xf32>
    %c6_217 = arith.constant 6 : index
    %c0_218 = arith.constant 0 : index
    %c0_219 = arith.constant 0 : index
    %248 = vector.load %arg11[%c6_217, %c0_218, %c0_219] : memref<7x16x8xbf16, #tpu.memory_space<vmem>>, vector<1x16x8xbf16>
    %249 = vector.shape_cast %248 : vector<1x16x8xbf16> to vector<16x8xbf16>
    %cst_220 = arith.constant dense<0.000000e+00> : vector<16x64xf32>
    %250 = tpu.matmul %249, %198, %cst_220 {dimension_numbers = #tpu.dot_dimension_numbers<[1], [0], [0], [1], [0, 0, 1, 1], [], []>} : vector<16x8xbf16>, vector<8x64xbf16>, vector<16x64xf32> -> vector<16x64xf32>
    %251 = arith.truncf %250 : vector<16x64xf32> to vector<16x64xbf16>
    %c6_221 = arith.constant 6 : index
    %c0_222 = arith.constant 0 : index
    %c0_223 = arith.constant 0 : index
    %252 = vector.load %arg12[%c6_221, %c0_222, %c0_223] : memref<7x64x32xbf16, #tpu.memory_space<vmem>>, vector<1x64x32xbf16>
    %253 = vector.shape_cast %252 : vector<1x64x32xbf16> to vector<64x32xbf16>
    %cst_224 = arith.constant dense<0.000000e+00> : vector<16x32xf32>
    %254 = tpu.matmul %251, %253, %cst_224 {dimension_numbers = #tpu.dot_dimension_numbers<[1], [0], [0], [1], [0, 0, 1, 1], [], []>} : vector<16x64xbf16>, vector<64x32xbf16>, vector<16x32xf32> -> vector<16x32xf32>
    %255 = arith.addf %247, %254 : vector<16x32xf32>
    %c0_225 = arith.constant 0 : index
    %c0_226 = arith.constant 0 : index
    %256 = vector.load %arg13[%c0_225, %c0_226] : memref<1x32xf32, #tpu.memory_space<vmem>>, vector<1x32xf32>
    %257 = vector.broadcast %256 : vector<1x32xf32> to vector<16x32xf32>
    %258 = arith.addf %255, %257 : vector<16x32xf32>
    %cst_227 = arith.constant 0.000000e+00 : f32
    %259 = vector.broadcast %cst_227 : f32 to vector<16x32xf32>
    %260 = arith.maximumf %258, %259 : vector<16x32xf32>
    %261 = arith.truncf %260 : vector<16x32xf32> to vector<16x32xbf16>
    %cst_228 = arith.constant 0.000000e+00 : f32
    %262 = vector.broadcast %cst_228 : f32 to vector<32x16xf32>
    %c0_229 = arith.constant 0 : index
    %c0_230 = arith.constant 0 : index
    %c0_231 = arith.constant 0 : index
    %263 = vector.load %arg14[%c0_229, %c0_230, %c0_231] : memref<7x32x16xbf16, #tpu.memory_space<vmem>>, vector<1x32x16xbf16>
    %264 = vector.shape_cast %263 : vector<1x32x16xbf16> to vector<32x16xbf16>
    %cst_232 = arith.constant dense<0.000000e+00> : vector<32x32xf32>
    %265 = tpu.matmul %264, %261, %cst_232 {dimension_numbers = #tpu.dot_dimension_numbers<[1], [0], [0], [1], [0, 0, 1, 1], [], []>} : vector<32x16xbf16>, vector<16x32xbf16>, vector<32x32xf32> -> vector<32x32xf32>
    %266 = arith.truncf %265 : vector<32x32xf32> to vector<32x32xbf16>
    %c0_233 = arith.constant 0 : index
    %c0_234 = arith.constant 0 : index
    %c0_235 = arith.constant 0 : index
    %267 = vector.load %arg15[%c0_233, %c0_234, %c0_235] : memref<7x32x16xbf16, #tpu.memory_space<vmem>>, vector<1x32x16xbf16>
    %268 = vector.shape_cast %267 : vector<1x32x16xbf16> to vector<32x16xbf16>
    %cst_236 = arith.constant dense<0.000000e+00> : vector<32x16xf32>
    %269 = tpu.matmul %266, %268, %cst_236 {dimension_numbers = #tpu.dot_dimension_numbers<[1], [0], [0], [1], [0, 0, 1, 1], [], []>} : vector<32x32xbf16>, vector<32x16xbf16>, vector<32x16xf32> -> vector<32x16xf32>
    %270 = arith.addf %262, %269 : vector<32x16xf32>
    %c1_237 = arith.constant 1 : index
    %c0_238 = arith.constant 0 : index
    %c0_239 = arith.constant 0 : index
    %271 = vector.load %arg14[%c1_237, %c0_238, %c0_239] : memref<7x32x16xbf16, #tpu.memory_space<vmem>>, vector<1x32x16xbf16>
    %272 = vector.shape_cast %271 : vector<1x32x16xbf16> to vector<32x16xbf16>
    %cst_240 = arith.constant dense<0.000000e+00> : vector<32x32xf32>
    %273 = tpu.matmul %272, %261, %cst_240 {dimension_numbers = #tpu.dot_dimension_numbers<[1], [0], [0], [1], [0, 0, 1, 1], [], []>} : vector<32x16xbf16>, vector<16x32xbf16>, vector<32x32xf32> -> vector<32x32xf32>
    %274 = arith.truncf %273 : vector<32x32xf32> to vector<32x32xbf16>
    %c1_241 = arith.constant 1 : index
    %c0_242 = arith.constant 0 : index
    %c0_243 = arith.constant 0 : index
    %275 = vector.load %arg15[%c1_241, %c0_242, %c0_243] : memref<7x32x16xbf16, #tpu.memory_space<vmem>>, vector<1x32x16xbf16>
    %276 = vector.shape_cast %275 : vector<1x32x16xbf16> to vector<32x16xbf16>
    %cst_244 = arith.constant dense<0.000000e+00> : vector<32x16xf32>
    %277 = tpu.matmul %274, %276, %cst_244 {dimension_numbers = #tpu.dot_dimension_numbers<[1], [0], [0], [1], [0, 0, 1, 1], [], []>} : vector<32x32xbf16>, vector<32x16xbf16>, vector<32x16xf32> -> vector<32x16xf32>
    %278 = arith.addf %270, %277 : vector<32x16xf32>
    %c2_245 = arith.constant 2 : index
    %c0_246 = arith.constant 0 : index
    %c0_247 = arith.constant 0 : index
    %279 = vector.load %arg14[%c2_245, %c0_246, %c0_247] : memref<7x32x16xbf16, #tpu.memory_space<vmem>>, vector<1x32x16xbf16>
    %280 = vector.shape_cast %279 : vector<1x32x16xbf16> to vector<32x16xbf16>
    %cst_248 = arith.constant dense<0.000000e+00> : vector<32x32xf32>
    %281 = tpu.matmul %280, %261, %cst_248 {dimension_numbers = #tpu.dot_dimension_numbers<[1], [0], [0], [1], [0, 0, 1, 1], [], []>} : vector<32x16xbf16>, vector<16x32xbf16>, vector<32x32xf32> -> vector<32x32xf32>
    %282 = arith.truncf %281 : vector<32x32xf32> to vector<32x32xbf16>
    %c2_249 = arith.constant 2 : index
    %c0_250 = arith.constant 0 : index
    %c0_251 = arith.constant 0 : index
    %283 = vector.load %arg15[%c2_249, %c0_250, %c0_251] : memref<7x32x16xbf16, #tpu.memory_space<vmem>>, vector<1x32x16xbf16>
    %284 = vector.shape_cast %283 : vector<1x32x16xbf16> to vector<32x16xbf16>
    %cst_252 = arith.constant dense<0.000000e+00> : vector<32x16xf32>
    %285 = tpu.matmul %282, %284, %cst_252 {dimension_numbers = #tpu.dot_dimension_numbers<[1], [0], [0], [1], [0, 0, 1, 1], [], []>} : vector<32x32xbf16>, vector<32x16xbf16>, vector<32x16xf32> -> vector<32x16xf32>
    %286 = arith.addf %278, %285 : vector<32x16xf32>
    %c3_253 = arith.constant 3 : index
    %c0_254 = arith.constant 0 : index
    %c0_255 = arith.constant 0 : index
    %287 = vector.load %arg14[%c3_253, %c0_254, %c0_255] : memref<7x32x16xbf16, #tpu.memory_space<vmem>>, vector<1x32x16xbf16>
    %288 = vector.shape_cast %287 : vector<1x32x16xbf16> to vector<32x16xbf16>
    %cst_256 = arith.constant dense<0.000000e+00> : vector<32x32xf32>
    %289 = tpu.matmul %288, %261, %cst_256 {dimension_numbers = #tpu.dot_dimension_numbers<[1], [0], [0], [1], [0, 0, 1, 1], [], []>} : vector<32x16xbf16>, vector<16x32xbf16>, vector<32x32xf32> -> vector<32x32xf32>
    %290 = arith.truncf %289 : vector<32x32xf32> to vector<32x32xbf16>
    %c3_257 = arith.constant 3 : index
    %c0_258 = arith.constant 0 : index
    %c0_259 = arith.constant 0 : index
    %291 = vector.load %arg15[%c3_257, %c0_258, %c0_259] : memref<7x32x16xbf16, #tpu.memory_space<vmem>>, vector<1x32x16xbf16>
    %292 = vector.shape_cast %291 : vector<1x32x16xbf16> to vector<32x16xbf16>
    %cst_260 = arith.constant dense<0.000000e+00> : vector<32x16xf32>
    %293 = tpu.matmul %290, %292, %cst_260 {dimension_numbers = #tpu.dot_dimension_numbers<[1], [0], [0], [1], [0, 0, 1, 1], [], []>} : vector<32x32xbf16>, vector<32x16xbf16>, vector<32x16xf32> -> vector<32x16xf32>
    %294 = arith.addf %286, %293 : vector<32x16xf32>
    %c4_261 = arith.constant 4 : index
    %c0_262 = arith.constant 0 : index
    %c0_263 = arith.constant 0 : index
    %295 = vector.load %arg14[%c4_261, %c0_262, %c0_263] : memref<7x32x16xbf16, #tpu.memory_space<vmem>>, vector<1x32x16xbf16>
    %296 = vector.shape_cast %295 : vector<1x32x16xbf16> to vector<32x16xbf16>
    %cst_264 = arith.constant dense<0.000000e+00> : vector<32x32xf32>
    %297 = tpu.matmul %296, %261, %cst_264 {dimension_numbers = #tpu.dot_dimension_numbers<[1], [0], [0], [1], [0, 0, 1, 1], [], []>} : vector<32x16xbf16>, vector<16x32xbf16>, vector<32x32xf32> -> vector<32x32xf32>
    %298 = arith.truncf %297 : vector<32x32xf32> to vector<32x32xbf16>
    %c4_265 = arith.constant 4 : index
    %c0_266 = arith.constant 0 : index
    %c0_267 = arith.constant 0 : index
    %299 = vector.load %arg15[%c4_265, %c0_266, %c0_267] : memref<7x32x16xbf16, #tpu.memory_space<vmem>>, vector<1x32x16xbf16>
    %300 = vector.shape_cast %299 : vector<1x32x16xbf16> to vector<32x16xbf16>
    %cst_268 = arith.constant dense<0.000000e+00> : vector<32x16xf32>
    %301 = tpu.matmul %298, %300, %cst_268 {dimension_numbers = #tpu.dot_dimension_numbers<[1], [0], [0], [1], [0, 0, 1, 1], [], []>} : vector<32x32xbf16>, vector<32x16xbf16>, vector<32x16xf32> -> vector<32x16xf32>
    %302 = arith.addf %294, %301 : vector<32x16xf32>
    %c5_269 = arith.constant 5 : index
    %c0_270 = arith.constant 0 : index
    %c0_271 = arith.constant 0 : index
    %303 = vector.load %arg14[%c5_269, %c0_270, %c0_271] : memref<7x32x16xbf16, #tpu.memory_space<vmem>>, vector<1x32x16xbf16>
    %304 = vector.shape_cast %303 : vector<1x32x16xbf16> to vector<32x16xbf16>
    %cst_272 = arith.constant dense<0.000000e+00> : vector<32x32xf32>
    %305 = tpu.matmul %304, %261, %cst_272 {dimension_numbers = #tpu.dot_dimension_numbers<[1], [0], [0], [1], [0, 0, 1, 1], [], []>} : vector<32x16xbf16>, vector<16x32xbf16>, vector<32x32xf32> -> vector<32x32xf32>
    %306 = arith.truncf %305 : vector<32x32xf32> to vector<32x32xbf16>
    %c5_273 = arith.constant 5 : index
    %c0_274 = arith.constant 0 : index
    %c0_275 = arith.constant 0 : index
    %307 = vector.load %arg15[%c5_273, %c0_274, %c0_275] : memref<7x32x16xbf16, #tpu.memory_space<vmem>>, vector<1x32x16xbf16>
    %308 = vector.shape_cast %307 : vector<1x32x16xbf16> to vector<32x16xbf16>
    %cst_276 = arith.constant dense<0.000000e+00> : vector<32x16xf32>
    %309 = tpu.matmul %306, %308, %cst_276 {dimension_numbers = #tpu.dot_dimension_numbers<[1], [0], [0], [1], [0, 0, 1, 1], [], []>} : vector<32x32xbf16>, vector<32x16xbf16>, vector<32x16xf32> -> vector<32x16xf32>
    %310 = arith.addf %302, %309 : vector<32x16xf32>
    %c6_277 = arith.constant 6 : index
    %c0_278 = arith.constant 0 : index
    %c0_279 = arith.constant 0 : index
    %311 = vector.load %arg14[%c6_277, %c0_278, %c0_279] : memref<7x32x16xbf16, #tpu.memory_space<vmem>>, vector<1x32x16xbf16>
    %312 = vector.shape_cast %311 : vector<1x32x16xbf16> to vector<32x16xbf16>
    %cst_280 = arith.constant dense<0.000000e+00> : vector<32x32xf32>
    %313 = tpu.matmul %312, %261, %cst_280 {dimension_numbers = #tpu.dot_dimension_numbers<[1], [0], [0], [1], [0, 0, 1, 1], [], []>} : vector<32x16xbf16>, vector<16x32xbf16>, vector<32x32xf32> -> vector<32x32xf32>
    %314 = arith.truncf %313 : vector<32x32xf32> to vector<32x32xbf16>
    %c6_281 = arith.constant 6 : index
    %c0_282 = arith.constant 0 : index
    %c0_283 = arith.constant 0 : index
    %315 = vector.load %arg15[%c6_281, %c0_282, %c0_283] : memref<7x32x16xbf16, #tpu.memory_space<vmem>>, vector<1x32x16xbf16>
    %316 = vector.shape_cast %315 : vector<1x32x16xbf16> to vector<32x16xbf16>
    %cst_284 = arith.constant dense<0.000000e+00> : vector<32x16xf32>
    %317 = tpu.matmul %314, %316, %cst_284 {dimension_numbers = #tpu.dot_dimension_numbers<[1], [0], [0], [1], [0, 0, 1, 1], [], []>} : vector<32x32xbf16>, vector<32x16xbf16>, vector<32x16xf32> -> vector<32x16xf32>
    %318 = arith.addf %310, %317 : vector<32x16xf32>
    %c0_285 = arith.constant 0 : index
    %c0_286 = arith.constant 0 : index
    %319 = vector.load %arg16[%c0_285, %c0_286] : memref<1x16xf32, #tpu.memory_space<vmem>>, vector<1x16xf32>
    %320 = vector.broadcast %319 : vector<1x16xf32> to vector<32x16xf32>
    %321 = arith.addf %318, %320 : vector<32x16xf32>
    %cst_287 = arith.constant 0.000000e+00 : f32
    %322 = vector.broadcast %cst_287 : f32 to vector<32x16xf32>
    %323 = arith.maximumf %321, %322 : vector<32x16xf32>
    %324 = arith.truncf %323 : vector<32x16xf32> to vector<32x16xbf16>
    %cst_288 = arith.constant 0.000000e+00 : f32
    %325 = vector.broadcast %cst_288 : f32 to vector<64x1xf32>
    %c0_289 = arith.constant 0 : index
    %c0_290 = arith.constant 0 : index
    %c0_291 = arith.constant 0 : index
    %326 = vector.load %arg17[%c0_289, %c0_290, %c0_291] : memref<7x64x32xbf16, #tpu.memory_space<vmem>>, vector<1x64x32xbf16>
    %327 = vector.shape_cast %326 : vector<1x64x32xbf16> to vector<64x32xbf16>
    %cst_292 = arith.constant dense<0.000000e+00> : vector<64x16xf32>
    %328 = tpu.matmul %327, %324, %cst_292 {dimension_numbers = #tpu.dot_dimension_numbers<[1], [0], [0], [1], [0, 0, 1, 1], [], []>} : vector<64x32xbf16>, vector<32x16xbf16>, vector<64x16xf32> -> vector<64x16xf32>
    %329 = arith.truncf %328 : vector<64x16xf32> to vector<64x16xbf16>
    %c0_293 = arith.constant 0 : index
    %c0_294 = arith.constant 0 : index
    %c0_295 = arith.constant 0 : index
    %330 = vector.load %arg18[%c0_293, %c0_294, %c0_295] : memref<7x16x1xbf16, #tpu.memory_space<vmem>>, vector<1x16x1xbf16>
    %331 = vector.shape_cast %330 : vector<1x16x1xbf16> to vector<16x1xbf16>
    %cst_296 = arith.constant dense<0.000000e+00> : vector<64x1xf32>
    %332 = tpu.matmul %329, %331, %cst_296 {dimension_numbers = #tpu.dot_dimension_numbers<[1], [0], [0], [1], [0, 0, 1, 1], [], []>} : vector<64x16xbf16>, vector<16x1xbf16>, vector<64x1xf32> -> vector<64x1xf32>
    %333 = arith.addf %325, %332 : vector<64x1xf32>
    %c1_297 = arith.constant 1 : index
    %c0_298 = arith.constant 0 : index
    %c0_299 = arith.constant 0 : index
    %334 = vector.load %arg17[%c1_297, %c0_298, %c0_299] : memref<7x64x32xbf16, #tpu.memory_space<vmem>>, vector<1x64x32xbf16>
    %335 = vector.shape_cast %334 : vector<1x64x32xbf16> to vector<64x32xbf16>
    %cst_300 = arith.constant dense<0.000000e+00> : vector<64x16xf32>
    %336 = tpu.matmul %335, %324, %cst_300 {dimension_numbers = #tpu.dot_dimension_numbers<[1], [0], [0], [1], [0, 0, 1, 1], [], []>} : vector<64x32xbf16>, vector<32x16xbf16>, vector<64x16xf32> -> vector<64x16xf32>
    %337 = arith.truncf %336 : vector<64x16xf32> to vector<64x16xbf16>
    %c1_301 = arith.constant 1 : index
    %c0_302 = arith.constant 0 : index
    %c0_303 = arith.constant 0 : index
    %338 = vector.load %arg18[%c1_301, %c0_302, %c0_303] : memref<7x16x1xbf16, #tpu.memory_space<vmem>>, vector<1x16x1xbf16>
    %339 = vector.shape_cast %338 : vector<1x16x1xbf16> to vector<16x1xbf16>
    %cst_304 = arith.constant dense<0.000000e+00> : vector<64x1xf32>
    %340 = tpu.matmul %337, %339, %cst_304 {dimension_numbers = #tpu.dot_dimension_numbers<[1], [0], [0], [1], [0, 0, 1, 1], [], []>} : vector<64x16xbf16>, vector<16x1xbf16>, vector<64x1xf32> -> vector<64x1xf32>
    %341 = arith.addf %333, %340 : vector<64x1xf32>
    %c2_305 = arith.constant 2 : index
    %c0_306 = arith.constant 0 : index
    %c0_307 = arith.constant 0 : index
    %342 = vector.load %arg17[%c2_305, %c0_306, %c0_307] : memref<7x64x32xbf16, #tpu.memory_space<vmem>>, vector<1x64x32xbf16>
    %343 = vector.shape_cast %342 : vector<1x64x32xbf16> to vector<64x32xbf16>
    %cst_308 = arith.constant dense<0.000000e+00> : vector<64x16xf32>
    %344 = tpu.matmul %343, %324, %cst_308 {dimension_numbers = #tpu.dot_dimension_numbers<[1], [0], [0], [1], [0, 0, 1, 1], [], []>} : vector<64x32xbf16>, vector<32x16xbf16>, vector<64x16xf32> -> vector<64x16xf32>
    %345 = arith.truncf %344 : vector<64x16xf32> to vector<64x16xbf16>
    %c2_309 = arith.constant 2 : index
    %c0_310 = arith.constant 0 : index
    %c0_311 = arith.constant 0 : index
    %346 = vector.load %arg18[%c2_309, %c0_310, %c0_311] : memref<7x16x1xbf16, #tpu.memory_space<vmem>>, vector<1x16x1xbf16>
    %347 = vector.shape_cast %346 : vector<1x16x1xbf16> to vector<16x1xbf16>
    %cst_312 = arith.constant dense<0.000000e+00> : vector<64x1xf32>
    %348 = tpu.matmul %345, %347, %cst_312 {dimension_numbers = #tpu.dot_dimension_numbers<[1], [0], [0], [1], [0, 0, 1, 1], [], []>} : vector<64x16xbf16>, vector<16x1xbf16>, vector<64x1xf32> -> vector<64x1xf32>
    %349 = arith.addf %341, %348 : vector<64x1xf32>
    %c3_313 = arith.constant 3 : index
    %c0_314 = arith.constant 0 : index
    %c0_315 = arith.constant 0 : index
    %350 = vector.load %arg17[%c3_313, %c0_314, %c0_315] : memref<7x64x32xbf16, #tpu.memory_space<vmem>>, vector<1x64x32xbf16>
    %351 = vector.shape_cast %350 : vector<1x64x32xbf16> to vector<64x32xbf16>
    %cst_316 = arith.constant dense<0.000000e+00> : vector<64x16xf32>
    %352 = tpu.matmul %351, %324, %cst_316 {dimension_numbers = #tpu.dot_dimension_numbers<[1], [0], [0], [1], [0, 0, 1, 1], [], []>} : vector<64x32xbf16>, vector<32x16xbf16>, vector<64x16xf32> -> vector<64x16xf32>
    %353 = arith.truncf %352 : vector<64x16xf32> to vector<64x16xbf16>
    %c3_317 = arith.constant 3 : index
    %c0_318 = arith.constant 0 : index
    %c0_319 = arith.constant 0 : index
    %354 = vector.load %arg18[%c3_317, %c0_318, %c0_319] : memref<7x16x1xbf16, #tpu.memory_space<vmem>>, vector<1x16x1xbf16>
    %355 = vector.shape_cast %354 : vector<1x16x1xbf16> to vector<16x1xbf16>
    %cst_320 = arith.constant dense<0.000000e+00> : vector<64x1xf32>
    %356 = tpu.matmul %353, %355, %cst_320 {dimension_numbers = #tpu.dot_dimension_numbers<[1], [0], [0], [1], [0, 0, 1, 1], [], []>} : vector<64x16xbf16>, vector<16x1xbf16>, vector<64x1xf32> -> vector<64x1xf32>
    %357 = arith.addf %349, %356 : vector<64x1xf32>
    %c4_321 = arith.constant 4 : index
    %c0_322 = arith.constant 0 : index
    %c0_323 = arith.constant 0 : index
    %358 = vector.load %arg17[%c4_321, %c0_322, %c0_323] : memref<7x64x32xbf16, #tpu.memory_space<vmem>>, vector<1x64x32xbf16>
    %359 = vector.shape_cast %358 : vector<1x64x32xbf16> to vector<64x32xbf16>
    %cst_324 = arith.constant dense<0.000000e+00> : vector<64x16xf32>
    %360 = tpu.matmul %359, %324, %cst_324 {dimension_numbers = #tpu.dot_dimension_numbers<[1], [0], [0], [1], [0, 0, 1, 1], [], []>} : vector<64x32xbf16>, vector<32x16xbf16>, vector<64x16xf32> -> vector<64x16xf32>
    %361 = arith.truncf %360 : vector<64x16xf32> to vector<64x16xbf16>
    %c4_325 = arith.constant 4 : index
    %c0_326 = arith.constant 0 : index
    %c0_327 = arith.constant 0 : index
    %362 = vector.load %arg18[%c4_325, %c0_326, %c0_327] : memref<7x16x1xbf16, #tpu.memory_space<vmem>>, vector<1x16x1xbf16>
    %363 = vector.shape_cast %362 : vector<1x16x1xbf16> to vector<16x1xbf16>
    %cst_328 = arith.constant dense<0.000000e+00> : vector<64x1xf32>
    %364 = tpu.matmul %361, %363, %cst_328 {dimension_numbers = #tpu.dot_dimension_numbers<[1], [0], [0], [1], [0, 0, 1, 1], [], []>} : vector<64x16xbf16>, vector<16x1xbf16>, vector<64x1xf32> -> vector<64x1xf32>
    %365 = arith.addf %357, %364 : vector<64x1xf32>
    %c5_329 = arith.constant 5 : index
    %c0_330 = arith.constant 0 : index
    %c0_331 = arith.constant 0 : index
    %366 = vector.load %arg17[%c5_329, %c0_330, %c0_331] : memref<7x64x32xbf16, #tpu.memory_space<vmem>>, vector<1x64x32xbf16>
    %367 = vector.shape_cast %366 : vector<1x64x32xbf16> to vector<64x32xbf16>
    %cst_332 = arith.constant dense<0.000000e+00> : vector<64x16xf32>
    %368 = tpu.matmul %367, %324, %cst_332 {dimension_numbers = #tpu.dot_dimension_numbers<[1], [0], [0], [1], [0, 0, 1, 1], [], []>} : vector<64x32xbf16>, vector<32x16xbf16>, vector<64x16xf32> -> vector<64x16xf32>
    %369 = arith.truncf %368 : vector<64x16xf32> to vector<64x16xbf16>
    %c5_333 = arith.constant 5 : index
    %c0_334 = arith.constant 0 : index
    %c0_335 = arith.constant 0 : index
    %370 = vector.load %arg18[%c5_333, %c0_334, %c0_335] : memref<7x16x1xbf16, #tpu.memory_space<vmem>>, vector<1x16x1xbf16>
    %371 = vector.shape_cast %370 : vector<1x16x1xbf16> to vector<16x1xbf16>
    %cst_336 = arith.constant dense<0.000000e+00> : vector<64x1xf32>
    %372 = tpu.matmul %369, %371, %cst_336 {dimension_numbers = #tpu.dot_dimension_numbers<[1], [0], [0], [1], [0, 0, 1, 1], [], []>} : vector<64x16xbf16>, vector<16x1xbf16>, vector<64x1xf32> -> vector<64x1xf32>
    %373 = arith.addf %365, %372 : vector<64x1xf32>
    %c6_337 = arith.constant 6 : index
    %c0_338 = arith.constant 0 : index
    %c0_339 = arith.constant 0 : index
    %374 = vector.load %arg17[%c6_337, %c0_338, %c0_339] : memref<7x64x32xbf16, #tpu.memory_space<vmem>>, vector<1x64x32xbf16>
    %375 = vector.shape_cast %374 : vector<1x64x32xbf16> to vector<64x32xbf16>
    %cst_340 = arith.constant dense<0.000000e+00> : vector<64x16xf32>
    %376 = tpu.matmul %375, %324, %cst_340 {dimension_numbers = #tpu.dot_dimension_numbers<[1], [0], [0], [1], [0, 0, 1, 1], [], []>} : vector<64x32xbf16>, vector<32x16xbf16>, vector<64x16xf32> -> vector<64x16xf32>
    %377 = arith.truncf %376 : vector<64x16xf32> to vector<64x16xbf16>
    %c6_341 = arith.constant 6 : index
    %c0_342 = arith.constant 0 : index
    %c0_343 = arith.constant 0 : index
    %378 = vector.load %arg18[%c6_341, %c0_342, %c0_343] : memref<7x16x1xbf16, #tpu.memory_space<vmem>>, vector<1x16x1xbf16>
    %379 = vector.shape_cast %378 : vector<1x16x1xbf16> to vector<16x1xbf16>
    %cst_344 = arith.constant dense<0.000000e+00> : vector<64x1xf32>
    %380 = tpu.matmul %377, %379, %cst_344 {dimension_numbers = #tpu.dot_dimension_numbers<[1], [0], [0], [1], [0, 0, 1, 1], [], []>} : vector<64x16xbf16>, vector<16x1xbf16>, vector<64x1xf32> -> vector<64x1xf32>
    %381 = arith.addf %373, %380 : vector<64x1xf32>
    %c0_345 = arith.constant 0 : index
    %c0_346 = arith.constant 0 : index
    %382 = vector.load %arg19[%c0_345, %c0_346] : memref<1x1xf32, #tpu.memory_space<vmem>>, vector<1x1xf32>
    %383 = vector.broadcast %382 : vector<1x1xf32> to vector<64x1xf32>
    %384 = arith.addf %381, %383 : vector<64x1xf32>
    %385 = math.tanh %384 : vector<64x1xf32>
    %c0_347 = arith.constant 0 : index
    %c0_348 = arith.constant 0 : index
    %c0_349 = arith.constant 0 : index
    %386 = vector.load %arg20[%c0_347, %c0_348, %c0_349] : memref<1x64x1xf32, #tpu.memory_space<vmem>>, vector<1x64x1xf32>
    %387 = vector.shape_cast %386 : vector<1x64x1xf32> to vector<64x1xf32>
    %388 = vector.shape_cast %385 : vector<64x1xf32> to vector<1x64x1xf32>
    tpu.vector_store %arg20[%c0_347, %c0_348, %c0_349], %388 {strides = array<i32>} : memref<1x64x1xf32, #tpu.memory_space<vmem>>, vector<1x64x1xf32>,
    return
  }
  func.func @transform_0(%arg0: i32) -> (i32, i32, i32) {
    %c0_i32 = arith.constant 0 : i32
    %c0_i32_0 = arith.constant 0 : i32
    %c0_i32_1 = arith.constant 0 : i32
    return %arg0, %c0_i32, %c0_i32_0 : i32, i32, i32
  }
  func.func @transform_1(%arg0: i32) -> (i32, i32, i32) {
    %c0_i32 = arith.constant 0 : i32
    %c0_i32_0 = arith.constant 0 : i32
    %c0_i32_1 = arith.constant 0 : i32
    %c0_i32_2 = arith.constant 0 : i32
    return %c0_i32, %c0_i32_0, %c0_i32_1 : i32, i32, i32
  }
  func.func @transform_2(%arg0: i32) -> (i32, i32, i32) {
    %c0_i32 = arith.constant 0 : i32
    %c0_i32_0 = arith.constant 0 : i32
    %c0_i32_1 = arith.constant 0 : i32
    %c0_i32_2 = arith.constant 0 : i32
    return %c0_i32, %c0_i32_0, %c0_i32_1 : i32, i32, i32
  }
  func.func @transform_3(%arg0: i32) -> (i32, i32) {
    %c0_i32 = arith.constant 0 : i32
    %c0_i32_0 = arith.constant 0 : i32
    %c0_i32_1 = arith.constant 0 : i32
    return %c0_i32, %c0_i32_0 : i32, i32
  }
  func.func @transform_4(%arg0: i32) -> (i32, i32, i32) {
    %c0_i32 = arith.constant 0 : i32
    %c0_i32_0 = arith.constant 0 : i32
    %c0_i32_1 = arith.constant 0 : i32
    %c0_i32_2 = arith.constant 0 : i32
    return %c0_i32, %c0_i32_0, %c0_i32_1 : i32, i32, i32
  }
  func.func @transform_5(%arg0: i32) -> (i32, i32, i32) {
    %c0_i32 = arith.constant 0 : i32
    %c0_i32_0 = arith.constant 0 : i32
    %c0_i32_1 = arith.constant 0 : i32
    %c0_i32_2 = arith.constant 0 : i32
    return %c0_i32, %c0_i32_0, %c0_i32_1 : i32, i32, i32
  }
  func.func @transform_6(%arg0: i32) -> (i32, i32) {
    %c0_i32 = arith.constant 0 : i32
    %c0_i32_0 = arith.constant 0 : i32
    %c0_i32_1 = arith.constant 0 : i32
    return %c0_i32, %c0_i32_0 : i32, i32
  }
  func.func @transform_7(%arg0: i32) -> (i32, i32, i32) {
    %c0_i32 = arith.constant 0 : i32
    %c0_i32_0 = arith.constant 0 : i32
    %c0_i32_1 = arith.constant 0 : i32
    %c0_i32_2 = arith.constant 0 : i32
    return %c0_i32, %c0_i32_0, %c0_i32_1 : i32, i32, i32
  }
  func.func @transform_8(%arg0: i32) -> (i32, i32, i32) {
    %c0_i32 = arith.constant 0 : i32
    %c0_i32_0 = arith.constant 0 : i32
    %c0_i32_1 = arith.constant 0 : i32
    %c0_i32_2 = arith.constant 0 : i32
    return %c0_i32, %c0_i32_0, %c0_i32_1 : i32, i32, i32
  }
  func.func @transform_9(%arg0: i32) -> (i32, i32) {
    %c0_i32 = arith.constant 0 : i32
    %c0_i32_0 = arith.constant 0 : i32
    %c0_i32_1 = arith.constant 0 : i32
    return %c0_i32, %c0_i32_0 : i32, i32
  }
  func.func @transform_10(%arg0: i32) -> (i32, i32, i32) {
    %c0_i32 = arith.constant 0 : i32
    %c0_i32_0 = arith.constant 0 : i32
    %c0_i32_1 = arith.constant 0 : i32
    %c0_i32_2 = arith.constant 0 : i32
    return %c0_i32, %c0_i32_0, %c0_i32_1 : i32, i32, i32
  }
  func.func @transform_11(%arg0: i32) -> (i32, i32, i32) {
    %c0_i32 = arith.constant 0 : i32
    %c0_i32_0 = arith.constant 0 : i32
    %c0_i32_1 = arith.constant 0 : i32
    %c0_i32_2 = arith.constant 0 : i32
    return %c0_i32, %c0_i32_0, %c0_i32_1 : i32, i32, i32
  }
  func.func @transform_12(%arg0: i32) -> (i32, i32) {
    %c0_i32 = arith.constant 0 : i32
    %c0_i32_0 = arith.constant 0 : i32
    %c0_i32_1 = arith.constant 0 : i32
    return %c0_i32, %c0_i32_0 : i32, i32
  }
  func.func @transform_13(%arg0: i32) -> (i32, i32, i32) {
    %c0_i32 = arith.constant 0 : i32
    %c0_i32_0 = arith.constant 0 : i32
    %c0_i32_1 = arith.constant 0 : i32
    %c0_i32_2 = arith.constant 0 : i32
    return %c0_i32, %c0_i32_0, %c0_i32_1 : i32, i32, i32
  }
  func.func @transform_14(%arg0: i32) -> (i32, i32, i32) {
    %c0_i32 = arith.constant 0 : i32
    %c0_i32_0 = arith.constant 0 : i32
    %c0_i32_1 = arith.constant 0 : i32
    %c0_i32_2 = arith.constant 0 : i32
    return %c0_i32, %c0_i32_0, %c0_i32_1 : i32, i32, i32
  }
  func.func @transform_15(%arg0: i32) -> (i32, i32) {
    %c0_i32 = arith.constant 0 : i32
    %c0_i32_0 = arith.constant 0 : i32
    %c0_i32_1 = arith.constant 0 : i32
    return %c0_i32, %c0_i32_0 : i32, i32
  }
  func.func @transform_16(%arg0: i32) -> (i32, i32, i32) {
    %c0_i32 = arith.constant 0 : i32
    %c0_i32_0 = arith.constant 0 : i32
    %c0_i32_1 = arith.constant 0 : i32
    %c0_i32_2 = arith.constant 0 : i32
    return %c0_i32, %c0_i32_0, %c0_i32_1 : i32, i32, i32
  }
  func.func @transform_17(%arg0: i32) -> (i32, i32, i32) {
    %c0_i32 = arith.constant 0 : i32
    %c0_i32_0 = arith.constant 0 : i32
    %c0_i32_1 = arith.constant 0 : i32
    %c0_i32_2 = arith.constant 0 : i32
    return %c0_i32, %c0_i32_0, %c0_i32_1 : i32, i32, i32
  }
  func.func @transform_18(%arg0: i32) -> (i32, i32) {
    %c0_i32 = arith.constant 0 : i32
    %c0_i32_0 = arith.constant 0 : i32
    %c0_i32_1 = arith.constant 0 : i32
    return %c0_i32, %c0_i32_0 : i32, i32
  }
  func.func @transform_19(%arg0: i32) -> (i32, i32, i32) {
    %c0_i32 = arith.constant 0 : i32
    %c0_i32_0 = arith.constant 0 : i32
    %c0_i32_1 = arith.constant 0 : i32
    return %arg0, %c0_i32, %c0_i32_0 : i32, i32, i32
  }
}

</mosaic_0001>

<bundles_post_ra>
// kernel: forward.1
= control target key start
LH: loop header
LB: loop body
LE: loop exit
PB: predicated region body
PF: predicated region fallthrough
CT: control target
= control target key end

     0   :  { %s9468_s0 = inlined_call_operand.vmem [shape: f32[2,64,1], index: 0, kind: input, shape index: {}]   ;;  %s9469_s1 = inlined_call_operand.hbm [shape: bf16[7,32,64], index: 1, kind: input, shape index: {}]   ;;  %s9470_s2 = inlined_call_operand.vmem [shape: bf16[7,1,16], index: 2, kind: input, shape index: {}]   ;;  %s9471_s3 = inlined_call_operand.vmem [shape: f32[1,16], index: 3, kind: input, shape index: {}]   ;;  %s9472_s4 = inlined_call_operand.hbm [shape: bf16[7,16,32], index: 4, kind: input, shape index: {}]   ;;  %s9473_s5 = inlined_call_operand.hbm [shape: bf16[7,16,32], index: 5, kind: input, shape index: {}]   ;;  %s9474_s6 = inlined_call_operand.vmem [shape: f32[1,32], index: 6, kind: input, shape index: {}]   ;;  %s9475_s7 = inlined_call_operand.hbm [shape: bf16[7,8,16], index: 7, kind: input, shape index: {}]   ;;  %s9476_s8 = inlined_call_operand.hbm [shape: bf16[7,32,64], index: 8, kind: input, shape index: {}]   ;;  %s9477_s9 = inlined_call_operand.vmem [shape: f32[1,64], index: 9, kind: input, shape index: {}]   ;;  %s9478_s10 = inlined_call_operand.hbm [shape: bf16[7,16,8], index: 10, kind: input, shape index: {}]   ;;  %s9479_s11 = inlined_call_operand.hbm [shape: bf16[7,64,32], index: 11, kind: input, shape index: {}]   ;;  %s9480_s12 = inlined_call_operand.vmem [shape: f32[1,32], index: 12, kind: input, shape index: {}]   ;;  %s9481_s13 = inlined_call_operand.hbm [shape: bf16[7,32,16], index: 13, kind: input, shape index: {}]   ;;  %s9482_s14 = inlined_call_operand.hbm [shape: bf16[7,32,16], index: 14, kind: input, shape index: {}]   ;;  %s9483_s15 = inlined_call_operand.vmem [shape: f32[1,16], index: 15, kind: input, shape index: {}]   ;;  %s9484_s16 = inlined_call_operand.vmem [shape: bf16[7,64,32], index: 16, kind: input, shape index: {}]   ;;  %s9485_s17 = inlined_call_operand.hbm [shape: bf16[7,16,1], index: 17, kind: input, shape index: {}]   ;;  %s9486_s18 = inlined_call_operand.<no memory space> [shape: f32[1,1], index: 18, kind: input, shape index: {}]   ;;  %s9487_s19 = inlined_call_operand.vmem [shape: f32[2,64,1], index: 19, kind: output, shape index: {}]  }
   0x1   :  { %9494 = sst [smem:[#allocation26_spill]] %s9468_s0  ;;  %v24_v0 = vstv %s9486_s18 }
   0x2   :  { %9495 = sst [smem:[#allocation27_spill]] %s9469_s1  ;;  %25 = vst [vmem:[#allocation2] sm:$0x1] %v24_v0 }
   0x3   :  { %9496 = sst [smem:[#allocation28_spill]] %s9470_s2 }
   0x4   :  { %9497 = sst [smem:[#allocation29_spill]] %s9471_s3 }
   0x5   :  { %9498 = sst [smem:[#allocation30_spill]] %s9472_s4 }
   0x6   :  { %9499 = sst [smem:[#allocation31_spill]] %s9483_s15 }
   0x7   :  { %9500 = sst [smem:[#allocation32_spill]] %s9484_s16 }
   0x8   :  { %9501 = sst [smem:[#allocation33_spill]] %s9487_s19 }
   0x9   :  { %26 = vsyncpa [#allocation4], 0 }
   0xa   :  { %27 = vsyncpa [#allocation6], 0 }
   0xb   :  { %28 = vsyncpa [#allocation9], 0 }
   0xc   :  { %29 = vsyncpa [#allocation12], 0 }
   0xd   :  { %30 = vsyncpa [#allocation15], 0 }
   0xe   :  { %31 = vsyncpa [#allocation18], 0  ;;  %s8609_s20 = smov 0  }
   0xf LB: > { %9502 = sst [smem:[#allocation25_spill]] %s8489_s20  ;;  %s8615_s21 = sadd.s32 4294967295, %s8489_s20   ;;  %s8489_s20 = sphi %s8609_s20, %s37_s20  }
  0x10   : > { %p6495_p0 = scmp.ge.s32.totalorder %s8489_s20, 1  ;;  %p472_p1 = scmp.lt.s32.totalorder %s8489_s20, 3 }
  0x11   : > { %p9492_p2 = scmp.eq.s32.totalorder %s8615_s21, 0  ;;  %s8491_s1 = smov [#allocation5]  }
  0x12   : > { %p8620_p3 = pnand %p6495_p0, %p472_p1  ;;  %s503_s22 = sshll.u32 %s8491_s1, 4  ;;  %s8624_s22 = int_to_ptr.vmem [resolvable:$true] %s503_s22 }
  0x13   : > { %s8492_s2 = smov [#allocation8]   ;;  %s8493_s25 = smov [#allocation11]  }
  0x14   : > { %s9503_s18 = scalar_select %p8620_p3, 1, 0 }
  0x15   : > { %p7947_p4 = pneg %p8620_p3  ;;  %s532_s23 = sshll.u32 %s8492_s2, 4  ;;  %s8628_s23 = int_to_ptr.vmem [resolvable:$true] %s532_s23 }
  0x16   : > { %s561_s3 = sshll.u32 %s8493_s25, 4  ;;  %s8494_s26 = smov [#allocation14]   ;;  %s8636_s3 = int_to_ptr.vmem [resolvable:$true] %s561_s3 }
  0x17   : > { %p8632_p5 = pnand %p9492_p2, %p7947_p4  ;;  %s8638_s27 = sshll.u32 %s8494_s26, 4  ;;  %s591_s27 = int_to_ptr.vmem [resolvable:$true] %s8638_s27 }
  0x18   : > { %s9505_s4 = sld [smem:[#allocation30_spill]] }
  0x19   : > { %p8648_p7 = pneg %p8632_p5 }
  0x1e   : > { %s8179_s0 = scalar_lea.hbm %s9505_s4, 896 }
  0x1f   : > { %p8180_p6 = scmp.ne.s32.totalorder %s9505_s4, %s8179_s0  ;;  %p8186_p10 = scmp.lt.u32.totalorder %s8179_s0, %s9505_s4 }
  0x21   : > { %p8182_p8 = pnand %p8648_p7, %p8180_p6 }
  0x23   : > { %p8183_p9 = pneg %p8182_p8 }
  0x25   : > { %p8188_p11 = pnand %p8186_p10, %p8183_p9 }
  0x27   : > { %8191 = shalt.err (!%p8188_p11)
}
  0x28   : > { %s8192_s28 = scalar_lea.vmem %s8624_s22, 896  ;;  %p8200_p1 = scmp.lt.s32.totalorder %s8624_s22, %s8624_s22 }
  0x29   : > { %p8193_p12 = scmp.ne.s32.totalorder %s8624_s22, %s8192_s28  ;;  %p8201_p4 = scmp.lt.s32.totalorder %s8192_s28, %s8192_s28 }
  0x2b   : > { %p8195_p13 = pnand %p8193_p12, %p8648_p7  ;;  %p8202_p6 = por %p8201_p4, %p8200_p1 }
  0x2d   : > { %p8196_p0 = pneg %p8195_p13 }
  0x2f   : > { %p8203_p8 = pnand %p8202_p6, %p8196_p0 }
  0x31   : > { %8206 = shalt.err (!%p8203_p8)
}
  0x32   : > { %s8495_s29 = smov 64   ;;  %s8496_s0 = smov 4  }
  0x33   : > { %7953 = dma.hbm_to_vmem [thread:$0]  (!%p8632_p5), %s9505_s4, 896, %s8624_s22, [#allocation6], %s8495_s29, %s8495_s29, %s8496_s0  }
  0x34   : > { %s8207_s28 = scalar_lea.hbm %s9475_s7, 448 }
  0x35   : > { %p8208_p9 = scmp.ne.s32.totalorder %s9475_s7, %s8207_s28  ;;  %p8214_p12 = scmp.lt.u32.totalorder %s8207_s28, %s9475_s7 }
  0x37   : > { %p8210_p10 = pnand %p8208_p9, %p8648_p7 }
  0x39   : > { %p8211_p11 = pneg %p8210_p10 }
  0x3b   : > { %p8216_p13 = pnand %p8214_p12, %p8211_p11 }
  0x3d   : > { %8219 = shalt.err (!%p8216_p13)
}
  0x3e   : > { %s8220_s22 = scalar_lea.vmem %s8628_s23, 448  ;;  %p8228_p6 = scmp.lt.s32.totalorder %s8628_s23, %s8628_s23 }
  0x3f   : > { %p8221_p0 = scmp.ne.s32.totalorder %s8628_s23, %s8220_s22  ;;  %p8229_p8 = scmp.lt.s32.totalorder %s8220_s22, %s8220_s22 }
  0x41   : > { %p8223_p1 = pnand %p8221_p0, %p8648_p7  ;;  %p8230_p9 = por %p8229_p8, %p8228_p6 }
  0x43   : > { %p8224_p4 = pneg %p8223_p1 }
  0x45   : > { %p8231_p10 = pnand %p8230_p9, %p8224_p4 }
  0x47   : > { %8234 = shalt.err (!%p8231_p10)
}
  0x48   : > { %7959 = dma.hbm_to_vmem [thread:$0]  (!%p8632_p5), %s9475_s7, 448, %s8628_s23, [#allocation9], %s8495_s29, %s8495_s29, %s8496_s0  }
  0x49   : > { %s8235_s30 = scalar_lea.hbm %s9478_s10, 896 }
  0x4a   : > { %p8236_p11 = scmp.ne.s32.totalorder %s9478_s10, %s8235_s30  ;;  %p8242_p0 = scmp.lt.u32.totalorder %s8235_s30, %s9478_s10 }
  0x4c   : > { %p8238_p12 = pnand %p8236_p11, %p8648_p7 }
  0x4e   : > { %p8239_p13 = pneg %p8238_p12 }
  0x50   : > { %p8244_p1 = pnand %p8242_p0, %p8239_p13 }
  0x52   : > { %8247 = shalt.err (!%p8244_p1)
}
  0x53   : > { %s8248_s23 = scalar_lea.vmem %s8636_s3, 896  ;;  %p8256_p9 = scmp.lt.s32.totalorder %s8636_s3, %s8636_s3 }
  0x54   : > { %p8249_p4 = scmp.ne.s32.totalorder %s8636_s3, %s8248_s23  ;;  %p8257_p10 = scmp.lt.s32.totalorder %s8248_s23, %s8248_s23 }
  0x56   : > { %p8251_p6 = pnand %p8249_p4, %p8648_p7  ;;  %p8258_p11 = por %p8257_p10, %p8256_p9 }
  0x58   : > { %p8252_p8 = pneg %p8251_p6 }
  0x5a   : > { %p8259_p12 = pnand %p8258_p11, %p8252_p8 }
  0x5c   : > { %8262 = shalt.err (!%p8259_p12)
}
  0x5d   : > { %7965 = dma.hbm_to_vmem [thread:$0]  (!%p8632_p5), %s9478_s10, 896, %s8636_s3, [#allocation12], %s8495_s29, %s8495_s29, %s8496_s0  }
  0x5e   : > { %s8263_s20 = scalar_lea.hbm %s9481_s13, 1792 }
  0x5f   : > { %p8264_p13 = scmp.ne.s32.totalorder %s9481_s13, %s8263_s20  ;;  %p8270_p4 = scmp.lt.u32.totalorder %s8263_s20, %s9481_s13 }
  0x61   : > { %p8266_p0 = pnand %p8264_p13, %p8648_p7 }
  0x63   : > { %p8267_p1 = pneg %p8266_p0 }
  0x65   : > { %p8272_p6 = pnand %p8270_p4, %p8267_p1 }
  0x67   : > { %8275 = shalt.err (!%p8272_p6)
}
  0x68   : > { %s8276_s28 = scalar_lea.vmem %s591_s27, 1792  ;;  %p8284_p11 = scmp.lt.s32.totalorder %s591_s27, %s591_s27 }
  0x69   : > { %p8277_p8 = scmp.ne.s32.totalorder %s591_s27, %s8276_s28  ;;  %p8285_p12 = scmp.lt.s32.totalorder %s8276_s28, %s8276_s28 }
  0x6b   : > { %p8279_p9 = pnand %p8277_p8, %p8648_p7  ;;  %p8286_p2 = por %p8285_p12, %p8284_p11 }
  0x6d   : > { %p8280_p10 = pneg %p8279_p9 }
  0x6f   : > { %p8287_p3 = pnand %p8286_p2, %p8280_p10 }
  0x71   : > { %8290 = shalt.err (!%p8287_p3)
}
  0x72   : > { %7971 = dma.hbm_to_vmem [thread:$0]  (!%p8632_p5), %s9481_s13, 1792, %s591_s27, [#allocation15], %s8495_s29, %s8495_s29, %s8496_s0  }
  0x73   : > { %s8497_s22 = smov [#allocation3]   ;;  %s8498_s16 = smov [#allocation7]  }
  0x74   : > { %s484_s15 = sshll.u32 %s8497_s22, 4  ;;  %s516_s19 = sshll.u32 %s8498_s16, 4  ;;  %s485_s15 = int_to_ptr.vmem [resolvable:$true] %s484_s15  ;;  %s517_s19 = int_to_ptr.vmem [resolvable:$true] %s516_s19 }
  0x75   : > { %s9507_s1 = sld [smem:[#allocation27_spill]] }
  0x7b   : > { %s8291_s25 = scalar_lea.hbm %s9507_s1, 1792 }
  0x7c   : > { %p8292_p2 = scmp.ne.s32.totalorder %s9507_s1, %s8291_s25  ;;  %p8298_p0 = scmp.lt.u32.totalorder %s8291_s25, %s9507_s1 }
  0x7e   : > { %p8294_p3 = pnand %p8292_p2, %p8648_p7 }
  0x80   : > { %p8295_p13 = pneg %p8294_p3 }
  0x82   : > { %p8300_p1 = pnand %p8298_p0, %p8295_p13 }
  0x84   : > { %8303 = shalt.err (!%p8300_p1)
}
  0x85   : > { %s8304_s27 = scalar_lea.vmem %s485_s15, 1792  ;;  %p8312_p9 = scmp.lt.s32.totalorder %s485_s15, %s485_s15 }
  0x86   : > { %p8305_p4 = scmp.ne.s32.totalorder %s485_s15, %s8304_s27  ;;  %p8313_p10 = scmp.lt.s32.totalorder %s8304_s27, %s8304_s27 }
  0x88   : > { %p8307_p6 = pnand %p8305_p4, %p8648_p7  ;;  %p8314_p11 = por %p8313_p10, %p8312_p9 }
  0x8a   : > { %p8308_p8 = pneg %p8307_p6 }
  0x8c   : > { %p8315_p12 = pnand %p8314_p11, %p8308_p8 }
  0x8e   : > { %8318 = shalt.err (!%p8315_p12)
}
  0x8f   : > { %7950 = dma.hbm_to_vmem [thread:$0]  (!%p8632_p5), %s9507_s1, 1792, %s485_s15, [#allocation4], %s8495_s29, %s8495_s29, %s8496_s0  }
  0x90   : > { %s8319_s20 = scalar_lea.hbm %s9473_s5, 896 }
  0x91   : > { %p8320_p2 = scmp.ne.s32.totalorder %s9473_s5, %s8319_s20  ;;  %p8326_p0 = scmp.lt.u32.totalorder %s8319_s20, %s9473_s5 }
  0x93   : > { %p8322_p3 = pnand %p8320_p2, %p8648_p7 }
  0x95   : > { %p8323_p13 = pneg %p8322_p3 }
  0x97   : > { %p8328_p1 = pnand %p8326_p0, %p8323_p13 }
  0x99   : > { %8331 = shalt.err (!%p8328_p1)
}
  0x9a   : > { %s8332_s3 = scalar_lea.vmem %s517_s19, 896  ;;  %p8340_p9 = scmp.lt.s32.totalorder %s517_s19, %s517_s19 }
  0x9b   : > { %p8333_p4 = scmp.ne.s32.totalorder %s517_s19, %s8332_s3  ;;  %p8341_p10 = scmp.lt.s32.totalorder %s8332_s3, %s8332_s3 }
  0x9d   : > { %p8335_p6 = pnand %p8333_p4, %p8648_p7  ;;  %p8342_p11 = por %p8341_p10, %p8340_p9 }
  0x9f   : > { %p8336_p8 = pneg %p8335_p6 }
  0xa1   : > { %p8343_p12 = pnand %p8342_p11, %p8336_p8 }
  0xa3   : > { %8346 = shalt.err (!%p8343_p12)
}
  0xa4   : > { %7956 = dma.hbm_to_vmem [thread:$0]  (!%p8632_p5), %s9473_s5, 896, %s517_s19, [#allocation6], %s8495_s29, %s8495_s29, %s8496_s0  }
  0xa5   : > { %s8499_s4 = smov [#allocation10]   ;;  %s8500_s22 = smov [#allocation13]  }
  0xa6   : > { %s545_s23 = sshll.u32 %s8499_s4, 4  ;;  %s574_s16 = sshll.u32 %s8500_s22, 4  ;;  %s546_s23 = int_to_ptr.vmem [resolvable:$true] %s545_s23  ;;  %s575_s16 = int_to_ptr.vmem [resolvable:$true] %s574_s16 }
  0xa7   : > { %s8347_s25 = scalar_lea.hbm %s9476_s8, 1792 }
  0xa8   : > { %p8348_p2 = scmp.ne.s32.totalorder %s9476_s8, %s8347_s25  ;;  %p8354_p0 = scmp.lt.u32.totalorder %s8347_s25, %s9476_s8 }
  0xaa   : > { %p8350_p3 = pnand %p8348_p2, %p8648_p7 }
  0xac   : > { %p8351_p13 = pneg %p8350_p3 }
  0xae   : > { %p8356_p1 = pnand %p8354_p0, %p8351_p13 }
  0xb0   : > { %8359 = shalt.err (!%p8356_p1)
}
  0xb1   : > { %s8360_s19 = scalar_lea.vmem %s546_s23, 1792  ;;  %p8368_p9 = scmp.lt.s32.totalorder %s546_s23, %s546_s23 }
  0xb2   : > { %p8361_p4 = scmp.ne.s32.totalorder %s546_s23, %s8360_s19  ;;  %p8369_p10 = scmp.lt.s32.totalorder %s8360_s19, %s8360_s19 }
  0xb4   : > { %p8363_p6 = pnand %p8361_p4, %p8648_p7  ;;  %p8370_p11 = por %p8369_p10, %p8368_p9 }
  0xb6   : > { %p8364_p8 = pneg %p8363_p6 }
  0xb8   : > { %p8371_p12 = pnand %p8370_p11, %p8364_p8 }
  0xba   : > { %8374 = shalt.err (!%p8371_p12)
}
  0xbb   : > { %7962 = dma.hbm_to_vmem [thread:$0]  (!%p8632_p5), %s9476_s8, 1792, %s546_s23, [#allocation9], %s8495_s29, %s8495_s29, %s8496_s0  }
  0xbc   : > { %s8375_s30 = scalar_lea.hbm %s9479_s11, 3584 }
  0xbd   : > { %p8376_p2 = scmp.ne.s32.totalorder %s9479_s11, %s8375_s30  ;;  %p8382_p0 = scmp.lt.u32.totalorder %s8375_s30, %s9479_s11 }
  0xbf   : > { %p8378_p3 = pnand %p8376_p2, %p8648_p7 }
  0xc1   : > { %p8379_p13 = pneg %p8378_p3 }
  0xc3   : > { %p8384_p1 = pnand %p8382_p0, %p8379_p13 }
  0xc5   : > { %8387 = shalt.err (!%p8384_p1)
}
  0xc6   : > { %s8388_s15 = scalar_lea.vmem %s575_s16, 3584  ;;  %p8396_p9 = scmp.lt.s32.totalorder %s575_s16, %s575_s16 }
  0xc7   : > { %p8389_p4 = scmp.ne.s32.totalorder %s575_s16, %s8388_s15  ;;  %p8397_p10 = scmp.lt.s32.totalorder %s8388_s15, %s8388_s15 }
  0xc9   : > { %p8391_p6 = pnand %p8389_p4, %p8648_p7  ;;  %p8398_p11 = por %p8397_p10, %p8396_p9 }
  0xcb   : > { %p8392_p8 = pneg %p8391_p6 }
  0xcd   : > { %p8399_p12 = pnand %p8398_p11, %p8392_p8 }
  0xcf   : > { %8402 = shalt.err (!%p8399_p12)
}
  0xd0   : > { %7968 = dma.hbm_to_vmem [thread:$0]  (!%p8632_p5), %s9479_s11, 3584, %s575_s16, [#allocation12], %s8495_s29, %s8495_s29, %s8496_s0  }
  0xd1   : > { %s8501_s27 = smov [#allocation16]   ;;  %s8502_s22 = smov [#allocation17]  }
  0xd2   : > { %s603_s4 = sshll.u32 %s8501_s27, 4  ;;  %s622_s20 = sshll.u32 %s8502_s22, 4  ;;  %s604_s4 = int_to_ptr.vmem [resolvable:$true] %s603_s4  ;;  %s623_s20 = int_to_ptr.vmem [resolvable:$true] %s622_s20 }
  0xd3   : > { %s8403_s26 = scalar_lea.hbm %s9482_s14, 1792 }
  0xd4   : > { %p8404_p2 = scmp.ne.s32.totalorder %s9482_s14, %s8403_s26  ;;  %p8410_p0 = scmp.lt.u32.totalorder %s8403_s26, %s9482_s14 }
  0xd6   : > { %p8406_p3 = pnand %p8404_p2, %p8648_p7 }
  0xd8   : > { %p8407_p13 = pneg %p8406_p3 }
  0xda   : > { %p8412_p1 = pnand %p8410_p0, %p8407_p13 }
  0xdc   : > { %8415 = shalt.err (!%p8412_p1)
}
  0xdd   : > { %s8416_s16 = scalar_lea.vmem %s604_s4, 1792  ;;  %p8424_p9 = scmp.lt.s32.totalorder %s604_s4, %s604_s4 }
  0xde   : > { %p8417_p4 = scmp.ne.s32.totalorder %s604_s4, %s8416_s16  ;;  %p8425_p10 = scmp.lt.s32.totalorder %s8416_s16, %s8416_s16 }
  0xe0   : > { %p8419_p6 = pnand %p8417_p4, %p8648_p7  ;;  %p8426_p11 = por %p8425_p10, %p8424_p9 }
  0xe2   : > { %p8420_p8 = pneg %p8419_p6 }
  0xe4   : > { %p8427_p12 = pnand %p8426_p11, %p8420_p8 }
  0xe6   : > { %8430 = shalt.err (!%p8427_p12)
}
  0xe7   : > { %7974 = dma.hbm_to_vmem [thread:$0]  (!%p8632_p5), %s9482_s14, 1792, %s604_s4, [#allocation15], %s8495_s29, %s8495_s29, %s8496_s0  }
  0xe8   : > { %s8431_s25 = scalar_lea.hbm %s9485_s17, 896 }
  0xe9   : > { %p8432_p2 = scmp.ne.s32.totalorder %s9485_s17, %s8431_s25  ;;  %p8438_p0 = scmp.lt.u32.totalorder %s8431_s25, %s9485_s17 }
  0xeb   : > { %p8434_p3 = pnand %p8432_p2, %p8648_p7 }
  0xed   : > { %p8435_p13 = pneg %p8434_p3 }
  0xef   : > { %p8440_p1 = pnand %p8438_p0, %p8435_p13 }
  0xf1   : > { %8443 = shalt.err (!%p8440_p1)
}
  0xf2   : > { %s8444_s23 = scalar_lea.vmem %s623_s20, 896  ;;  %p8452_p9 = scmp.lt.s32.totalorder %s623_s20, %s623_s20 }
  0xf3   : > { %p8445_p4 = scmp.ne.s32.totalorder %s623_s20, %s8444_s23  ;;  %p8453_p10 = scmp.lt.s32.totalorder %s8444_s23, %s8444_s23 }
  0xf5   : > { %p8447_p6 = pnand %p8445_p4, %p8648_p7  ;;  %p8454_p11 = por %p8453_p10, %p8452_p9 }
  0xf7   : > { %p8448_p8 = pneg %p8447_p6 }
  0xf9   : > { %p8455_p12 = pnand %p8454_p11, %p8448_p8 }
  0xfb   : > { %8458 = shalt.err (!%p8455_p12)
}
  0xfc   : > { %7977 = dma.hbm_to_vmem [thread:$0]  (!%p8632_p5), %s9485_s17, 896, %s623_s20, [#allocation18], %s8495_s29, %s8495_s29, %s8496_s0  }
  0xfd   : > { %p9508_p2 = scmp.ne.s32.totalorder %s9503_s18, 0 }
  0xfe   : > { %p9509_p7 = scmp.eq.s32.totalorder (!%p9508_p2), %s8615_s21, 0 }
  0xff   : > { %649 = sbr.rel (%p9508_p2) target bundleno = 5206 (0x1456), region = 96 }
 0x106   : > { %8464 = dma.done.wait (%p9509_p7), [#allocation4], 1792   ;;  %p9510_p3 = pmov %p9509_p7 }
 0x108   : > { %8466 = vsyncadd (%p9510_p3), [#allocation4], 4294965504  ;;  %p9511_p13 = pmov %p9510_p3 }
 0x109   : > { %p9512_p0 = pmov %p9510_p3 }
 0x10a   : > { %8468 = dma.done.wait (%p9511_p13), [#allocation6], 1792  }
 0x10b   : > { %8470 = vsyncadd (%p9512_p0), [#allocation6], 4294965504  ;;  %p9513_p1 = pmov %p9512_p0 }
 0x10c   : > { %p9514_p5 = pmov %p9512_p0 }
 0x10d   : > { %8472 = dma.done.wait (%p9513_p1), [#allocation9], 2240  }
 0x10e   : > { %8474 = vsyncadd (%p9514_p5), [#allocation9], 4294965056  ;;  %p9515_p4 = pmov %p9512_p0 }
 0x10f   : > { %p9516_p6 = pmov %p9512_p0 }
 0x110   : > { %8476 = dma.done.wait (%p9515_p4), [#allocation12], 4480  }
 0x111   : > { %8478 = vsyncadd (%p9516_p6), [#allocation12], 4294962816  ;;  %p9517_p8 = pmov %p9512_p0 }
 0x112   : > { %p9518_p9 = pmov %p9512_p0 }
 0x113   : > { %8480 = dma.done.wait (%p9517_p8), [#allocation15], 3584  }
 0x114   : > { %8482 = vsyncadd (%p9518_p9), [#allocation15], 4294963712  ;;  %p9519_p10 = pmov %p9512_p0 }
 0x115   : > { %p9520_p11 = pmov %p9512_p0 }
 0x116   : > { %8484 = dma.done.wait (%p9519_p10), [#allocation18], 896  }
 0x117   : > { %8486 = vsyncadd (%p9520_p11), [#allocation18], 4294966400  ;;  %p741_p12 = scmp.lt.s32.totalorder %s8615_s21, 1  ;;  %v8503_v1 = vmov 0   ;;  %s9521_s29 = sld [smem:[#allocation26_spill]]  ;;  %vm828_vm0 = vcmask 523264   ;;  %v788_v16 = vlaneseq }
 0x118   : > { %8021 = vset.pattern.permute.xlu0 %v8503_v1  ;;  %8022 = vset.pattern.permute.xlu1 %v8503_v1  ;;  %v8023_v14 = vld [vmem:[#allocation3] sm:$0xff]   ;;  %v8033_v15 = vld [vmem:[#allocation3 + $0x10] sm:$0xff]   ;;  %s9522_s27 = sld [smem:[#allocation28_spill]]  ;;  %v8024_v48 = vld [vmem:[#allocation3 + $0x8] sm:$0xff]   ;;  %vm8505_vm1 = vmmov 0   ;;  %s9523_s20 = sld [smem:[#allocation29_spill]] }
 0x119   : > { %s9529_s21 = smov (!%p741_p12, %s8615_s21), 1  ;;  %7173 = vmatprep.mubr.msk.bf16.mxu0 %vm828_vm0, %v8023_v14  ;;  %7161 = vmatprep.mubr.msk.bf16.mxu1 %vm828_vm0, %v8033_v15  ;;  %v789_v17 = vshrl.u32 %v788_v16, 7  ;;  %v8034_v49 = vld [vmem:[#allocation3 + $0x18] sm:$0xff]   ;;  %v8025_v50 = vld [vmem:[#allocation3 + $0x20] sm:$0xff]   ;;  %v8026_v58 = vld [vmem:[#allocation3 + $0x28] sm:$0xff]   ;;  %vm1408_vm2 = vcmask 261120  }
 0x11a   : > { %s6864_s18 = sshll.u32 %s9529_s21, 6  ;;  %v8027_v59 = vld [vmem:[#allocation3 + $0x30] sm:$0xff]   ;;  %vm1518_vm3 = vcmask 130048   ;;  %vm2931_vm4 = vcmask 1043456   ;;  %vm2927_vm5 = vcmask 64512   ;;  %s9524_s23 = sld [smem:[#allocation32_spill]] }
 0x11b   : > { %v8916_v20 = vsub.s32 0, %v789_v17  ;;  %v8032_v17 = vld [vmem:[#allocation3 + $0x58] sm:$0xff]   ;;  %s9526_s15 = sld [smem:[#allocation33_spill]]  ;;  %vm6331_vm6 = vcmask 7168  }
 0x11d   : > { %s745_s0 = scalar_lea.vmem %s9521_s29, %s6864_s18  ;;  %s9525_s29 = sld [smem:[#allocation31_spill]] }
 0x11e   : > { %v752_v2 = vld [vmem:[%s745_s0] sm:$0xff]  ;;  %v753_v3 = vld [vmem:[%s745_s0 + $0x8] sm:$0xff]  ;;  %v754_v7 = vld [vmem:[%s745_s0 + $0x10] sm:$0xff] }
 0x11f   : > { %v756_v4 = vld [vmem:[%s745_s0 + $0x20] sm:$0xff]  ;;  %v760_v5 = vpack.c.bf16 %v753_v3, %v752_v2  ;;  %v757_v6 = vld [vmem:[%s745_s0 + $0x28] sm:$0xff]  ;;  %v755_v8 = vld [vmem:[%s745_s0 + $0x18] sm:$0xff] }
 0x120   : > { %v762_v9 = vpack.c.bf16 %v757_v6, %v756_v4  ;;  %v758_v10 = vld [vmem:[%s745_s0 + $0x30] sm:$0xff]  ;;  %v759_v11 = vld [vmem:[%s745_s0 + $0x38] sm:$0xff]  ;;  %v761_v12 = vpack.c.bf16 %v755_v8, %v754_v7  ;;  %v6522_v18 = vld [vmem:[%s9522_s27 + $0x1] sm:$0x1] }
 0x121   : > { %767 = vperm.xlu0 %8021, %v760_v5   ;;  %v763_v13 = vpack.c.bf16 %v759_v11, %v758_v10  ;;  %v764_v19 = vld [vmem:[%s9522_s27] sm:$0x1]  ;;  %v803_v21 = vpack.i.b16 %v6522_v18, %v6522_v18  ;;  %v6551_v23 = vld [vmem:[%s9522_s27 + $0x6] sm:$0x1]  ;;  %v6531_v33 = vld [vmem:[%s9522_s27 + $0x2] sm:$0x1]  ;;  %s750_s4 = scalar_lea.vmem %s9526_s15, %s6864_s18 }
 0x122   : > { %777 = vperm.xlu1 %8022, %v762_v9   ;;  %v786_v22 = vpack.i.b16 %v764_v19, %v764_v19  ;;  %v1300_v24 = vpack.i.b16 %v6551_v23, %v6551_v23  ;;  %v952_v41 = vpack.i.b16 %v6531_v33, %v6531_v33  ;;  %v6536_v52 = vld [vmem:[%s9522_s27 + $0x3] sm:$0x1]  ;;  %v6541_v61 = vld [vmem:[%s9522_s27 + $0x4] sm:$0x1]  ;;  %v8028_v3 = vld [vmem:[#allocation3 + $0x38] sm:$0xff]  }
 0x123   : > { %v808_v25 = vrot.slane %v803_v21, %v8916_v20  ;;  %v1039_v54 = vpack.i.b16 %v6536_v52, %v6536_v52  ;;  %v1126_v63 = vpack.i.b16 %v6541_v61, %v6541_v61  ;;  %v8029_v4 = vld [vmem:[#allocation3 + $0x40] sm:$0xff]   ;;  %v8036_v19 = vld [vmem:[#allocation3 + $0x68] sm:$0xff]  }
 0x124   : > { %v791_v26 = vrot.slane %v786_v22, %v8916_v20  ;;  %v1305_v28 = vrot.slane %v1300_v24, %v8916_v20  ;;  %v957_v46 = vrot.slane %v952_v41, %v8916_v20  ;;  %v6546_v6 = vld [vmem:[%s9522_s27 + $0x5] sm:$0x1] }
 0x125   : > { %772 = vperm.xlu0 %8021, %v761_v12   ;;  %v1044_v56 = vrot.slane %v1039_v54, %v8916_v20  ;;  %v1131_v1 = vrot.slane %v1126_v63, %v8916_v20  ;;  %v1213_v8 = vpack.i.b16 %v6546_v6, %v6546_v6  ;;  %v8030_v12 = vld [vmem:[#allocation3 + $0x48] sm:$0xff]   ;;  %v8035_v18 = vld [vmem:[#allocation3 + $0x60] sm:$0xff]  }
 0x126   : > { %782 = vperm.xlu1 %8022, %v763_v13   ;;  %v8031_v13 = vld [vmem:[#allocation3 + $0x50] sm:$0xff]  }
 0x127   : > { %v1218_v10 = vrot.slane %v1213_v8, %v8916_v20  ;;  %v8504_v20 = vmov 0.0  }
 0x1a0   : > { %v8923_v27 = vpop.permute.xlu0 %767 }
 0x1a1   : > { %v809_v29 = vmul.bf16 %v808_v25, %v8923_v27  ;;  %v792_v30 = vmul.bf16 %v791_v26, %v8923_v27  ;;  %v8928_v31 = vpop.permute.xlu1 %777  ;;  %v8936_v34 = vmul.bf16 %v1305_v28, %v8923_v27  ;;  %v958_v47 = vmul.bf16 %v957_v46, %v8923_v27 }
 0x1a2   : > { %v8939_v35 = vmul.bf16 %v1305_v28, %v8928_v31  ;;  %v811_v39 = vmul.bf16 %v808_v25, %v8928_v31  ;;  %v794_v40 = vmul.bf16 %v791_v26, %v8928_v31  ;;  %v960_v53 = vmul.bf16 %v957_v46, %v8928_v31 }
 0x1a3   : > { %7153 = vmatprep.subr.bf16.mxu1 %v809_v29  ;;  %7165 = vmatprep.subr.bf16.mxu0 %v792_v30  ;;  %v1045_v57 = vmul.bf16 %v1044_v56, %v8923_v27  ;;  %v1047_v62 = vmul.bf16 %v1044_v56, %v8928_v31  ;;  %v1132_v2 = vmul.bf16 %v1131_v1, %v8923_v27 }
 0x1a4   : > { %7154 = vmatpush3.bf16.msra.mxu1 %v809_v29  ;;  %7166 = vmatpush3.bf16.msra.mxu0 %v792_v30  ;;  %v8930_v32 = vpop.permute.xlu0 %772  ;;  %v1134_v7 = vmul.bf16 %v1131_v1, %v8928_v31  ;;  %v1219_v11 = vmul.bf16 %v1218_v10, %v8923_v27  ;;  %v1221_v15 = vmul.bf16 %v1218_v10, %v8928_v31 }
 0x1a5   : > { %v810_v36 = vmul.bf16 %v808_v25, %v8930_v32  ;;  %v793_v37 = vmul.bf16 %v791_v26, %v8930_v32  ;;  %v8943_v38 = vpop.permute.xlu1 %782  ;;  %v8948_v42 = vmul.bf16 %v1305_v28, %v8930_v32  ;;  %v959_v51 = vmul.bf16 %v957_v46, %v8930_v32 }
 0x1a6   : > { %v8951_v43 = vmul.bf16 %v1305_v28, %v8943_v38  ;;  %v812_v44 = vmul.bf16 %v808_v25, %v8943_v38  ;;  %v795_v45 = vmul.bf16 %v791_v26, %v8943_v38  ;;  %v961_v55 = vmul.bf16 %v957_v46, %v8943_v38  ;;  %v6556_v26 = vld [vmem:[%s9523_s20] ss:$0 sm:$0xff]  ;;  %v8039_v46 = vld [vmem:[#allocation7 + $0x8] sm:$0xff]  }
 0x1a7   : > { %7155 = vmatprep.subr.bf16.mxu1 %v810_v36  ;;  %7167 = vmatprep.subr.bf16.mxu0 %v793_v37  ;;  %v1046_v60 = vmul.bf16 %v1044_v56, %v8930_v32  ;;  %v1048_v0 = vmul.bf16 %v1044_v56, %v8943_v38  ;;  %v1133_v5 = vmul.bf16 %v1131_v1, %v8930_v32 }
 0x1a8   : > { %7156 = vmatpush3.bf16.msra.mxu1 %v810_v36  ;;  %7168 = vmatpush3.bf16.msra.mxu0 %v793_v37  ;;  %v1135_v9 = vmul.bf16 %v1131_v1, %v8943_v38  ;;  %v1220_v14 = vmul.bf16 %v1218_v10, %v8930_v32  ;;  %v1222_v16 = vmul.bf16 %v1218_v10, %v8943_v38 }
 0x1a9   : > { %7157 = vmatprep.subr.bf16.mxu1 %v811_v39  ;;  %7169 = vmatprep.subr.bf16.mxu0 %v794_v40 }
 0x1ac   : > { %7158 = vmatpush3.bf16.msra.mxu1 %v811_v39  ;;  %7170 = vmatpush3.bf16.msra.mxu0 %v794_v40 }
 0x1ad   : > { %7159 = vmatprep.subr.bf16.mxu1 %v812_v44  ;;  %7171 = vmatprep.subr.bf16.mxu0 %v795_v45 }
 0x1b0   : > { %7160 = vmatpush3.bf16.msra.mxu1 %v812_v44  ;;  %7172 = vmatpush3.bf16.msra.mxu0 %v795_v45  ;;  %v8037_v44 = vld [vmem:[#allocation5] sm:$0xff]   ;;  %v8038_v45 = vld [vmem:[#allocation5 + $0x8] sm:$0xff]  }
 0x1b1   : > { %7177 = vmatprep.subr.bf16.mxu0 %v958_v47  ;;  %7237 = vmatprep.subr.bf16.mxu1 %v8504_v20 }
 0x1b3   : > { %7174 = vmatmul.mubr.msk.bf16.vlgmr.msra.gmra.mrb[0].mxu0 %vm828_vm0, %v8024_v48  ;;  %7162 = vmatmul.mubr.msk.bf16.vlgmr.msra.gmra.mrb[0].mxu1 %vm828_vm0, %v8034_v49 }
 0x1b4   : > { %7178 = vmatpush3.bf16.msra.mxu0 %v958_v47  ;;  %7185 = vmatprep.mubr.msk.bf16.mxu0 %vm828_vm0, %v8025_v50 }
 0x1b5   : > { %7179 = vmatprep.subr.bf16.mxu0 %v959_v51  ;;  %7241 = vmatprep.mubr.msk.bf16.mxu1 %vm8505_vm1, %v8504_v20 }
 0x1b8   : > { %7180 = vmatpush3.bf16.msra.mxu0 %v959_v51 }
 0x1b9   : > { %7181 = vmatprep.subr.bf16.mxu0 %v960_v53 }
 0x1bc   : > { %7182 = vmatpush3.bf16.msra.mxu0 %v960_v53 }
 0x1bd   : > { %7183 = vmatprep.subr.bf16.mxu0 %v961_v55 }
 0x1c0   : > { %7184 = vmatpush3.bf16.msra.mxu0 %v961_v55  ;;  %v8040_v55 = vld [vmem:[#allocation7] sm:$0xff]  }
 0x1c1   : > { %7189 = vmatprep.subr.bf16.mxu0 %v1045_v57 }
 0x1c3   : > { %7186 = vmatmul.mubr.msk.bf16.vlgmr.msra.gmra.mrb[0].mxu0 %vm828_vm0, %v8026_v58  ;;  %v8041_v58 = vld [vmem:[#allocation5 + $0x10] sm:$0xff]  }
 0x1c4   : > { %7190 = vmatpush3.bf16.msra.mxu0 %v1045_v57  ;;  %7197 = vmatprep.mubr.msk.bf16.mxu0 %vm828_vm0, %v8027_v59  ;;  %v8042_v59 = vld [vmem:[#allocation7 + $0x10] sm:$0xff]  }
 0x1c5   : > { %7191 = vmatprep.subr.bf16.mxu0 %v1046_v60 }
 0x1c8   : > { %7192 = vmatpush3.bf16.msra.mxu0 %v1046_v60 }
 0x1c9   : > { %7193 = vmatprep.subr.bf16.mxu0 %v1047_v62 }
 0x1cc   : > { %7194 = vmatpush3.bf16.msra.mxu0 %v1047_v62 }
 0x1cd   : > { %7195 = vmatprep.subr.bf16.mxu0 %v1048_v0 }
 0x1d0   : > { %7196 = vmatpush3.bf16.msra.mxu0 %v1048_v0 }
 0x1d1   : > { %7201 = vmatprep.subr.bf16.mxu0 %v1132_v2 }
 0x1d3   : > { %7198 = vmatmul.mubr.msk.bf16.vlgmr.msra.gmra.mrb[0].mxu0 %vm828_vm0, %v8028_v3 }
 0x1d4   : > { %7202 = vmatpush3.bf16.msra.mxu0 %v1132_v2  ;;  %7209 = vmatprep.mubr.msk.bf16.mxu0 %vm828_vm0, %v8029_v4 }
 0x1d5   : > { %7203 = vmatprep.subr.bf16.mxu0 %v1133_v5 }
 0x1d8   : > { %7204 = vmatpush3.bf16.msra.mxu0 %v1133_v5 }
 0x1d9   : > { %7205 = vmatprep.subr.bf16.mxu0 %v1134_v7 }
 0x1dc   : > { %7206 = vmatpush3.bf16.msra.mxu0 %v1134_v7 }
 0x1dd   : > { %7207 = vmatprep.subr.bf16.mxu0 %v1135_v9 }
 0x1e0   : > { %7208 = vmatpush3.bf16.msra.mxu0 %v1135_v9 }
 0x1e1   : > { %7213 = vmatprep.subr.bf16.mxu0 %v1219_v11 }
 0x1e3   : > { %7210 = vmatmul.mubr.msk.bf16.vlgmr.msra.gmra.mrb[0].mxu0 %vm828_vm0, %v8030_v12  ;;  %v8044_v12 = vld [vmem:[#allocation7 + $0x18] sm:$0xff]  }
 0x1e4   : > { %7214 = vmatpush3.bf16.msra.mxu0 %v1219_v11  ;;  %7221 = vmatprep.mubr.msk.bf16.mxu0 %vm828_vm0, %v8031_v13  ;;  %v8043_v11 = vld [vmem:[#allocation5 + $0x18] sm:$0xff]  }
 0x1e5   : > { %7215 = vmatprep.subr.bf16.mxu0 %v1220_v14 }
 0x1e8   : > { %7216 = vmatpush3.bf16.msra.mxu0 %v1220_v14 }
 0x1e9   : > { %7217 = vmatprep.subr.bf16.mxu0 %v1221_v15 }
 0x1ec   : > { %7218 = vmatpush3.bf16.msra.mxu0 %v1221_v15 }
 0x1ed   : > { %7219 = vmatprep.subr.bf16.mxu0 %v1222_v16 }
 0x1f0   : > { %7220 = vmatpush3.bf16.msra.mxu0 %v1222_v16 }
 0x1f1   : > { %7225 = vmatprep.subr.bf16.mxu0 %v8936_v34 }
 0x1f3   : > { %7222 = vmatmul.mubr.msk.bf16.vlgmr.msra.gmra.mrb[0].mxu0 %vm828_vm0, %v8032_v17 }
 0x1f4   : > { %7226 = vmatpush3.bf16.msra.mxu0 %v8936_v34  ;;  %7233 = vmatprep.mubr.msk.bf16.mxu0 %vm828_vm0, %v8035_v18 }
 0x1f5   : > { %7227 = vmatprep.subr.bf16.mxu0 %v8948_v42 }
 0x1f8   : > { %7228 = vmatpush3.bf16.msra.mxu0 %v8948_v42 }
 0x1f9   : > { %7229 = vmatprep.subr.bf16.mxu0 %v8939_v35 }
 0x1fc   : > { %7230 = vmatpush3.bf16.msra.mxu0 %v8939_v35 }
 0x1fd   : > { %7231 = vmatprep.subr.bf16.mxu0 %v8951_v43 }
 0x200   : > { %7232 = vmatpush3.bf16.msra.mxu0 %v8951_v43 }
 0x201   : > { %7335 = vmatprep.subr.bf16.mxu0 %v8504_v20 }
 0x203   : > { %7234 = vmatmul.mubr.msk.bf16.vlgmr.msra.gmra.mrb[0].mxu0 %vm828_vm0, %v8036_v19 }
 0x204   : > { %7337 = vmatprep.mubr.msk.bf16.mxu0 %vm8505_vm1, %v8504_v20 }
 0x286   : > { %v7163_v21 = vpop.f32.mrb[0].mxu1 }
 0x287   : > { %v869_v22 = vpop.f32.mrb[1].mxu1 }
 0x288   : > { %v7164_v23 = vpop.f32.mrb[2].mxu1 }
 0x289   : > { %v872_v24 = vpop.f32.mrb[3].mxu1 }
 0x2d6   : > { %v7235_v25 = vpop.f32.mrb[0].mxu0 }
 0x2d7   : > { %v7811_v27 = vadd.f32 %v7235_v25, %v7163_v21  ;;  %v1365_v28 = vpop.f32.mrb[1].mxu0  ;;  %v8045_v25 = vld [vmem:[#allocation5 + $0x20] sm:$0xff]  }
 0x2d8   : > { %v7812_v29 = vadd.f32 %v1365_v28, %v869_v22  ;;  %v7236_v30 = vpop.f32.mrb[2].mxu0 }
 0x2d9   : > { %v1393_v31 = vadd.f32 %v7811_v27, %v6556_v26  ;;  %v7813_v32 = vadd.f32 %v7236_v30, %v7164_v23  ;;  %v1368_v33 = vpop.f32.mrb[3].mxu0 }
 0x2da   : > { %v1391_v34 = vadd.f32 %v7812_v29, %v6556_v26  ;;  %v7814_v35 = vadd.f32 %v1368_v33, %v872_v24 }
 0x2db   : > { %v1394_v36 = vadd.f32 %v7813_v32, %v6556_v26  ;;  %v1397_v38 = vmax.f32 %v1393_v31, 0.0 }
 0x2dc   : > { %v1392_v37 = vadd.f32 %v7814_v35, %v6556_v26  ;;  %v1395_v40 = vmax.f32 %v1391_v34, 0.0  ;;  %v8046_v26 = vld [vmem:[#allocation7 + $0x20] sm:$0xff]  }
 0x2dd   : > { %v1398_v39 = vmax.f32 %v1394_v36, 0.0 }
 0x2de   : > { %v1396_v41 = vmax.f32 %v1392_v37, 0.0 }
 0x2df   : > { %v9013_v42 = vpack.c.bf16 %v1398_v39, %v1397_v38  ;;  %v8047_v38 = vld [vmem:[#allocation5 + $0x28] sm:$0xff]   ;;  %v8048_v39 = vld [vmem:[#allocation7 + $0x28] sm:$0xff]  }
 0x2e0   : > { %v9015_v43 = vpack.c.bf16 %v1396_v41, %v1395_v40 }
 0x2e2   : > { %7238 = vmatpush3.bf16.msra.mxu1 %v9015_v43 }
 0x2e3   : > { %7239 = vmatprep.subr.bf16.mxu1 %v8504_v20 }
 0x2e6   : > { %7240 = vmatpush3.bf16.msra.mxu1 %v9013_v42 }
 0x2e7   : > { %7245 = vmatprep.subr.bf16.mxu1 %v8504_v20 }
 0x2e9   : > { %7242 = vmatmul.mubr.msk.bf16.vlgmr.msra.gmra.mrb[4].mxu1 %vm1408_vm2, %v8037_v44 }
 0x2ea   : > { %7246 = vmatpush3.bf16.msra.mxu1 %v9015_v43  ;;  %7249 = vmatprep.mubr.msk.bf16.mxu1 %vm8505_vm1, %v8504_v20 }
 0x2eb   : > { %7247 = vmatprep.subr.bf16.mxu1 %v8504_v20 }
 0x2ee   : > { %7248 = vmatpush3.bf16.msra.mxu1 %v9013_v42 }
 0x2ef   : > { %7253 = vmatprep.subr.bf16.mxu1 %v8504_v20 }
 0x2f1   : > { %7250 = vmatmul.mubr.msk.bf16.vlgmr.msra.gmra.mrb[8].mxu1 %vm1408_vm2, %v8038_v45 }
 0x2f2   : > { %7255 = vmatprep.mubr.msk.bf16.mxu1 %vm8505_vm1, %v8504_v20  ;;  %7254 = vmatpush3.bf16.msra.mxu1 %v8039_v46 }
 0x2f3   : > { %7259 = vmatprep.subr.bf16.mxu1 %v8504_v20 }
 0x3bc   : > { %v1446_v47 = vpop.f32.mrb[4].mxu1 }
 0x3bd   : > { %v7243_v48 = vpop.f32.mrb[5].mxu1 }
 0x3be   : > { %v1449_v49 = vpop.f32.mrb[6].mxu1 }
 0x3bf   : > { %v1453_v50 = vpack.c.bf16 %v1449_v49, %v1446_v47  ;;  %v7244_v51 = vpop.f32.mrb[7].mxu1 }
 0x3c4   : > { %v1501_v52 = vpop.f32.mrb[8].mxu1 }
 0x3c5   : > { %v7251_v53 = vpop.f32.mrb[9].mxu1 }
 0x3c6   : > { %v1504_v54 = vpop.f32.mrb[10].mxu1  ;;  %v8049_v53 = vld [vmem:[#allocation5 + $0x30] sm:$0xff]  }
 0x3c7   : > { %v1508_v56 = vpack.c.bf16 %v1504_v54, %v1501_v52  ;;  %v7252_v57 = vpop.f32.mrb[11].mxu1  ;;  %v8050_v54 = vld [vmem:[#allocation7 + $0x30] sm:$0xff]  }
 0x3c9   : > { %7256 = vmatmul.mubr.msk.bf16.vlgmr.msra.gmra.mrb[12].mxu1 %vm1518_vm3, %v1508_v56 }
 0x3ca   : > { %7260 = vmatpush3.bf16.msra.mxu1 %v8040_v55  ;;  %7261 = vmatprep.mubr.msk.bf16.mxu1 %vm8505_vm1, %v8504_v20 }
 0x3cb   : > { %7265 = vmatprep.subr.bf16.mxu1 %v8504_v20 }
 0x3d1   : > { %7262 = vmatmul.mubr.msk.bf16.vlgmr.msra.gmra.mrb[16].mxu1 %vm1518_vm3, %v1453_v50 }
 0x3d2   : > { %7266 = vmatpush3.bf16.msra.mxu1 %v9015_v43  ;;  %7269 = vmatprep.mubr.msk.bf16.mxu1 %vm8505_vm1, %v8504_v20 }
 0x3d3   : > { %7267 = vmatprep.subr.bf16.mxu1 %v8504_v20 }
 0x3d6   : > { %7268 = vmatpush3.bf16.msra.mxu1 %v9013_v42 }
 0x3d7   : > { %7273 = vmatprep.subr.bf16.mxu1 %v8504_v20 }
 0x3d9   : > { %7270 = vmatmul.mubr.msk.bf16.vlgmr.msra.gmra.mrb[20].mxu1 %vm1408_vm2, %v8041_v58 }
 0x3da   : > { %7275 = vmatprep.mubr.msk.bf16.mxu1 %vm8505_vm1, %v8504_v20  ;;  %7274 = vmatpush3.bf16.msra.mxu1 %v8042_v59 }
 0x3db   : > { %7279 = vmatprep.subr.bf16.mxu1 %v8504_v20 }
 0x49c   : > { %v1556_v60 = vpop.f32.mrb[12].mxu1 }
 0x49d   : > { %v7257_v61 = vpop.f32.mrb[13].mxu1 }
 0x49e   : > { %v1559_v62 = vpop.f32.mrb[14].mxu1 }
 0x49f   : > { %v7258_v63 = vpop.f32.mrb[15].mxu1 }
 0x4a4   : > { %v1606_v0 = vpop.f32.mrb[16].mxu1 }
 0x4a5   : > { %v1607_v1 = vadd.f32 %v1606_v0, %v1556_v60  ;;  %v7263_v2 = vpop.f32.mrb[17].mxu1 }
 0x4a6   : > { %v1609_v3 = vpop.f32.mrb[18].mxu1 }
 0x4a7   : > { %v1610_v4 = vadd.f32 %v1609_v3, %v1559_v62  ;;  %v7264_v5 = vpop.f32.mrb[19].mxu1 }
 0x4ac   : > { %v1658_v6 = vpop.f32.mrb[20].mxu1 }
 0x4ad   : > { %v7271_v7 = vpop.f32.mrb[21].mxu1 }
 0x4ae   : > { %v1661_v8 = vpop.f32.mrb[22].mxu1 }
 0x4af   : > { %v1665_v9 = vpack.c.bf16 %v1661_v8, %v1658_v6  ;;  %v7272_v10 = vpop.f32.mrb[23].mxu1 }
 0x4b1   : > { %7276 = vmatmul.mubr.msk.bf16.vlgmr.msra.gmra.mrb[24].mxu1 %vm1518_vm3, %v1665_v9 }
 0x4b2   : > { %7280 = vmatpush3.bf16.msra.mxu1 %v9015_v43  ;;  %7283 = vmatprep.mubr.msk.bf16.mxu1 %vm8505_vm1, %v8504_v20 }
 0x4b3   : > { %7281 = vmatprep.subr.bf16.mxu1 %v8504_v20 }
 0x4b6   : > { %7282 = vmatpush3.bf16.msra.mxu1 %v9013_v42 }
 0x4b7   : > { %7287 = vmatprep.subr.bf16.mxu1 %v8504_v20 }
 0x4b9   : > { %7284 = vmatmul.mubr.msk.bf16.vlgmr.msra.gmra.mrb[28].mxu1 %vm1408_vm2, %v8043_v11 }
 0x4ba   : > { %7289 = vmatprep.mubr.msk.bf16.mxu1 %vm8505_vm1, %v8504_v20  ;;  %7288 = vmatpush3.bf16.msra.mxu1 %v8044_v12  ;;  %v2165_v12 = vld [vmem:[#allocation8] sm:$0xf] }
 0x4bb   : > { %7293 = vmatprep.subr.bf16.mxu1 %v8504_v20 }
 0x584   : > { %v1712_v13 = vpop.f32.mrb[24].mxu1 }
 0x585   : > { %v1719_v14 = vadd.f32 %v1712_v13, %v1607_v1  ;;  %v7277_v15 = vpop.f32.mrb[25].mxu1  ;;  %v6585_v1 = vld [vmem:[%s9474_s6] ss:$0 sm:$0xff]  ;;  %v2215_v13 = vld [vmem:[#allocation8 + $0x4] sm:$0xf] }
 0x586   : > { %v1715_v16 = vpop.f32.mrb[26].mxu1  ;;  %v8052_v15 = vld [vmem:[#allocation10] sm:$0xff]  }
 0x587   : > { %v1720_v17 = vadd.f32 %v1715_v16, %v1610_v4  ;;  %v7278_v18 = vpop.f32.mrb[27].mxu1  ;;  %v8053_v16 = vld [vmem:[#allocation10 + $0x18] sm:$0xff]  }
 0x58c   : > { %v1766_v19 = vpop.f32.mrb[28].mxu1 }
 0x58d   : > { %v7285_v21 = vpop.f32.mrb[29].mxu1 }
 0x58e   : > { %v1769_v22 = vpop.f32.mrb[30].mxu1 }
 0x58f   : > { %v1773_v23 = vpack.c.bf16 %v1769_v22, %v1766_v19  ;;  %v7286_v24 = vpop.f32.mrb[31].mxu1 }
 0x591   : > { %7290 = vmatmul.mubr.msk.bf16.vlgmr.msra.gmra.mrb[32].mxu1 %vm1518_vm3, %v1773_v23 }
 0x592   : > { %7294 = vmatpush3.bf16.msra.mxu1 %v9015_v43  ;;  %7297 = vmatprep.mubr.msk.bf16.mxu1 %vm8505_vm1, %v8504_v20 }
 0x593   : > { %7295 = vmatprep.subr.bf16.mxu1 %v8504_v20 }
 0x596   : > { %7296 = vmatpush3.bf16.msra.mxu1 %v9013_v42 }
 0x597   : > { %7301 = vmatprep.subr.bf16.mxu1 %v8504_v20 }
 0x599   : > { %7298 = vmatmul.mubr.msk.bf16.vlgmr.msra.gmra.mrb[36].mxu1 %vm1408_vm2, %v8045_v25 }
 0x59a   : > { %7303 = vmatprep.mubr.msk.bf16.mxu1 %vm8505_vm1, %v8504_v20  ;;  %7302 = vmatpush3.bf16.msra.mxu1 %v8046_v26 }
 0x59b   : > { %7307 = vmatprep.subr.bf16.mxu1 %v8504_v20 }
 0x664   : > { %v1820_v27 = vpop.f32.mrb[32].mxu1 }
 0x665   : > { %v1827_v28 = vadd.f32 %v1820_v27, %v1719_v14  ;;  %v7291_v29 = vpop.f32.mrb[33].mxu1  ;;  %v8051_v14 = vld [vmem:[#allocation10 + $0x10] sm:$0xff]  }
 0x666   : > { %v1823_v30 = vpop.f32.mrb[34].mxu1  ;;  %v2376_v29 = vld [vmem:[#allocation8 + $0x8] sm:$0xf] }
 0x667   : > { %v1828_v31 = vadd.f32 %v1823_v30, %v1720_v17  ;;  %v7292_v32 = vpop.f32.mrb[35].mxu1  ;;  %v8054_v17 = vld [vmem:[#allocation10 + $0x8] sm:$0xff]   ;;  %v2483_v30 = vld [vmem:[#allocation8 + $0xc] sm:$0xf] }
 0x668   : > { %v2697_v32 = vld [vmem:[#allocation8 + $0x14] sm:$0xf] }
 0x66c   : > { %v1874_v33 = vpop.f32.mrb[36].mxu1 }
 0x66d   : > { %v7299_v34 = vpop.f32.mrb[37].mxu1 }
 0x66e   : > { %v1877_v35 = vpop.f32.mrb[38].mxu1  ;;  %v8055_v34 = vld [vmem:[#allocation10 + $0x20] sm:$0xff]  }
 0x66f   : > { %v1881_v36 = vpack.c.bf16 %v1877_v35, %v1874_v33  ;;  %v7300_v37 = vpop.f32.mrb[39].mxu1  ;;  %v2804_v33 = vld [vmem:[#allocation8 + $0x18] sm:$0xf]  ;;  %v8056_v35 = vld [vmem:[#allocation10 + $0x28] sm:$0xff]  }
 0x671   : > { %7304 = vmatmul.mubr.msk.bf16.vlgmr.msra.gmra.mrb[40].mxu1 %vm1518_vm3, %v1881_v36 }
 0x672   : > { %7308 = vmatpush3.bf16.msra.mxu1 %v9015_v43  ;;  %7311 = vmatprep.mubr.msk.bf16.mxu1 %vm8505_vm1, %v8504_v20 }
 0x673   : > { %7309 = vmatprep.subr.bf16.mxu1 %v8504_v20 }
 0x676   : > { %7310 = vmatpush3.bf16.msra.mxu1 %v9013_v42 }
 0x677   : > { %7315 = vmatprep.subr.bf16.mxu1 %v8504_v20 }
 0x679   : > { %7312 = vmatmul.mubr.msk.bf16.vlgmr.msra.gmra.mrb[44].mxu1 %vm1408_vm2, %v8047_v38 }
 0x67a   : > { %7317 = vmatprep.mubr.msk.bf16.mxu1 %vm8505_vm1, %v8504_v20  ;;  %7316 = vmatpush3.bf16.msra.mxu1 %v8048_v39 }
 0x67b   : > { %7321 = vmatprep.subr.bf16.mxu1 %v8504_v20 }
 0x744   : > { %v1928_v40 = vpop.f32.mrb[40].mxu1 }
 0x745   : > { %v1935_v41 = vadd.f32 %v1928_v40, %v1827_v28  ;;  %v7305_v44 = vpop.f32.mrb[41].mxu1 }
 0x746   : > { %v1931_v45 = vpop.f32.mrb[42].mxu1 }
 0x747   : > { %v1936_v46 = vadd.f32 %v1931_v45, %v1828_v31  ;;  %v7306_v47 = vpop.f32.mrb[43].mxu1  ;;  %v2590_v31 = vld [vmem:[#allocation8 + $0x10] sm:$0xf] }
 0x74c   : > { %v1982_v48 = vpop.f32.mrb[44].mxu1 }
 0x74d   : > { %v7313_v49 = vpop.f32.mrb[45].mxu1 }
 0x74e   : > { %v1985_v50 = vpop.f32.mrb[46].mxu1 }
 0x74f   : > { %v1989_v51 = vpack.c.bf16 %v1985_v50, %v1982_v48  ;;  %v7314_v52 = vpop.f32.mrb[47].mxu1  ;;  %v8057_v48 = vld [vmem:[#allocation10 + $0x30] sm:$0xff]  }
 0x751   : > { %7318 = vmatmul.mubr.msk.bf16.vlgmr.msra.gmra.mrb[48].mxu1 %vm1518_vm3, %v1989_v51 }
 0x752   : > { %7322 = vmatpush3.bf16.msra.mxu1 %v9015_v43  ;;  %7325 = vmatprep.mubr.msk.bf16.mxu1 %vm8505_vm1, %v8504_v20 }
 0x753   : > { %7323 = vmatprep.subr.bf16.mxu1 %v8504_v20 }
 0x756   : > { %7324 = vmatpush3.bf16.msra.mxu1 %v9013_v42 }
 0x757   : > { %7329 = vmatprep.subr.bf16.mxu1 %v8504_v20 }
 0x759   : > { %7326 = vmatmul.mubr.msk.bf16.vlgmr.msra.gmra.mrb[52].mxu1 %vm1408_vm2, %v8049_v53  ;;  %v8058_v53 = vld [vmem:[#allocation10 + $0x38] sm:$0xff]  }
 0x75a   : > { %7331 = vmatprep.mubr.msk.bf16.mxu1 %vm8505_vm1, %v8504_v20  ;;  %7330 = vmatpush3.bf16.msra.mxu1 %v8050_v54 }
 0x75b   : > { %7341 = vmatprep.subr.bf16.mxu1 %v8504_v20 }
 0x824   : > { %v2036_v43 = vpop.f32.mrb[48].mxu1 }
 0x825   : > { %v2043_v55 = vadd.f32 %v2036_v43, %v1935_v41  ;;  %v7319_v56 = vpop.f32.mrb[49].mxu1  ;;  %v8059_v43 = vld [vmem:[#allocation10 + $0x40] sm:$0xff]  }
 0x826   : > { %v2039_v57 = vpop.f32.mrb[50].mxu1 }
 0x827   : > { %v2044_v58 = vadd.f32 %v2039_v57, %v1936_v46  ;;  %v7320_v59 = vpop.f32.mrb[51].mxu1 }
 0x828   : > { %v8060_v59 = vld [vmem:[#allocation10 + $0x48] sm:$0xff]  }
 0x82c   : > { %v2090_v60 = vpop.f32.mrb[52].mxu1 }
 0x82d   : > { %v7327_v61 = vpop.f32.mrb[53].mxu1 }
 0x82e   : > { %v2093_v42 = vpop.f32.mrb[54].mxu1  ;;  %v8061_v61 = vld [vmem:[#allocation10 + $0x50] sm:$0xff]  }
 0x82f   : > { %v2097_v62 = vpack.c.bf16 %v2093_v42, %v2090_v60  ;;  %v7328_v63 = vpop.f32.mrb[55].mxu1 }
 0x831   : > { %7332 = vmatmul.mubr.msk.bf16.vlgmr.msra.gmra.mrb[56].mxu1 %vm1518_vm3, %v2097_v62 }
 0x832   : > { %7343 = vmatprep.mubr.msk.bf16.mxu1 %vm8505_vm1, %v8504_v20 }
 0x904   : > { %v2144_v0 = vpop.f32.mrb[56].mxu1 }
 0x905   : > { %v2151_v2 = vadd.f32 %v2144_v0, %v2043_v55  ;;  %v7333_v3 = vpop.f32.mrb[57].mxu1 }
 0x906   : > { %v2147_v4 = vpop.f32.mrb[58].mxu1  ;;  %v8063_v3 = vld [vmem:[#allocation10 + $0x60] sm:$0xff]  }
 0x907   : > { %v2160_v5 = vadd.f32 %v6585_v1, %v2151_v2  ;;  %v2152_v6 = vadd.f32 %v2147_v4, %v2044_v58  ;;  %v7334_v7 = vpop.f32.mrb[59].mxu1 }
 0x909   : > { %v2161_v8 = vadd.f32 %v6585_v1, %v2152_v6  ;;  %v2162_v9 = vmax.f32 %v2160_v5, 0.0  ;;  %v8062_v1 = vld [vmem:[#allocation10 + $0x58] sm:$0xff]  }
 0x90b   : > { %v2163_v10 = vmax.f32 %v2161_v8, 0.0  ;;  %v8064_v8 = vld [vmem:[#allocation10 + $0x68] sm:$0xff]  }
 0x90d   : > { %v2164_v11 = vpack.c.bf16 %v2163_v10, %v2162_v9 }
 0x90f   : > { %7336 = vmatpush3.bf16.msra.mxu0 %v2164_v11  ;;  %7342 = vmatpush3.bf16.msra.mxu1 %v2164_v11 }
 0x910   : > { %7347 = vmatprep.subr.bf16.mxu0 %v8504_v20  ;;  %7355 = vmatprep.subr.bf16.mxu1 %v8504_v20 }
 0x912   : > { %7338 = vmatmul.mubr.msk.bf16.vlgmr.msra.gmra.mrb[4].mxu0 %vm1518_vm3, %v2165_v12  ;;  %7344 = vmatmul.mubr.msk.bf16.vlgmr.msra.gmra.mrb[60].mxu1 %vm1518_vm3, %v2215_v13 }
 0x913   : > { %7348 = vmatpush3.bf16.msra.mxu0 %v8051_v14  ;;  %7356 = vmatpush3.bf16.msra.mxu1 %v8052_v15 }
 0x914   : > { %7349 = vmatprep.subr.bf16.mxu0 %v8504_v20  ;;  %7357 = vmatprep.subr.bf16.mxu1 %v8504_v20 }
 0x915   : > { %7351 = vmatprep.mubr.msk.bf16.mxu0 %vm8505_vm1, %v8504_v20  ;;  %7359 = vmatprep.mubr.msk.bf16.mxu1 %vm8505_vm1, %v8504_v20 }
 0x917   : > { %7350 = vmatpush3.bf16.msra.mxu0 %v8053_v16  ;;  %7358 = vmatpush3.bf16.msra.mxu1 %v8054_v17 }
 0x918   : > { %7363 = vmatprep.subr.bf16.mxu0 %v8504_v20  ;;  %7369 = vmatprep.subr.bf16.mxu1 %v8504_v20 }
 0x9e5   : > { %v2203_v18 = vpop.f32.mrb[4].mxu0  ;;  %v2253_v19 = vpop.f32.mrb[60].mxu1 }
 0x9e6   : > { %v2209_v21 = vpack.c.bf16 %v2203_v18, %v2203_v18  ;;  %v2259_v22 = vpack.c.bf16 %v2253_v19, %v2253_v19  ;;  %v7345_v23 = vpop.f32.mrb[61].mxu1  ;;  %v7339_v24 = vpop.f32.mrb[5].mxu0 }
 0x9e7   : > { %v2256_v25 = vpop.f32.mrb[62].mxu1  ;;  %v2206_v26 = vpop.f32.mrb[6].mxu0 }
 0x9e8   : > { %v7346_v27 = vpop.f32.mrb[63].mxu1  ;;  %7352 = vmatmul.mubr.msk.bf16.vlgmr.msra.gmra.mrb[8].mxu0 %vm1408_vm2, %v2259_v22  ;;  %7360 = vmatmul.mubr.msk.bf16.vlgmr.msra.gmra.mrb[64].mxu1 %vm1408_vm2, %v2209_v21  ;;  %v7340_v28 = vpop.f32.mrb[7].mxu0 }
 0x9e9   : > { %7364 = vmatpush3.bf16.msra.mxu0 %v2164_v11  ;;  %7365 = vmatprep.mubr.msk.bf16.mxu0 %vm8505_vm1, %v8504_v20 }
 0x9ea   : > { %7377 = vmatprep.subr.bf16.mxu0 %v8504_v20  ;;  %7373 = vmatprep.mubr.msk.bf16.mxu1 %vm8505_vm1, %v8504_v20 }
 0x9eb   : > { %7370 = vmatpush3.bf16.msra.mxu1 %v8055_v34 }
 0x9ec   : > { %7371 = vmatprep.subr.bf16.mxu1 %v8504_v20 }
 0x9ef   : > { %7372 = vmatpush3.bf16.msra.mxu1 %v8056_v35 }
 0x9f0   : > { %7366 = vmatmul.mubr.msk.bf16.vlgmr.msra.gmra.mrb[12].mxu0 %vm1518_vm3, %v2376_v29  ;;  %7383 = vmatprep.subr.bf16.mxu1 %v8504_v20 }
 0x9f1   : > { %7378 = vmatpush3.bf16.msra.mxu0 %v2164_v11  ;;  %7379 = vmatprep.mubr.msk.bf16.mxu0 %vm8505_vm1, %v8504_v20 }
 0x9f2   : > { %7391 = vmatprep.subr.bf16.mxu0 %v8504_v20 }
 0x9f8   : > { %7380 = vmatmul.mubr.msk.bf16.vlgmr.msra.gmra.mrb[16].mxu0 %vm1518_vm3, %v2483_v30 }
 0x9f9   : > { %7392 = vmatpush3.bf16.msra.mxu0 %v2164_v11  ;;  %7393 = vmatprep.mubr.msk.bf16.mxu0 %vm8505_vm1, %v8504_v20 }
 0x9fa   : > { %7405 = vmatprep.subr.bf16.mxu0 %v8504_v20 }
 0xa00   : > { %7394 = vmatmul.mubr.msk.bf16.vlgmr.msra.gmra.mrb[20].mxu0 %vm1518_vm3, %v2590_v31 }
 0xa01   : > { %7406 = vmatpush3.bf16.msra.mxu0 %v2164_v11  ;;  %7407 = vmatprep.mubr.msk.bf16.mxu0 %vm8505_vm1, %v8504_v20 }
 0xa02   : > { %7419 = vmatprep.subr.bf16.mxu0 %v8504_v20 }
 0xa08   : > { %7408 = vmatmul.mubr.msk.bf16.vlgmr.msra.gmra.mrb[24].mxu0 %vm1518_vm3, %v2697_v32 }
 0xa09   : > { %7420 = vmatpush3.bf16.msra.mxu0 %v2164_v11  ;;  %7421 = vmatprep.mubr.msk.bf16.mxu0 %vm8505_vm1, %v8504_v20 }
 0xa0a   : > { %7433 = vmatprep.subr.bf16.mxu0 %v8504_v20 }
 0xa10   : > { %7422 = vmatmul.mubr.msk.bf16.vlgmr.msra.gmra.mrb[28].mxu0 %vm1518_vm3, %v2804_v33 }
 0xa11   : > { %7435 = vmatprep.mubr.msk.bf16.mxu0 %vm8505_vm1, %v8504_v20 }
 0xabb   : > { %v2314_v36 = vpop.f32.mrb[8].mxu0  ;;  %v2369_v37 = vpop.f32.mrb[64].mxu1 }
 0xabc   : > { %v9137_v38 = vadd.f32 %v2369_v37, %v2314_v36  ;;  %v7353_v39 = vpop.f32.mrb[9].mxu0  ;;  %v7361_v40 = vpop.f32.mrb[65].mxu1  ;;  %v6614_v36 = vld [vmem:[%s9477_s9] ss:$0 sm:$0xff] }
 0xabd   : > { %v2317_v41 = vpop.f32.mrb[10].mxu0  ;;  %v2372_v44 = vpop.f32.mrb[66].mxu1 }
 0xabe   : > { %v7354_v45 = vpop.f32.mrb[11].mxu0  ;;  %v7362_v46 = vpop.f32.mrb[67].mxu1 }
 0xac3   : > { %v2414_v47 = vpop.f32.mrb[12].mxu0 }
 0xac4   : > { %v2420_v49 = vpack.c.bf16 %v2414_v47, %v2414_v47  ;;  %v7367_v50 = vpop.f32.mrb[13].mxu0  ;;  %v8065_v47 = vld [vmem:[#allocation11] sm:$0xff]  }
 0xac5   : > { %v2417_v51 = vpop.f32.mrb[14].mxu0  ;;  %v8068_v50 = vld [vmem:[#allocation13] sm:$0xff]  }
 0xac6   : > { %v7368_v52 = vpop.f32.mrb[15].mxu0  ;;  %7374 = vmatmul.mubr.msk.bf16.vlgmr.msra.gmra.mrb[68].mxu1 %vm1408_vm2, %v2420_v49  ;;  %v8067_v49 = vld [vmem:[#allocation13 + $0x20] sm:$0xff]   ;;  %v8069_v51 = vld [vmem:[#allocation13 + $0x28] sm:$0xff]  }
 0xac7   : > { %7384 = vmatpush3.bf16.msra.mxu1 %v8057_v48  ;;  %7387 = vmatprep.mubr.msk.bf16.mxu1 %vm8505_vm1, %v8504_v20  ;;  %v8066_v48 = vld [vmem:[#allocation11 + $0x8] sm:$0xff]   ;;  %v8070_v52 = vld [vmem:[#allocation13 + $0x8] sm:$0xff]  }
 0xac8   : > { %7385 = vmatprep.subr.bf16.mxu1 %v8504_v20 }
 0xacb   : > { %v2521_v54 = vpop.f32.mrb[16].mxu0  ;;  %7386 = vmatpush3.bf16.msra.mxu1 %v8058_v53  ;;  %v8071_v53 = vld [vmem:[#allocation13 + $0x30] sm:$0xff]  }
 0xacc   : > { %v2527_v55 = vpack.c.bf16 %v2521_v54, %v2521_v54  ;;  %v7381_v56 = vpop.f32.mrb[17].mxu0  ;;  %7397 = vmatprep.subr.bf16.mxu1 %v8504_v20  ;;  %v8072_v54 = vld [vmem:[#allocation13 + $0x10] sm:$0xff]  }
 0xacd   : > { %v2524_v57 = vpop.f32.mrb[18].mxu0 }
 0xace   : > { %v7382_v58 = vpop.f32.mrb[19].mxu0  ;;  %7388 = vmatmul.mubr.msk.bf16.vlgmr.msra.gmra.mrb[72].mxu1 %vm1408_vm2, %v2527_v55  ;;  %v8074_v55 = vld [vmem:[#allocation13 + $0x18] sm:$0xff]  }
 0xacf   : > { %7398 = vmatpush3.bf16.msra.mxu1 %v8059_v43  ;;  %7401 = vmatprep.mubr.msk.bf16.mxu1 %vm8505_vm1, %v8504_v20  ;;  %v8073_v43 = vld [vmem:[#allocation13 + $0x38] sm:$0xff]  }
 0xad0   : > { %7399 = vmatprep.subr.bf16.mxu1 %v8504_v20 }
 0xad3   : > { %v2628_v60 = vpop.f32.mrb[20].mxu0  ;;  %7400 = vmatpush3.bf16.msra.mxu1 %v8060_v59 }
 0xad4   : > { %v2634_v42 = vpack.c.bf16 %v2628_v60, %v2628_v60  ;;  %v7395_v62 = vpop.f32.mrb[21].mxu0  ;;  %7411 = vmatprep.subr.bf16.mxu1 %v8504_v20 }
 0xad5   : > { %v2631_v63 = vpop.f32.mrb[22].mxu0 }
 0xad6   : > { %v7396_v0 = vpop.f32.mrb[23].mxu0  ;;  %7402 = vmatmul.mubr.msk.bf16.vlgmr.msra.gmra.mrb[76].mxu1 %vm1408_vm2, %v2634_v42 }
 0xad7   : > { %7412 = vmatpush3.bf16.msra.mxu1 %v8061_v61  ;;  %7415 = vmatprep.mubr.msk.bf16.mxu1 %vm8505_vm1, %v8504_v20 }
 0xad8   : > { %7413 = vmatprep.subr.bf16.mxu1 %v8504_v20 }
 0xadb   : > { %v2735_v2 = vpop.f32.mrb[24].mxu0  ;;  %7414 = vmatpush3.bf16.msra.mxu1 %v8062_v1  ;;  %v8077_v1 = vld [vmem:[#allocation13 + $0x40] sm:$0xff]  }
 0xadc   : > { %v2741_v4 = vpack.c.bf16 %v2735_v2, %v2735_v2  ;;  %v7409_v5 = vpop.f32.mrb[25].mxu0  ;;  %7425 = vmatprep.subr.bf16.mxu1 %v8504_v20  ;;  %v8075_v2 = vld [vmem:[#allocation11 + $0x10] sm:$0xff]  }
 0xadd   : > { %v2738_v6 = vpop.f32.mrb[26].mxu0  ;;  %v8079_v5 = vld [vmem:[#allocation13 + $0x50] sm:$0xff]  }
 0xade   : > { %v7410_v7 = vpop.f32.mrb[27].mxu0  ;;  %7416 = vmatmul.mubr.msk.bf16.vlgmr.msra.gmra.mrb[80].mxu1 %vm1408_vm2, %v2741_v4  ;;  %v8078_v4 = vld [vmem:[#allocation13 + $0x48] sm:$0xff]   ;;  %v8080_v6 = vld [vmem:[#allocation13 + $0x60] sm:$0xff]  }
 0xadf   : > { %7426 = vmatpush3.bf16.msra.mxu1 %v8063_v3  ;;  %7429 = vmatprep.mubr.msk.bf16.mxu1 %vm8505_vm1, %v8504_v20  ;;  %v8076_v3 = vld [vmem:[#allocation11 + $0x18] sm:$0xff]   ;;  %v8081_v7 = vld [vmem:[#allocation13 + $0x58] sm:$0xff]  }
 0xae0   : > { %7427 = vmatprep.subr.bf16.mxu1 %v8504_v20 }
 0xae3   : > { %v2842_v9 = vpop.f32.mrb[28].mxu0  ;;  %7428 = vmatpush3.bf16.msra.mxu1 %v8064_v8  ;;  %v8082_v8 = vld [vmem:[#allocation13 + $0x68] sm:$0xff]  }
 0xae4   : > { %v2848_v10 = vpack.c.bf16 %v2842_v9, %v2842_v9  ;;  %v7423_v11 = vpop.f32.mrb[29].mxu0  ;;  %7439 = vmatprep.subr.bf16.mxu1 %v8504_v20  ;;  %v8083_v9 = vld [vmem:[#allocation13 + $0x70] sm:$0xff]  }
 0xae5   : > { %v2845_v12 = vpop.f32.mrb[30].mxu0 }
 0xae6   : > { %v7424_v13 = vpop.f32.mrb[31].mxu0  ;;  %7430 = vmatmul.mubr.msk.bf16.vlgmr.msra.gmra.mrb[84].mxu1 %vm1408_vm2, %v2848_v10  ;;  %v8084_v10 = vld [vmem:[#allocation13 + $0x78] sm:$0xff]  }
 0xae7   : > { %7441 = vmatprep.mubr.msk.bf16.mxu1 %vm8505_vm1, %v8504_v20 }
 0xb99   : > { %v2475_v14 = vpop.f32.mrb[68].mxu1 }
 0xb9a   : > { %v2481_v15 = vadd.f32 %v2475_v14, %v9137_v38  ;;  %v7375_v16 = vpop.f32.mrb[69].mxu1 }
 0xb9b   : > { %v2478_v17 = vpop.f32.mrb[70].mxu1 }
 0xb9c   : > { %v7376_v18 = vpop.f32.mrb[71].mxu1 }
 0xba1   : > { %v2582_v19 = vpop.f32.mrb[72].mxu1 }
 0xba2   : > { %v2588_v21 = vadd.f32 %v2582_v19, %v2481_v15  ;;  %v7389_v22 = vpop.f32.mrb[73].mxu1 }
 0xba3   : > { %v2585_v23 = vpop.f32.mrb[74].mxu1 }
 0xba4   : > { %v7390_v24 = vpop.f32.mrb[75].mxu1 }
 0xba9   : > { %v2689_v25 = vpop.f32.mrb[76].mxu1 }
 0xbaa   : > { %v2695_v26 = vadd.f32 %v2689_v25, %v2588_v21  ;;  %v7403_v27 = vpop.f32.mrb[77].mxu1 }
 0xbab   : > { %v2692_v28 = vpop.f32.mrb[78].mxu1 }
 0xbac   : > { %v7404_v29 = vpop.f32.mrb[79].mxu1 }
 0xbad   : > { %v8085_v29 = vld [vmem:[#allocation11 + $0x20] sm:$0xff]  }
 0xbb1   : > { %v2796_v30 = vpop.f32.mrb[80].mxu1 }
 0xbb2   : > { %v2802_v31 = vadd.f32 %v2796_v30, %v2695_v26  ;;  %v7417_v32 = vpop.f32.mrb[81].mxu1 }
 0xbb3   : > { %v2799_v33 = vpop.f32.mrb[82].mxu1  ;;  %v8087_v32 = vld [vmem:[#allocation13 + $0x80] sm:$0xff]  }
 0xbb4   : > { %v7418_v34 = vpop.f32.mrb[83].mxu1 }
 0xbb5   : > { %v8086_v34 = vld [vmem:[#allocation11 + $0x28] sm:$0xff]  }
 0xbb9   : > { %v2903_v35 = vpop.f32.mrb[84].mxu1 }
 0xbba   : > { %v2909_v37 = vadd.f32 %v2903_v35, %v2802_v31  ;;  %v7431_v38 = vpop.f32.mrb[85].mxu1  ;;  %v8088_v35 = vld [vmem:[#allocation13 + $0x88] sm:$0xff]  }
 0xbbb   : > { %v2906_v39 = vpop.f32.mrb[86].mxu1  ;;  %v8091_v38 = vld [vmem:[#allocation13 + $0x98] sm:$0xff]  }
 0xbbc   : > { %v2917_v40 = vadd.f32 %v6614_v36, %v2909_v37  ;;  %v7432_v41 = vpop.f32.mrb[87].mxu1  ;;  %v8089_v36 = vld [vmem:[#allocation13 + $0x90] sm:$0xff]   ;;  %v8090_v37 = vld [vmem:[#allocation13 + $0xa0] sm:$0xff]   ;;  %v8092_v39 = vld [vmem:[#allocation13 + $0xa8] sm:$0xff]  }
 0xbbd   : > { %v8094_v41 = vld [vmem:[#allocation13 + $0xb8] sm:$0xff]  }
 0xbbe   : > { %v2918_v44 = vmax.f32 %v2917_v40, 0.0  ;;  %v8093_v40 = vld [vmem:[#allocation13 + $0xb0] sm:$0xff]  }
 0xbc0   : > { %v2919_v45 = vpack.c.bf16 %v2918_v44, %v2918_v44 }
 0xbc2   : > { %v9166_v46 = vsel %vm2931_vm4, %v2919_v45, 0 }
 0xbc3   : > { %7434 = vmatpush3.bf16.msra.mxu0 %v9166_v46  ;;  %7440 = vmatpush3.bf16.msra.mxu1 %v9166_v46 }
 0xbc4   : > { %7445 = vmatprep.subr.bf16.mxu0 %v8504_v20  ;;  %7457 = vmatprep.subr.bf16.mxu1 %v8504_v20 }
 0xbc6   : > { %7436 = vmatmul.mubr.msk.bf16.vlgmr.msra.gmra.mrb[32].mxu0 %vm2927_vm5, %v8065_v47  ;;  %7442 = vmatmul.mubr.msk.bf16.vlgmr.msra.gmra.mrb[88].mxu1 %vm2927_vm5, %v8066_v48 }
 0xbc7   : > { %7446 = vmatpush3.bf16.msra.mxu0 %v8067_v49  ;;  %7458 = vmatpush3.bf16.msra.mxu1 %v8068_v50 }
 0xbc8   : > { %7447 = vmatprep.subr.bf16.mxu0 %v8504_v20  ;;  %7459 = vmatprep.subr.bf16.mxu1 %v8504_v20 }
 0xbc9   : > { %7453 = vmatprep.mubr.msk.bf16.mxu0 %vm8505_vm1, %v8504_v20  ;;  %7465 = vmatprep.mubr.msk.bf16.mxu1 %vm8505_vm1, %v8504_v20 }
 0xbcb   : > { %7448 = vmatpush3.bf16.msra.mxu0 %v8069_v51  ;;  %7460 = vmatpush3.bf16.msra.mxu1 %v8070_v52 }
 0xbcc   : > { %7449 = vmatprep.subr.bf16.mxu0 %v8504_v20  ;;  %7461 = vmatprep.subr.bf16.mxu1 %v8504_v20 }
 0xbcf   : > { %7450 = vmatpush3.bf16.msra.mxu0 %v8071_v53  ;;  %7462 = vmatpush3.bf16.msra.mxu1 %v8072_v54 }
 0xbd0   : > { %7451 = vmatprep.subr.bf16.mxu0 %v8504_v20  ;;  %7463 = vmatprep.subr.bf16.mxu1 %v8504_v20 }
 0xbd3   : > { %7452 = vmatpush3.bf16.msra.mxu0 %v8073_v43  ;;  %7464 = vmatpush3.bf16.msra.mxu1 %v8074_v55 }
 0xbd4   : > { %7469 = vmatprep.subr.bf16.mxu0 %v8504_v20  ;;  %7475 = vmatprep.subr.bf16.mxu1 %v8504_v20 }
 0xc99   : > { %v2969_v56 = vpop.f32.mrb[32].mxu0  ;;  %v3030_v57 = vpop.f32.mrb[88].mxu1 }
 0xc9a   : > { %v7437_v58 = vpop.f32.mrb[33].mxu0  ;;  %v7443_v59 = vpop.f32.mrb[89].mxu1 }
 0xc9b   : > { %v2972_v60 = vpop.f32.mrb[34].mxu0  ;;  %v3033_v61 = vpop.f32.mrb[90].mxu1 }
 0xc9c   : > { %v2976_v42 = vpack.c.bf16 %v2972_v60, %v2969_v56  ;;  %v3037_v62 = vpack.c.bf16 %v3033_v61, %v3030_v57  ;;  %v7444_v63 = vpop.f32.mrb[91].mxu1  ;;  %v7438_v0 = vpop.f32.mrb[35].mxu0 }
 0xc9d   : > { %v8096_v0 = vld [vmem:[#allocation13 + $0xc0] sm:$0xff]  }
 0xc9e   : > { %7454 = vmatmul.mubr.msk.bf16.vlgmr.msra.gmra.mrb[36].mxu0 %vm828_vm0, %v3037_v62  ;;  %7466 = vmatmul.mubr.msk.bf16.vlgmr.msra.gmra.mrb[92].mxu1 %vm828_vm0, %v2976_v42  ;;  %v8095_v62 = vld [vmem:[#allocation11 + $0x30] sm:$0xff]  }
 0xc9f   : > { %7470 = vmatpush3.bf16.msra.mxu0 %v9166_v46  ;;  %7471 = vmatprep.mubr.msk.bf16.mxu0 %vm8505_vm1, %v8504_v20 }
 0xca0   : > { %7487 = vmatprep.subr.bf16.mxu0 %v8504_v20  ;;  %7476 = vmatpush3.bf16.msra.mxu1 %v8077_v1 }
 0xca1   : > { %7477 = vmatprep.subr.bf16.mxu1 %v8504_v20  ;;  %7483 = vmatprep.mubr.msk.bf16.mxu1 %vm8505_vm1, %v8504_v20 }
 0xca4   : > { %7478 = vmatpush3.bf16.msra.mxu1 %v8078_v4  ;;  %v8099_v4 = vld [vmem:[#allocation13 + $0xd8] sm:$0xff]  }
 0xca5   : > { %7479 = vmatprep.subr.bf16.mxu1 %v8504_v20 }
 0xca6   : > { %7472 = vmatmul.mubr.msk.bf16.vlgmr.msra.gmra.mrb[40].mxu0 %vm2927_vm5, %v8075_v2 }
 0xca7   : > { %7488 = vmatpush3.bf16.msra.mxu0 %v9166_v46  ;;  %7489 = vmatprep.mubr.msk.bf16.mxu0 %vm8505_vm1, %v8504_v20 }
 0xca8   : > { %7493 = vmatprep.subr.bf16.mxu0 %v8504_v20  ;;  %7480 = vmatpush3.bf16.msra.mxu1 %v8079_v5 }
 0xca9   : > { %7481 = vmatprep.subr.bf16.mxu1 %v8504_v20 }
 0xcac   : > { %7482 = vmatpush3.bf16.msra.mxu1 %v8081_v7 }
 0xcad   : > { %7505 = vmatprep.subr.bf16.mxu1 %v8504_v20 }
 0xcae   : > { %7490 = vmatmul.mubr.msk.bf16.vlgmr.msra.gmra.mrb[44].mxu0 %vm2927_vm5, %v8076_v3  ;;  %v8098_v3 = vld [vmem:[#allocation13 + $0xd0] sm:$0xff]  }
 0xcaf   : > { %7501 = vmatprep.mubr.msk.bf16.mxu0 %vm8505_vm1, %v8504_v20  ;;  %7494 = vmatpush3.bf16.msra.mxu0 %v8080_v6 }
 0xcb0   : > { %7495 = vmatprep.subr.bf16.mxu0 %v8504_v20 }
 0xcb3   : > { %7496 = vmatpush3.bf16.msra.mxu0 %v8082_v8 }
 0xcb4   : > { %7497 = vmatprep.subr.bf16.mxu0 %v8504_v20 }
 0xcb7   : > { %7498 = vmatpush3.bf16.msra.mxu0 %v8083_v9 }
 0xcb8   : > { %7499 = vmatprep.subr.bf16.mxu0 %v8504_v20 }
 0xcbb   : > { %7500 = vmatpush3.bf16.msra.mxu0 %v8084_v10 }
 0xcbc   : > { %7523 = vmatprep.subr.bf16.mxu0 %v8504_v20 }
 0xd71   : > { %v3108_v11 = vpop.f32.mrb[36].mxu0  ;;  %v3176_v12 = vpop.f32.mrb[92].mxu1 }
 0xd72   : > { %v3177_v13 = vadd.f32 %v3176_v12, %v3108_v11  ;;  %v7455_v14 = vpop.f32.mrb[37].mxu0  ;;  %v7467_v15 = vpop.f32.mrb[93].mxu1 }
 0xd73   : > { %v3111_v16 = vpop.f32.mrb[38].mxu0  ;;  %v3179_v17 = vpop.f32.mrb[94].mxu1 }
 0xd74   : > { %v3180_v18 = vadd.f32 %v3179_v17, %v3111_v16  ;;  %v7456_v19 = vpop.f32.mrb[39].mxu0  ;;  %v7468_v21 = vpop.f32.mrb[95].mxu1 }
 0xd79   : > { %v3228_v22 = vpop.f32.mrb[40].mxu0 }
 0xd7a   : > { %v7473_v23 = vpop.f32.mrb[41].mxu0 }
 0xd7b   : > { %v3231_v24 = vpop.f32.mrb[42].mxu0 }
 0xd7c   : > { %v3235_v25 = vpack.c.bf16 %v3231_v24, %v3228_v22  ;;  %v7474_v26 = vpop.f32.mrb[43].mxu0  ;;  %v6664_v24 = vld [vmem:[%s9480_s12] ss:$0 sm:$0xff] }
 0xd7e   : > { %7484 = vmatmul.mubr.msk.bf16.vlgmr.msra.gmra.mrb[96].mxu1 %vm828_vm0, %v3235_v25 }
 0xd7f   : > { %7506 = vmatpush3.bf16.msra.mxu1 %v9166_v46  ;;  %7507 = vmatprep.mubr.msk.bf16.mxu1 %vm8505_vm1, %v8504_v20 }
 0xd80   : > { %7511 = vmatprep.subr.bf16.mxu1 %v8504_v20 }
 0xd81   : > { %v3360_v27 = vpop.f32.mrb[44].mxu0 }
 0xd82   : > { %v7491_v28 = vpop.f32.mrb[45].mxu0 }
 0xd83   : > { %v3363_v30 = vpop.f32.mrb[46].mxu0 }
 0xd84   : > { %v3367_v31 = vpack.c.bf16 %v3363_v30, %v3360_v27  ;;  %v7492_v33 = vpop.f32.mrb[47].mxu0 }
 0xd86   : > { %7502 = vmatmul.mubr.msk.bf16.vlgmr.msra.gmra.mrb[48].mxu0 %vm828_vm0, %v3367_v31  ;;  %7508 = vmatmul.mubr.msk.bf16.vlgmr.msra.gmra.mrb[100].mxu1 %vm2927_vm5, %v8085_v29 }
 0xd87   : > { %7524 = vmatpush3.bf16.msra.mxu0 %v9166_v46  ;;  %7525 = vmatprep.mubr.msk.bf16.mxu0 %vm8505_vm1, %v8504_v20 }
 0xd88   : > { %7512 = vmatpush3.bf16.msra.mxu1 %v8087_v32  ;;  %7529 = vmatprep.subr.bf16.mxu0 %v8504_v20 }
 0xd89   : > { %7513 = vmatprep.subr.bf16.mxu1 %v8504_v20  ;;  %7519 = vmatprep.mubr.msk.bf16.mxu1 %vm8505_vm1, %v8504_v20 }
 0xd8c   : > { %7514 = vmatpush3.bf16.msra.mxu1 %v8088_v35  ;;  %v8101_v35 = vld [vmem:[#allocation14 + $0x8] sm:$0xff]  }
 0xd8d   : > { %7515 = vmatprep.subr.bf16.mxu1 %v8504_v20 }
 0xd8e   : > { %7526 = vmatmul.mubr.msk.bf16.vlgmr.msra.gmra.mrb[52].mxu0 %vm2927_vm5, %v8086_v34 }
 0xd8f   : > { %7537 = vmatprep.mubr.msk.bf16.mxu0 %vm8505_vm1, %v8504_v20  ;;  %7530 = vmatpush3.bf16.msra.mxu0 %v8090_v37  ;;  %v8103_v37 = vld [vmem:[#allocation14 + $0x18] sm:$0xff]  }
 0xd90   : > { %7531 = vmatprep.subr.bf16.mxu0 %v8504_v20  ;;  %7516 = vmatpush3.bf16.msra.mxu1 %v8089_v36  ;;  %v8102_v36 = vld [vmem:[#allocation14 + $0x10] sm:$0xff]  }
 0xd91   : > { %7517 = vmatprep.subr.bf16.mxu1 %v8504_v20 }
 0xd93   : > { %7532 = vmatpush3.bf16.msra.mxu0 %v8092_v39  ;;  %v8105_v39 = vld [vmem:[#allocation14 + $0x28] sm:$0xff]  }
 0xd94   : > { %7518 = vmatpush3.bf16.msra.mxu1 %v8091_v38  ;;  %7533 = vmatprep.subr.bf16.mxu0 %v8504_v20  ;;  %v8104_v38 = vld [vmem:[#allocation14 + $0x20] sm:$0xff]  }
 0xd95   : > { %7541 = vmatprep.subr.bf16.mxu1 %v8504_v20 }
 0xd97   : > { %7534 = vmatpush3.bf16.msra.mxu0 %v8093_v40  ;;  %v8106_v40 = vld [vmem:[#allocation14 + $0x30] sm:$0xff]  }
 0xd98   : > { %7535 = vmatprep.subr.bf16.mxu0 %v8504_v20 }
 0xd9b   : > { %7536 = vmatpush3.bf16.msra.mxu0 %v8094_v41  ;;  %v8107_v41 = vld [vmem:[#allocation14 + $0x38] sm:$0xff]  }
 0xe51   : > { %v3306_v44 = vpop.f32.mrb[96].mxu1 }
 0xe52   : > { %v3313_v45 = vadd.f32 %v3306_v44, %v3177_v13  ;;  %v7485_v47 = vpop.f32.mrb[97].mxu1  ;;  %v8108_v44 = vld [vmem:[#allocation14 + $0x40] sm:$0xff]  }
 0xe53   : > { %v3309_v48 = vpop.f32.mrb[98].mxu1  ;;  %v8110_v47 = vld [vmem:[#allocation14 + $0x50] sm:$0xff]  }
 0xe54   : > { %v3314_v49 = vadd.f32 %v3309_v48, %v3180_v18  ;;  %v7486_v50 = vpop.f32.mrb[99].mxu1  ;;  %v8111_v48 = vld [vmem:[#allocation14 + $0x58] sm:$0xff]  }
 0xe55   : > { %v8113_v50 = vld [vmem:[#allocation14 + $0x68] sm:$0xff]  }
 0xe59   : > { %v3438_v51 = vpop.f32.mrb[48].mxu0  ;;  %v3492_v52 = vpop.f32.mrb[100].mxu1 }
 0xe5a   : > { %v3445_v53 = vadd.f32 %v3438_v51, %v3313_v45  ;;  %v7503_v54 = vpop.f32.mrb[49].mxu0  ;;  %v7509_v43 = vpop.f32.mrb[101].mxu1  ;;  %v8109_v45 = vld [vmem:[#allocation14 + $0x48] sm:$0xff]   ;;  %v8114_v51 = vld [vmem:[#allocation16 + $0x10] sm:$0xff]  }
 0xe5b   : > { %v3441_v55 = vpop.f32.mrb[50].mxu0  ;;  %v3495_v56 = vpop.f32.mrb[102].mxu1 }
 0xe5c   : > { %v3446_v57 = vadd.f32 %v3441_v55, %v3314_v49  ;;  %v3499_v58 = vpack.c.bf16 %v3495_v56, %v3492_v52  ;;  %v7510_v59 = vpop.f32.mrb[103].mxu1  ;;  %v7504_v60 = vpop.f32.mrb[51].mxu0  ;;  %v8112_v49 = vld [vmem:[#allocation14 + $0x60] sm:$0xff]   ;;  %v8115_v52 = vld [vmem:[#allocation16 + $0x18] sm:$0xff]  }
 0xe5e   : > { %7520 = vmatmul.mubr.msk.bf16.vlgmr.msra.gmra.mrb[104].mxu1 %vm828_vm0, %v3499_v58 }
 0xe5f   : > { %7542 = vmatpush3.bf16.msra.mxu1 %v9166_v46  ;;  %7543 = vmatprep.mubr.msk.bf16.mxu1 %vm8505_vm1, %v8504_v20  ;;  %v8097_v46 = vld [vmem:[#allocation13 + $0xc8] sm:$0xff]  }
 0xe60   : > { %7547 = vmatprep.subr.bf16.mxu1 %v8504_v20 }
 0xe61   : > { %v3624_v61 = vpop.f32.mrb[52].mxu0 }
 0xe62   : > { %v7527_v42 = vpop.f32.mrb[53].mxu0 }
 0xe63   : > { %v3627_v63 = vpop.f32.mrb[54].mxu0 }
 0xe64   : > { %v3631_v1 = vpack.c.bf16 %v3627_v63, %v3624_v61  ;;  %v7528_v2 = vpop.f32.mrb[55].mxu0 }
 0xe65   : > { %v8118_v2 = vld [vmem:[#allocation16 + $0x20] sm:$0xff]  }
 0xe66   : > { %7538 = vmatmul.mubr.msk.bf16.vlgmr.msra.gmra.mrb[56].mxu0 %vm828_vm0, %v3631_v1  ;;  %7544 = vmatmul.mubr.msk.bf16.vlgmr.msra.gmra.mrb[108].mxu1 %vm2927_vm5, %v8095_v62 }
 0xe67   : > { %7548 = vmatpush3.bf16.msra.mxu1 %v8096_v0  ;;  %7555 = vmatprep.mubr.msk.bf16.mxu1 %vm8505_vm1, %v8504_v20  ;;  %v8117_v0 = vld [vmem:[#allocation16 + $0x8] sm:$0xff]  }
 0xe68   : > { %7549 = vmatprep.subr.bf16.mxu1 %v8504_v20 }
 0xe6b   : > { %7550 = vmatpush3.bf16.msra.mxu1 %v8097_v46 }
 0xe6c   : > { %7551 = vmatprep.subr.bf16.mxu1 %v8504_v20 }
 0xe6f   : > { %7552 = vmatpush3.bf16.msra.mxu1 %v8098_v3 }
 0xe70   : > { %7553 = vmatprep.subr.bf16.mxu1 %v8504_v20  ;;  %v8100_v20 = vld [vmem:[#allocation14] sm:$0xff]  }
 0xe71   : > { %7561 = vmatprep.mubr.msk.bf16.mxu0 %vm1518_vm3, %v8100_v20 }
 0xe73   : > { %7554 = vmatpush3.bf16.msra.mxu1 %v8099_v4 }
 0xe74   : > { %7571 = vmatprep.subr.bf16.mxu1 %v8114_v51 }
 0xf31   : > { %v3570_v5 = vpop.f32.mrb[104].mxu1 }
 0xf32   : > { %v3577_v6 = vadd.f32 %v3570_v5, %v3445_v53  ;;  %v7521_v7 = vpop.f32.mrb[105].mxu1  ;;  %v8116_v53 = vld [vmem:[#allocation16] sm:$0xff]  }
 0xf33   : > { %v3573_v8 = vpop.f32.mrb[106].mxu1 }
 0xf34   : > { %v3578_v9 = vadd.f32 %v3573_v8, %v3446_v57  ;;  %v7522_v10 = vpop.f32.mrb[107].mxu1  ;;  %v8119_v8 = vld [vmem:[#allocation16 + $0x28] sm:$0xff]  }
 0xf39   : > { %v3702_v11 = vpop.f32.mrb[56].mxu0  ;;  %v3756_v12 = vpop.f32.mrb[108].mxu1 }
 0xf3a   : > { %v3709_v13 = vadd.f32 %v3702_v11, %v3577_v6  ;;  %v7539_v14 = vpop.f32.mrb[57].mxu0  ;;  %v7545_v15 = vpop.f32.mrb[109].mxu1 }
 0xf3b   : > { %v3705_v16 = vpop.f32.mrb[58].mxu0  ;;  %v3759_v17 = vpop.f32.mrb[110].mxu1  ;;  %v8120_v14 = vld [vmem:[#allocation16 + $0x30] sm:$0xff]  }
 0xf3c   : > { %v3710_v18 = vadd.f32 %v3705_v16, %v3578_v9  ;;  %v3763_v19 = vpack.c.bf16 %v3759_v17, %v3756_v12  ;;  %v7546_v21 = vpop.f32.mrb[111].mxu1  ;;  %v7540_v22 = vpop.f32.mrb[59].mxu0 }
 0xf3d   : > { %v8121_v22 = vld [vmem:[#allocation16 + $0x38] sm:$0xff]  }
 0xf3e   : > { %7556 = vmatmul.mubr.msk.bf16.vlgmr.msra.gmra.mrb[112].mxu1 %vm828_vm0, %v3763_v19 }
 0xf3f   : > { %7572 = vmatpush3.bf16.msra.mxu1 %v8114_v51 }
 0xf40   : > { %7573 = vmatprep.subr.bf16.mxu1 %v8115_v52 }
 0xf43   : > { %7574 = vmatpush3.bf16.msra.mxu1 %v8115_v52 }
 0xf44   : > { %7579 = vmatprep.subr.bf16.mxu1 %v8116_v53 }
0x1011   : > { %v3834_v23 = vpop.f32.mrb[112].mxu1 }
0x1012   : > { %v3841_v25 = vadd.f32 %v3834_v23, %v3709_v13  ;;  %v7557_v26 = vpop.f32.mrb[113].mxu1  ;;  %v8122_v23 = vld [vmem:[#allocation16 + $0x40] sm:$0xff]  }
0x1013   : > { %v3837_v27 = vpop.f32.mrb[114].mxu1 }
0x1014   : > { %v3850_v28 = vadd.f32 %v6664_v24, %v3841_v25  ;;  %v3842_v29 = vadd.f32 %v3837_v27, %v3710_v18  ;;  %v7558_v30 = vpop.f32.mrb[115].mxu1 }
0x1015   : > { %v8123_v30 = vld [vmem:[#allocation16 + $0x48] sm:$0xff]  }
0x1016   : > { %v3851_v31 = vadd.f32 %v6664_v24, %v3842_v29  ;;  %v3852_v32 = vmax.f32 %v3850_v28, 0.0 }
0x1018   : > { %v3853_v33 = vmax.f32 %v3851_v31, 0.0 }
0x101a   : > { %v3854_v34 = vpack.c.bf16 %v3853_v33, %v3852_v32 }
0x101c   : > { %7559 = vmatprep.subr.bf16.mxu0 %v3854_v34 }
0x101d   : > { %7560 = vmatpush3.bf16.msra.mxu0 %v3854_v34 }
0x101e   : > { %7565 = vmatprep.subr.bf16.mxu0 %v3854_v34 }
0x1020   : > { %7562 = vmatmul.mubr.msk.bf16.vlgmr.msra.gmra.mrb[60].mxu0 %vm1518_vm3, %v8101_v35 }
0x1021   : > { %7566 = vmatpush3.bf16.msra.mxu0 %v3854_v34  ;;  %7567 = vmatprep.mubr.msk.bf16.mxu0 %vm1518_vm3, %v8102_v36  ;;  %v8124_v36 = vld [vmem:[#allocation16 + $0x50] sm:$0xff]  }
0x1022   : > { %7587 = vmatprep.subr.bf16.mxu0 %v3854_v34 }
0x1028   : > { %7568 = vmatmul.mubr.msk.bf16.vlgmr.msra.gmra.mrb[64].mxu0 %vm1518_vm3, %v8103_v37  ;;  %v8125_v37 = vld [vmem:[#allocation16 + $0x58] sm:$0xff]  }
0x1029   : > { %7588 = vmatpush3.bf16.msra.mxu0 %v3854_v34  ;;  %7589 = vmatprep.mubr.msk.bf16.mxu0 %vm1518_vm3, %v8104_v38  ;;  %v8126_v38 = vld [vmem:[#allocation16 + $0x60] sm:$0xff]  }
0x102a   : > { %7601 = vmatprep.subr.bf16.mxu0 %v3854_v34 }
0x1030   : > { %7590 = vmatmul.mubr.msk.bf16.vlgmr.msra.gmra.mrb[68].mxu0 %vm1518_vm3, %v8105_v39  ;;  %v8127_v39 = vld [vmem:[#allocation16 + $0x68] sm:$0xff]  }
0x1031   : > { %7602 = vmatpush3.bf16.msra.mxu0 %v3854_v34  ;;  %7603 = vmatprep.mubr.msk.bf16.mxu0 %vm1518_vm3, %v8106_v40  ;;  %v8128_v40 = vld [vmem:[%s9524_s23 + $0x20] sm:$0xff]  }
0x1032   : > { %7615 = vmatprep.subr.bf16.mxu0 %v3854_v34 }
0x1038   : > { %7604 = vmatmul.mubr.msk.bf16.vlgmr.msra.gmra.mrb[72].mxu0 %vm1518_vm3, %v8107_v41  ;;  %v8132_v41 = vld [vmem:[%s9524_s23] sm:$0xff]  }
0x1039   : > { %7616 = vmatpush3.bf16.msra.mxu0 %v3854_v34  ;;  %7617 = vmatprep.mubr.msk.bf16.mxu0 %vm1518_vm3, %v8108_v44  ;;  %v6721_v44 = vld [vmem:[%s9525_s29] ss:$0 sm:$0xff] }
0x103a   : > { %7629 = vmatprep.subr.bf16.mxu0 %v3854_v34 }
0x1040   : > { %7618 = vmatmul.mubr.msk.bf16.vlgmr.msra.gmra.mrb[76].mxu0 %vm1518_vm3, %v8109_v45 }
0x1041   : > { %7630 = vmatpush3.bf16.msra.mxu0 %v3854_v34  ;;  %7631 = vmatprep.mubr.msk.bf16.mxu0 %vm1518_vm3, %v8110_v47 }
0x1042   : > { %7643 = vmatprep.subr.bf16.mxu0 %v3854_v34 }
0x1048   : > { %7632 = vmatmul.mubr.msk.bf16.vlgmr.msra.gmra.mrb[80].mxu0 %vm1518_vm3, %v8111_v48 }
0x1049   : > { %7644 = vmatpush3.bf16.msra.mxu0 %v3854_v34  ;;  %7645 = vmatprep.mubr.msk.bf16.mxu0 %vm1518_vm3, %v8112_v49 }
0x1050   : > { %7646 = vmatmul.mubr.msk.bf16.vlgmr.msra.gmra.mrb[84].mxu0 %vm1518_vm3, %v8113_v50 }
0x1051   : > { %7661 = vmatprep.mubr.msk.bf16.mxu0 %vm1408_vm2, %v8132_v41 }
0x10f3   : > { %v7563_v54 = vpop.f32.mrb[60].mxu0 }
0x10f4   : > { %v3909_v43 = vpop.f32.mrb[61].mxu0 }
0x10f5   : > { %v7564_v55 = vpop.f32.mrb[62].mxu0 }
0x10f6   : > { %v3925_v56 = vpack.c.bf16 %v7564_v55, %v7563_v54  ;;  %v3912_v57 = vpop.f32.mrb[63].mxu0 }
0x10f7   : > { %v3924_v58 = vpack.c.bf16 %v3912_v57, %v3909_v43 }
0x10fb   : > { %v7569_v59 = vpop.f32.mrb[64].mxu0 }
0x10fc   : > { %v3985_v60 = vpop.f32.mrb[65].mxu0 }
0x10fd   : > { %v7570_v61 = vpop.f32.mrb[66].mxu0 }
0x10fe   : > { %v4001_v42 = vpack.c.bf16 %v7570_v61, %v7569_v59  ;;  %v3988_v62 = vpop.f32.mrb[67].mxu0  ;;  %v8156_v59 = vld [vmem:[#allocation17 + $0x8] sm:$0xff]  }
0x10ff   : > { %v4000_v63 = vpack.c.bf16 %v3988_v62, %v3985_v60  ;;  %v8129_v60 = vld [vmem:[%s9524_s23 + $0x28] sm:$0xff]   ;;  %v8136_v62 = vld [vmem:[%s9524_s23 + $0x10] sm:$0xff]  }
0x1100   : > { %v8134_v61 = vld [vmem:[%s9524_s23 + $0x8] sm:$0xff]  }
0x1101   : > { %7575 = vmatprep.mubr.msk.bf16.mxu1 %vm1408_vm2, %v4000_v63  ;;  %v8131_v63 = vld [vmem:[%s9524_s23 + $0x38] sm:$0xff]  }
0x1102   : > { %7576 = vmatmul.mubr.msk.bf16.vlgmr.msra.gmra.mrb[116].mxu1 %vm1408_vm2, %v4001_v42  ;;  %v8130_v42 = vld [vmem:[%s9524_s23 + $0x30] sm:$0xff]  }
0x1103   : > { %7583 = vmatprep.mubr.msk.bf16.mxu1 %vm1408_vm2, %v3924_v58  ;;  %7580 = vmatpush3.bf16.msra.mxu1 %v8116_v53  ;;  %v7591_v1 = vpop.f32.mrb[68].mxu0 }
0x1104   : > { %7581 = vmatprep.subr.bf16.mxu1 %v8117_v0  ;;  %v4196_v46 = vpop.f32.mrb[69].mxu0 }
0x1105   : > { %v7592_v3 = vpop.f32.mrb[70].mxu0 }
0x1106   : > { %v4212_v4 = vpack.c.bf16 %v7592_v3, %v7591_v1  ;;  %v4199_v5 = vpop.f32.mrb[71].mxu0  ;;  %v8133_v1 = vld [vmem:[%s9524_s23 + $0x40] sm:$0xff]   ;;  %v8139_v3 = vld [vmem:[%s9524_s23 + $0x58] sm:$0xff]  }
0x1107   : > { %7582 = vmatpush3.bf16.msra.mxu1 %v8117_v0  ;;  %v4211_v6 = vpack.c.bf16 %v4199_v5, %v4196_v46  ;;  %v8138_v0 = vld [vmem:[%s9524_s23 + $0x18] sm:$0xff]   ;;  %v8137_v46 = vld [vmem:[%s9524_s23 + $0x50] sm:$0xff]   ;;  %v8141_v5 = vld [vmem:[%s9524_s23 + $0x68] sm:$0xff]  }
0x1108   : > { %7593 = vmatprep.subr.bf16.mxu1 %v8118_v2 }
0x110b   : > { %v7605_v7 = vpop.f32.mrb[72].mxu0 }
0x110c   : > { %v4344_v9 = vpop.f32.mrb[73].mxu0 }
0x110d   : > { %v7606_v10 = vpop.f32.mrb[74].mxu0 }
0x110e   : > { %7584 = vmatmul.mubr.msk.bf16.vlgmr.msra.gmra.mrb[116].mxu1 %vm1408_vm2, %v3925_v56  ;;  %v4360_v11 = vpack.c.bf16 %v7606_v10, %v7605_v7  ;;  %v4347_v12 = vpop.f32.mrb[75].mxu0  ;;  %v8143_v7 = vld [vmem:[%s9524_s23 + $0x78] sm:$0xff]   ;;  %v8146_v10 = vld [vmem:[%s9524_s23 + $0x90] sm:$0xff]  }
0x110f   : > { %7594 = vmatpush3.bf16.msra.mxu1 %v8118_v2  ;;  %7597 = vmatprep.mubr.msk.bf16.mxu1 %vm1408_vm2, %v4211_v6  ;;  %v4359_v13 = vpack.c.bf16 %v4347_v12, %v4344_v9  ;;  %v8135_v2 = vld [vmem:[%s9524_s23 + $0x48] sm:$0xff]   ;;  %v8142_v6 = vld [vmem:[%s9524_s23 + $0x70] sm:$0xff]   ;;  %v8148_v12 = vld [vmem:[%s9524_s23 + $0xa0] sm:$0xff]  }
0x1110   : > { %7595 = vmatprep.subr.bf16.mxu1 %v8119_v8  ;;  %v8145_v9 = vld [vmem:[%s9524_s23 + $0x88] sm:$0xff]  }
0x1113   : > { %7596 = vmatpush3.bf16.msra.mxu1 %v8119_v8  ;;  %v7619_v15 = vpop.f32.mrb[76].mxu0  ;;  %v8144_v8 = vld [vmem:[%s9524_s23 + $0x80] sm:$0xff]  }
0x1114   : > { %7607 = vmatprep.subr.bf16.mxu1 %v8120_v14  ;;  %v4492_v16 = vpop.f32.mrb[77].mxu0 }
0x1115   : > { %v7620_v17 = vpop.f32.mrb[78].mxu0 }
0x1116   : > { %v4508_v18 = vpack.c.bf16 %v7620_v17, %v7619_v15  ;;  %v4495_v19 = vpop.f32.mrb[79].mxu0  ;;  %v8151_v15 = vld [vmem:[%s9524_s23 + $0xb8] sm:$0xff]   ;;  %v8153_v17 = vld [vmem:[%s9524_s23 + $0xc8] sm:$0xff]  }
0x1117   : > { %v4507_v21 = vpack.c.bf16 %v4495_v19, %v4492_v16  ;;  %v8152_v16 = vld [vmem:[%s9524_s23 + $0xc0] sm:$0xff]   ;;  %v8155_v19 = vld [vmem:[%s9524_s23 + $0xd8] sm:$0xff]  }
0x111a   : > { %7598 = vmatmul.mubr.msk.bf16.vlgmr.msra.gmra.mrb[116].mxu1 %vm1408_vm2, %v4212_v4  ;;  %v8140_v4 = vld [vmem:[%s9524_s23 + $0x60] sm:$0xff]  }
0x111b   : > { %7608 = vmatpush3.bf16.msra.mxu1 %v8120_v14  ;;  %7611 = vmatprep.mubr.msk.bf16.mxu1 %vm1408_vm2, %v4359_v13  ;;  %v7633_v20 = vpop.f32.mrb[80].mxu0  ;;  %v8149_v13 = vld [vmem:[%s9524_s23 + $0xa8] sm:$0xff]   ;;  %v8150_v14 = vld [vmem:[%s9524_s23 + $0xb0] sm:$0xff]  }
0x111c   : > { %7609 = vmatprep.subr.bf16.mxu1 %v8121_v22  ;;  %v4640_v24 = vpop.f32.mrb[81].mxu0 }
0x111d   : > { %v7634_v25 = vpop.f32.mrb[82].mxu0 }
0x111e   : > { %v4656_v26 = vpack.c.bf16 %v7634_v25, %v7633_v20  ;;  %v4643_v27 = vpop.f32.mrb[83].mxu0 }
0x111f   : > { %7610 = vmatpush3.bf16.msra.mxu1 %v8121_v22  ;;  %v4655_v28 = vpack.c.bf16 %v4643_v27, %v4640_v24 }
0x1120   : > { %7621 = vmatprep.subr.bf16.mxu1 %v8122_v23 }
0x1123   : > { %v7647_v29 = vpop.f32.mrb[84].mxu0 }
0x1124   : > { %v4788_v31 = vpop.f32.mrb[85].mxu0 }
0x1125   : > { %v7648_v32 = vpop.f32.mrb[86].mxu0 }
0x1126   : > { %7612 = vmatmul.mubr.msk.bf16.vlgmr.msra.gmra.mrb[116].mxu1 %vm1408_vm2, %v4360_v11  ;;  %v4804_v33 = vpack.c.bf16 %v7648_v32, %v7647_v29  ;;  %v4791_v34 = vpop.f32.mrb[87].mxu0  ;;  %v8147_v11 = vld [vmem:[%s9524_s23 + $0x98] sm:$0xff]  }
0x1127   : > { %7622 = vmatpush3.bf16.msra.mxu1 %v8122_v23  ;;  %7625 = vmatprep.mubr.msk.bf16.mxu1 %vm1408_vm2, %v4507_v21  ;;  %v4803_v35 = vpack.c.bf16 %v4791_v34, %v4788_v31  ;;  %v8157_v21 = vld [vmem:[#allocation17] sm:$0xff]  }
0x1128   : > { %7623 = vmatprep.subr.bf16.mxu1 %v8123_v30 }
0x112b   : > { %7624 = vmatpush3.bf16.msra.mxu1 %v8123_v30 }
0x112c   : > { %7635 = vmatprep.subr.bf16.mxu1 %v8124_v36 }
0x1132   : > { %7626 = vmatmul.mubr.msk.bf16.vlgmr.msra.gmra.mrb[116].mxu1 %vm1408_vm2, %v4508_v18  ;;  %v8154_v18 = vld [vmem:[%s9524_s23 + $0xd0] sm:$0xff]  }
0x1133   : > { %7636 = vmatpush3.bf16.msra.mxu1 %v8124_v36  ;;  %7639 = vmatprep.mubr.msk.bf16.mxu1 %vm1408_vm2, %v4655_v28 }
0x1134   : > { %7637 = vmatprep.subr.bf16.mxu1 %v8125_v37 }
0x1137   : > { %7638 = vmatpush3.bf16.msra.mxu1 %v8125_v37 }
0x1138   : > { %7649 = vmatprep.subr.bf16.mxu1 %v8126_v38 }
0x113e   : > { %7640 = vmatmul.mubr.msk.bf16.vlgmr.msra.gmra.mrb[116].mxu1 %vm1408_vm2, %v4656_v26 }
0x113f   : > { %7650 = vmatpush3.bf16.msra.mxu1 %v8126_v38  ;;  %7653 = vmatprep.mubr.msk.bf16.mxu1 %vm1408_vm2, %v4803_v35 }
0x1140   : > { %7651 = vmatprep.subr.bf16.mxu1 %v8127_v39 }
0x1143   : > { %7652 = vmatpush3.bf16.msra.mxu1 %v8127_v39 }
0x114a   : > { %7654 = vmatmul.mubr.msk.bf16.vlgmr.msra.gmra.mrb[116].mxu1 %vm1408_vm2, %v4804_v33  ;;  %v8158_v33 = vld [vmem:[#allocation17 + $0x10] sm:$0xff]  }
0x114b   : > { %7673 = vmatprep.mubr.msk.bf16.mxu1 %vm1408_vm2, %v8128_v40 }
0x121d   : > { %v7655_v45 = vpop.f32.mrb[116].mxu1 }
0x121e   : > { %v4890_v47 = vadd.f32 %v7655_v45, %v6721_v44  ;;  %v4862_v48 = vpop.f32.mrb[117].mxu1 }
0x121f   : > { %v4888_v49 = vadd.f32 %v6721_v44, %v4862_v48  ;;  %v7656_v50 = vpop.f32.mrb[118].mxu1 }
0x1220   : > { %v4891_v51 = vadd.f32 %v7656_v50, %v6721_v44  ;;  %v4865_v52 = vpop.f32.mrb[119].mxu1  ;;  %v4894_v54 = vmax.f32 %v4890_v47, 0.0 }
0x1221   : > { %v4889_v53 = vadd.f32 %v6721_v44, %v4865_v52  ;;  %v4892_v55 = vmax.f32 %v4888_v49, 0.0 }
0x1222   : > { %v4895_v43 = vmax.f32 %v4891_v51, 0.0 }
0x1223   : > { %v4893_v56 = vmax.f32 %v4889_v53, 0.0 }
0x1224   : > { %v9288_v57 = vpack.c.bf16 %v4895_v43, %v4894_v54  ;;  %v8159_v43 = vld [vmem:[#allocation17 + $0x18] sm:$0xff]  }
0x1225   : > { %v9290_v58 = vpack.c.bf16 %v4893_v56, %v4892_v55 }
0x1227   : > { %7657 = vmatprep.subr.bf16.mxu0 %v9290_v58  ;;  %7669 = vmatprep.subr.bf16.mxu1 %v9290_v58 }
0x1228   : > { %7658 = vmatpush3.bf16.msra.mxu0 %v9290_v58  ;;  %7670 = vmatpush3.bf16.msra.mxu1 %v9290_v58 }
0x1229   : > { %7659 = vmatprep.subr.bf16.mxu0 %v9288_v57  ;;  %7671 = vmatprep.subr.bf16.mxu1 %v9288_v57 }
0x122c   : > { %7660 = vmatpush3.bf16.msra.mxu0 %v9288_v57  ;;  %7672 = vmatpush3.bf16.msra.mxu1 %v9288_v57 }
0x122d   : > { %7701 = vmatprep.subr.bf16.mxu1 %v9290_v58  ;;  %7681 = vmatprep.subr.bf16.mxu0 %v8156_v59 }
0x122f   : > { %7674 = vmatmul.mubr.msk.bf16.vlgmr.msra.gmra.mrb[120].mxu1 %vm1408_vm2, %v8129_v60  ;;  %7662 = vmatmul.mubr.msk.bf16.vlgmr.msra.gmra.mrb[88].mxu0 %vm1408_vm2, %v8134_v61 }
0x1230   : > { %7702 = vmatpush3.bf16.msra.mxu1 %v9290_v58  ;;  %7677 = vmatprep.mubr.msk.bf16.mxu1 %vm1408_vm2, %v8130_v42 }
0x1231   : > { %7703 = vmatprep.subr.bf16.mxu1 %v9288_v57  ;;  %7665 = vmatprep.mubr.msk.bf16.mxu0 %vm1408_vm2, %v8136_v62 }
0x1232   : > { %7682 = vmatpush3.bf16.msra.mxu0 %v8156_v59 }
0x1233   : > { %7691 = vmatprep.subr.bf16.mxu0 %v8157_v21 }
0x1234   : > { %7704 = vmatpush3.bf16.msra.mxu1 %v9288_v57 }
0x1235   : > { %7723 = vmatprep.subr.bf16.mxu1 %v9290_v58 }
0x1237   : > { %7678 = vmatmul.mubr.msk.bf16.gmra.mrb[124].mxu1 %vm1408_vm2, %v8131_v63  ;;  %7666 = vmatmul.mubr.msk.bf16.gmra.mrb[92].mxu0 %vm1408_vm2, %v8138_v0 }
0x1238   : > { %7705 = vmatprep.mubr.msk.bf16.mxu1 %vm1408_vm2, %v8133_v1 }
0x123f   : > { %7706 = vmatmul.mubr.msk.bf16.vlgmr.msra.gmra.mrb[128].mxu1 %vm1408_vm2, %v8135_v2  ;;  %v8160_v2 = vld [vmem:[#allocation17 + $0x20] sm:$0xff]  }
0x1240   : > { %7724 = vmatpush3.bf16.msra.mxu1 %v9290_v58  ;;  %7709 = vmatprep.mubr.msk.bf16.mxu1 %vm1408_vm2, %v8137_v46 }
0x1241   : > { %7725 = vmatprep.subr.bf16.mxu1 %v9288_v57 }
0x1244   : > { %7726 = vmatpush3.bf16.msra.mxu1 %v9288_v57 }
0x1245   : > { %7745 = vmatprep.subr.bf16.mxu1 %v9290_v58 }
0x1247   : > { %7710 = vmatmul.mubr.msk.bf16.gmra.mrb[132].mxu1 %vm1408_vm2, %v8139_v3 }
0x1248   : > { %7727 = vmatprep.mubr.msk.bf16.mxu1 %vm1408_vm2, %v8140_v4 }
0x124f   : > { %7728 = vmatmul.mubr.msk.bf16.vlgmr.msra.gmra.mrb[136].mxu1 %vm1408_vm2, %v8141_v5 }
0x1250   : > { %7746 = vmatpush3.bf16.msra.mxu1 %v9290_v58  ;;  %7731 = vmatprep.mubr.msk.bf16.mxu1 %vm1408_vm2, %v8142_v6 }
0x1251   : > { %7747 = vmatprep.subr.bf16.mxu1 %v9288_v57 }
0x1254   : > { %7748 = vmatpush3.bf16.msra.mxu1 %v9288_v57 }
0x1255   : > { %7767 = vmatprep.subr.bf16.mxu1 %v9290_v58 }
0x1257   : > { %7732 = vmatmul.mubr.msk.bf16.gmra.mrb[140].mxu1 %vm1408_vm2, %v8143_v7 }
0x1258   : > { %7749 = vmatprep.mubr.msk.bf16.mxu1 %vm1408_vm2, %v8144_v8 }
0x125f   : > { %7750 = vmatmul.mubr.msk.bf16.vlgmr.msra.gmra.mrb[144].mxu1 %vm1408_vm2, %v8145_v9 }
0x1260   : > { %7768 = vmatpush3.bf16.msra.mxu1 %v9290_v58  ;;  %7753 = vmatprep.mubr.msk.bf16.mxu1 %vm1408_vm2, %v8146_v10 }
0x1261   : > { %7769 = vmatprep.subr.bf16.mxu1 %v9288_v57 }
0x1264   : > { %7770 = vmatpush3.bf16.msra.mxu1 %v9288_v57 }
0x1265   : > { %7789 = vmatprep.subr.bf16.mxu1 %v9290_v58 }
0x1267   : > { %7754 = vmatmul.mubr.msk.bf16.gmra.mrb[148].mxu1 %vm1408_vm2, %v8147_v11 }
0x1268   : > { %7771 = vmatprep.mubr.msk.bf16.mxu1 %vm1408_vm2, %v8148_v12 }
0x126f   : > { %7772 = vmatmul.mubr.msk.bf16.vlgmr.msra.gmra.mrb[152].mxu1 %vm1408_vm2, %v8149_v13 }
0x1270   : > { %7790 = vmatpush3.bf16.msra.mxu1 %v9290_v58  ;;  %7775 = vmatprep.mubr.msk.bf16.mxu1 %vm1408_vm2, %v8150_v14  ;;  %v8161_v14 = vld [vmem:[#allocation17 + $0x28] sm:$0xff]  }
0x1271   : > { %7791 = vmatprep.subr.bf16.mxu1 %v9288_v57 }
0x1274   : > { %7792 = vmatpush3.bf16.msra.mxu1 %v9288_v57 }
0x1277   : > { %7776 = vmatmul.mubr.msk.bf16.gmra.mrb[156].mxu1 %vm1408_vm2, %v8151_v15 }
0x1278   : > { %7793 = vmatprep.mubr.msk.bf16.mxu1 %vm1408_vm2, %v8152_v16 }
0x127f   : > { %7794 = vmatmul.mubr.msk.bf16.vlgmr.msra.gmra.mrb[160].mxu1 %vm1408_vm2, %v8153_v17 }
0x1280   : > { %7797 = vmatprep.mubr.msk.bf16.mxu1 %vm1408_vm2, %v8154_v18 }
0x1287   : > { %7798 = vmatmul.mubr.msk.bf16.gmra.mrb[164].mxu1 %vm1408_vm2, %v8155_v19 }
0x1302   : > { %v7675_v22 = vpop.f32.mrb[120].mxu1  ;;  %v7663_v20 = vpop.f32.mrb[88].mxu0 }
0x1303   : > { %v5084_v23 = vpop.f32.mrb[121].mxu1  ;;  %v4972_v24 = vpop.f32.mrb[89].mxu0 }
0x1304   : > { %v7676_v25 = vpop.f32.mrb[122].mxu1  ;;  %v7664_v26 = vpop.f32.mrb[90].mxu0 }
0x1305   : > { %v5116_v27 = vpack.c.bf16 %v7676_v25, %v7675_v22  ;;  %v5087_v28 = vpop.f32.mrb[123].mxu1  ;;  %v5004_v29 = vpack.c.bf16 %v7664_v26, %v7663_v20  ;;  %v4975_v30 = vpop.f32.mrb[91].mxu0 }
0x1306   : > { %v5115_v31 = vpack.c.bf16 %v5087_v28, %v5084_v23  ;;  %v5003_v32 = vpack.c.bf16 %v4975_v30, %v4972_v24 }
0x1308   : > { %7683 = vmatprep.mubr.msk.bf16.mxu0 %vm1518_vm3, %v5115_v31 }
0x1309   : > { %7684 = vmatmul.mubr.msk.bf16.vlgmr.msra.gmra.mrb[96].mxu0 %vm1518_vm3, %v5116_v27  ;;  %v8162_v27 = vld [vmem:[#allocation17 + $0x30] sm:$0xff]  }
0x130a   : > { %v7679_v34 = vpop.f32.mrb[124].mxu1  ;;  %7692 = vmatpush3.bf16.msra.mxu0 %v8157_v21  ;;  %v7667_v35 = vpop.f32.mrb[92].mxu0 }
0x130b   : > { %v5100_v36 = vpop.f32.mrb[125].mxu1  ;;  %v4988_v37 = vpop.f32.mrb[93].mxu0  ;;  %7713 = vmatprep.subr.bf16.mxu0 %v8158_v33 }
0x130c   : > { %v7680_v38 = vpop.f32.mrb[126].mxu1  ;;  %v7668_v39 = vpop.f32.mrb[94].mxu0 }
0x130d   : > { %v5118_v40 = vpack.c.bf16 %v7680_v38, %v7679_v34  ;;  %v5103_v41 = vpop.f32.mrb[127].mxu1  ;;  %v5006_v44 = vpack.c.bf16 %v7668_v39, %v7667_v35  ;;  %v4991_v45 = vpop.f32.mrb[95].mxu0 }
0x130e   : > { %v5117_v47 = vpack.c.bf16 %v5103_v41, %v5100_v36  ;;  %v5005_v48 = vpack.c.bf16 %v4991_v45, %v4988_v37 }
0x1310   : > { %7687 = vmatprep.mubr.msk.bf16.mxu0 %vm1518_vm3, %v5117_v47 }
0x1311   : > { %7688 = vmatmul.mubr.msk.bf16.gmra.mrb[100].mxu0 %vm1518_vm3, %v5118_v40 }
0x1312   : > { %7693 = vmatprep.mubr.msk.bf16.mxu0 %vm1518_vm3, %v5003_v32  ;;  %v7707_v49 = vpop.f32.mrb[128].mxu1 }
0x1313   : > { %v5363_v50 = vpop.f32.mrb[129].mxu1 }
0x1314   : > { %v7708_v51 = vpop.f32.mrb[130].mxu1 }
0x1315   : > { %v5395_v52 = vpack.c.bf16 %v7708_v51, %v7707_v49  ;;  %v5366_v53 = vpop.f32.mrb[131].mxu1  ;;  %v6861_v49 = vld [vmem:[#allocation2] ss:$0 sm:$0xff] }
0x1316   : > { %v5394_v54 = vpack.c.bf16 %v5366_v53, %v5363_v50 }
0x1319   : > { %7694 = vmatmul.mubr.msk.bf16.vlgmr.msra.gmra.mrb[96].mxu0 %vm1518_vm3, %v5004_v29 }
0x131a   : > { %7714 = vmatpush3.bf16.msra.mxu0 %v8158_v33  ;;  %7697 = vmatprep.mubr.msk.bf16.mxu0 %vm1518_vm3, %v5005_v48  ;;  %v7711_v55 = vpop.f32.mrb[132].mxu1 }
0x131b   : > { %v5379_v56 = vpop.f32.mrb[133].mxu1  ;;  %7735 = vmatprep.subr.bf16.mxu0 %v8159_v43 }
0x131c   : > { %v7712_v57 = vpop.f32.mrb[134].mxu1 }
0x131d   : > { %v5397_v58 = vpack.c.bf16 %v7712_v57, %v7711_v55  ;;  %v5382_v59 = vpop.f32.mrb[135].mxu1 }
0x131e   : > { %v5396_v60 = vpack.c.bf16 %v5382_v59, %v5379_v56 }
0x1321   : > { %7698 = vmatmul.mubr.msk.bf16.gmra.mrb[100].mxu0 %vm1518_vm3, %v5006_v44 }
0x1322   : > { %7715 = vmatprep.mubr.msk.bf16.mxu0 %vm1518_vm3, %v5394_v54  ;;  %v7729_v61 = vpop.f32.mrb[136].mxu1 }
0x1323   : > { %v5567_v42 = vpop.f32.mrb[137].mxu1 }
0x1324   : > { %v7730_v62 = vpop.f32.mrb[138].mxu1 }
0x1325   : > { %v5599_v63 = vpack.c.bf16 %v7730_v62, %v7729_v61  ;;  %v5570_v0 = vpop.f32.mrb[139].mxu1 }
0x1326   : > { %v5598_v1 = vpack.c.bf16 %v5570_v0, %v5567_v42 }
0x1329   : > { %7716 = vmatmul.mubr.msk.bf16.vlgmr.msra.gmra.mrb[96].mxu0 %vm1518_vm3, %v5395_v52 }
0x132a   : > { %7736 = vmatpush3.bf16.msra.mxu0 %v8159_v43  ;;  %7719 = vmatprep.mubr.msk.bf16.mxu0 %vm1518_vm3, %v5396_v60  ;;  %v7733_v46 = vpop.f32.mrb[140].mxu1 }
0x132b   : > { %v5583_v3 = vpop.f32.mrb[141].mxu1  ;;  %7757 = vmatprep.subr.bf16.mxu0 %v8160_v2 }
0x132c   : > { %v7734_v4 = vpop.f32.mrb[142].mxu1 }
0x132d   : > { %v5601_v5 = vpack.c.bf16 %v7734_v4, %v7733_v46  ;;  %v5586_v6 = vpop.f32.mrb[143].mxu1 }
0x132e   : > { %v5600_v7 = vpack.c.bf16 %v5586_v6, %v5583_v3 }
0x1331   : > { %7720 = vmatmul.mubr.msk.bf16.gmra.mrb[100].mxu0 %vm1518_vm3, %v5397_v58 }
0x1332   : > { %7737 = vmatprep.mubr.msk.bf16.mxu0 %vm1518_vm3, %v5598_v1  ;;  %v7751_v8 = vpop.f32.mrb[144].mxu1 }
0x1333   : > { %v5771_v9 = vpop.f32.mrb[145].mxu1 }
0x1334   : > { %v7752_v10 = vpop.f32.mrb[146].mxu1 }
0x1335   : > { %v5803_v11 = vpack.c.bf16 %v7752_v10, %v7751_v8  ;;  %v5774_v12 = vpop.f32.mrb[147].mxu1 }
0x1336   : > { %v5802_v13 = vpack.c.bf16 %v5774_v12, %v5771_v9 }
0x1339   : > { %7738 = vmatmul.mubr.msk.bf16.vlgmr.msra.gmra.mrb[96].mxu0 %vm1518_vm3, %v5599_v63 }
0x133a   : > { %7758 = vmatpush3.bf16.msra.mxu0 %v8160_v2  ;;  %7741 = vmatprep.mubr.msk.bf16.mxu0 %vm1518_vm3, %v5600_v7  ;;  %v7755_v15 = vpop.f32.mrb[148].mxu1 }
0x133b   : > { %v5787_v16 = vpop.f32.mrb[149].mxu1  ;;  %7779 = vmatprep.subr.bf16.mxu0 %v8161_v14 }
0x133c   : > { %v7756_v17 = vpop.f32.mrb[150].mxu1 }
0x133d   : > { %v5805_v18 = vpack.c.bf16 %v7756_v17, %v7755_v15  ;;  %v5790_v19 = vpop.f32.mrb[151].mxu1 }
0x133e   : > { %v5804_v21 = vpack.c.bf16 %v5790_v19, %v5787_v16 }
0x1341   : > { %7742 = vmatmul.mubr.msk.bf16.gmra.mrb[100].mxu0 %vm1518_vm3, %v5601_v5 }
0x1342   : > { %7759 = vmatprep.mubr.msk.bf16.mxu0 %vm1518_vm3, %v5802_v13  ;;  %v7773_v22 = vpop.f32.mrb[152].mxu1 }
0x1343   : > { %v5975_v20 = vpop.f32.mrb[153].mxu1 }
0x1344   : > { %v7774_v23 = vpop.f32.mrb[154].mxu1 }
0x1345   : > { %v6007_v24 = vpack.c.bf16 %v7774_v23, %v7773_v22  ;;  %v5978_v25 = vpop.f32.mrb[155].mxu1 }
0x1346   : > { %v6006_v26 = vpack.c.bf16 %v5978_v25, %v5975_v20 }
0x1349   : > { %7760 = vmatmul.mubr.msk.bf16.vlgmr.msra.gmra.mrb[96].mxu0 %vm1518_vm3, %v5803_v11 }
0x134a   : > { %7780 = vmatpush3.bf16.msra.mxu0 %v8161_v14  ;;  %7763 = vmatprep.mubr.msk.bf16.mxu0 %vm1518_vm3, %v5804_v21  ;;  %v7777_v28 = vpop.f32.mrb[156].mxu1 }
0x134b   : > { %v5991_v29 = vpop.f32.mrb[157].mxu1  ;;  %7801 = vmatprep.subr.bf16.mxu0 %v8162_v27 }
0x134c   : > { %v7778_v30 = vpop.f32.mrb[158].mxu1 }
0x134d   : > { %v6009_v31 = vpack.c.bf16 %v7778_v30, %v7777_v28  ;;  %v5994_v32 = vpop.f32.mrb[159].mxu1 }
0x134e   : > { %v6008_v33 = vpack.c.bf16 %v5994_v32, %v5991_v29 }
0x1351   : > { %7764 = vmatmul.mubr.msk.bf16.gmra.mrb[100].mxu0 %vm1518_vm3, %v5805_v18 }
0x1352   : > { %7781 = vmatprep.mubr.msk.bf16.mxu0 %vm1518_vm3, %v6006_v26  ;;  %v7795_v34 = vpop.f32.mrb[160].mxu1 }
0x1353   : > { %v6179_v35 = vpop.f32.mrb[161].mxu1 }
0x1354   : > { %v7796_v36 = vpop.f32.mrb[162].mxu1 }
0x1355   : > { %v6211_v37 = vpack.c.bf16 %v7796_v36, %v7795_v34  ;;  %v6182_v38 = vpop.f32.mrb[163].mxu1 }
0x1356   : > { %v6210_v39 = vpack.c.bf16 %v6182_v38, %v6179_v35 }
0x1359   : > { %7782 = vmatmul.mubr.msk.bf16.vlgmr.msra.gmra.mrb[96].mxu0 %vm1518_vm3, %v6007_v24 }
0x135a   : > { %7802 = vmatpush3.bf16.msra.mxu0 %v8162_v27  ;;  %7785 = vmatprep.mubr.msk.bf16.mxu0 %vm1518_vm3, %v6008_v33  ;;  %v7799_v40 = vpop.f32.mrb[164].mxu1 }
0x135b   : > { %v6195_v41 = vpop.f32.mrb[165].mxu1 }
0x135c   : > { %v7800_v44 = vpop.f32.mrb[166].mxu1 }
0x135d   : > { %v6213_v45 = vpack.c.bf16 %v7800_v44, %v7799_v40  ;;  %v6198_v47 = vpop.f32.mrb[167].mxu1 }
0x135e   : > { %v6212_v48 = vpack.c.bf16 %v6198_v47, %v6195_v41 }
0x1361   : > { %7786 = vmatmul.mubr.msk.bf16.gmra.mrb[100].mxu0 %vm1518_vm3, %v6009_v31 }
0x1362   : > { %7803 = vmatprep.mubr.msk.bf16.mxu0 %vm1518_vm3, %v6210_v39 }
0x1369   : > { %7804 = vmatmul.mubr.msk.bf16.vlgmr.msra.gmra.mrb[96].mxu0 %vm1518_vm3, %v6211_v37 }
0x136a   : > { %7807 = vmatprep.mubr.msk.bf16.mxu0 %vm1518_vm3, %v6212_v48 }
0x1371   : > { %7808 = vmatmul.mubr.msk.bf16.gmra.mrb[100].mxu0 %vm1518_vm3, %v6213_v45 }
0x143c   : > { %v7805_v50 = vpop.f32.mrb[96].mxu0 }
0x143d   : > { %v6317_v51 = vadd.f32 %v7805_v50, %v6861_v49  ;;  %v6269_v52 = vpop.f32.mrb[97].mxu0 }
0x143e   : > { %v6315_v53 = vadd.f32 %v6861_v49, %v6269_v52  ;;  %v7806_v54 = vpop.f32.mrb[98].mxu0 }
0x143f   : > { %8163 = vtanh.f32 %v6317_v51  ;;  %v6318_v43 = vadd.f32 %v7806_v54, %v6861_v49  ;;  %v6272_v55 = vpop.f32.mrb[99].mxu0 }
0x1440   : > { %8165 = vtanh.f32 %v6315_v53  ;;  %v6316_v56 = vadd.f32 %v6861_v49, %v6272_v55 }
0x1441   : > { %8167 = vtanh.f32 %v6318_v43 }
0x1442   : > { %8169 = vtanh.f32 %v6316_v56 }
0x1444   : > { %v7809_v57 = vpop.f32.mrb[100].mxu0 }
0x1445   : > { %v6321_v58 = vadd.f32 %v7809_v57, %v6861_v49  ;;  %v6285_v59 = vpop.f32.mrb[101].mxu0 }
0x1446   : > { %v6319_v60 = vadd.f32 %v6861_v49, %v6285_v59  ;;  %v7810_v61 = vpop.f32.mrb[102].mxu0 }
0x1447   : > { %8171 = vtanh.f32 %v6321_v58  ;;  %v6322_v42 = vadd.f32 %v7810_v61, %v6861_v49  ;;  %v6288_v62 = vpop.f32.mrb[103].mxu0 }
0x1448   : > { %8173 = vtanh.f32 %v6319_v60  ;;  %v6320_v63 = vadd.f32 %v6861_v49, %v6288_v62 }
0x1449   : > { %v8164_v0 = vpop.eup %8163  ;;  %8175 = vtanh.f32 %v6322_v42 }
0x144a   : > { %v8166_v1 = vpop.eup %8165  ;;  %6334 = vst.msk [vmem:[%s750_s4 + $0x10] sm:$0xff] %vm6331_vm6, %v8164_v0  ;;  %8177 = vtanh.f32 %v6320_v63 }
0x144b   : > { %v8168_v2 = vpop.eup %8167  ;;  %6332 = vst.msk [vmem:[%s750_s4] sm:$0xff] %vm6331_vm6, %v8166_v1 }
0x144c   : > { %v8170_v46 = vpop.eup %8169  ;;  %6335 = vst.msk [vmem:[%s750_s4 + $0x18] sm:$0xff] %vm6331_vm6, %v8168_v2 }
0x144d   : > { %6333 = vst.msk [vmem:[%s750_s4 + $0x8] sm:$0xff] %vm6331_vm6, %v8170_v46 }
0x1451   : > { %v8172_v3 = vpop.eup %8171 }
0x1452   : > { %v8174_v4 = vpop.eup %8173  ;;  %6338 = vst.msk [vmem:[%s750_s4 + $0x30] sm:$0xff] %vm6331_vm6, %v8172_v3 }
0x1453   : > { %v8176_v5 = vpop.eup %8175  ;;  %6336 = vst.msk [vmem:[%s750_s4 + $0x20] sm:$0xff] %vm6331_vm6, %v8174_v4 }
0x1454   : > { %v8178_v6 = vpop.eup %8177  ;;  %6339 = vst.msk [vmem:[%s750_s4 + $0x38] sm:$0xff] %vm6331_vm6, %v8176_v5 }
0x1455   : > { %6337 = vst.msk [vmem:[%s750_s4 + $0x28] sm:$0xff] %vm6331_vm6, %v8178_v6 }
0x1456 PF: > { %s9527_s21 = sld [smem:[#allocation25_spill]] }
0x145c   : > { %s37_s20 = sadd.s32 1, %s9527_s21  }
0x145d   : > { %p34_p2 = scmp.ge.s32.totalorder %s37_s20, 4  }
0x145f   :  { %36 = sbr.rel (!%p34_p2) target bundleno = 15 (0xf), region = 239 }
0x1466   :  { %6361 = vsyncpa [#allocation4], 1 }
0x1467   :  { %6363 = vsyncpa [#allocation4 + $0x1], 1 }
0x1468   :  { %6364 = vsyncpa [#allocation6], 1 }
0x1469   :  { %6365 = vsyncpa [#allocation9], 1 }
0x146a   :  { %6366 = vsyncpa [#allocation12], 1 }
0x146b   :  { %6367 = vsyncpa [#allocation15], 1 }
0x146c   :  { %6368 = vsyncpa [#allocation18], 1 }

</bundles_post_ra>
